<compile_context>
chip_gen: v7x
topology: tpu7x:2x2x1
jax: 0.10.0
libtpu: 0.0.40
codegen_flags: <defaults>
</compile_context>

<pallas_src>
import functools

import jax
import jax.numpy as jnp
from jax.experimental import pallas as pl
from jax.experimental.pallas import tpu as pltpu

EPS = 1e-5
NEG_SLOPE = 0.01  # nn.LeakyReLU() default


# --------------------------------------------------------------------------
# Kernel 1: fused in-kernel im2col conv (+bias) + per-block partial BN stats
# --------------------------------------------------------------------------
def _conv_stats_kernel(xe_ref, xo_ref, xet_ref, xot_ref, w_ref, b_ref,
                       y_ref, st_ref, *, th, wo):
    """One (image, row-block) grid step: TH output rows of the strided 3x3 conv.

    Block shapes:
      xe_ref, xo_ref : (1, C, 2*TH, Wo+1)  even / odd padded columns of the
                        reflect-padded input, rows [2*TH*rb, 2*TH*(rb+1)).
      xet_ref,xot_ref: (1, 1, C, Wo+1)     the single extra padded row 2*TH*(rb+1)
                        needed by the kh=2 tap of the block's last output row.
      w_ref          : (3, 3, C, C)        w_ref[kh, kw] = (C_out, C_in)
      b_ref          : (C, 1)
      y_ref          : (1, C, TH*Wo)       conv + bias output (pre-BN), lane-dense
      st_ref         : (1, 1, C, 2)        per-block [sum, sum_sq] over spatial
    """
    c = w_ref.shape[2]
    bias = b_ref[...]                                      # (C, 1)
    s = jnp.zeros((c, 1), jnp.float32)
    ss = jnp.zeros((c, 1), jnp.float32)

    for j in range(th):                                    # static unroll
        acc = jnp.zeros((c, wo), jnp.float32)
        for kh in range(3):
            r = 2 * j + kh
            if r < 2 * th:                                 # row inside this block
                e0 = xe_ref[0, :, r, 0:wo]                 # (C, Wo)  kw=0 taps
                e2 = xe_ref[0, :, r, 1:wo + 1]             # (C, Wo)  kw=2 taps
                o1 = xo_ref[0, :, r, 0:wo]                 # (C, Wo)  kw=1 taps
            else:                                          # r == 2*th -> tail row
                e0 = xet_ref[0, 0, :, 0:wo]
                e2 = xet_ref[0, 0, :, 1:wo + 1]
                o1 = xot_ref[0, 0, :, 0:wo]
            acc = acc + jnp.dot(w_ref[kh, 0], e0, preferred_element_type=jnp.float32)
            acc = acc + jnp.dot(w_ref[kh, 1], o1, preferred_element_type=jnp.float32)
            acc = acc + jnp.dot(w_ref[kh, 2], e2, preferred_element_type=jnp.float32)
        row = acc + bias                                   # (C, Wo)
        y_ref[0, :, j * wo:(j + 1) * wo] = row
        s = s + jnp.sum(row, axis=1, keepdims=True)        # (C, 1)
        ss = ss + jnp.sum(row * row, axis=1, keepdims=True)

    st_ref[0, 0, :, 0:1] = s
    st_ref[0, 0, :, 1:2] = ss


# --------------------------------------------------------------------------
# Kernel 2: folded BatchNorm affine (scale/shift) + LeakyReLU, in place
# --------------------------------------------------------------------------
def _bn_lrelu_kernel(y_ref, sc_ref, sh_ref, o_ref):
    v = y_ref[0] * sc_ref[...] + sh_ref[...]               # (C, TS)
    o_ref[0] = jnp.where(v > 0, v, NEG_SLOPE * v)


# --------------------------------------------------------------------------
# Tile selection helpers
# --------------------------------------------------------------------------
def _round_up(x, m):
    return ((x + m - 1) // m) * m


def _pick_row_tile(ho, wo, c, budget_bytes=24 * 1024 * 1024):
    """Largest TH dividing Ho whose blocks satisfy TPU tiling rules & a VMEM budget."""
    cands = []
    for th in range(1, ho + 1):
        if ho % th:
            continue
        ok_rows = ((2 * th) % 8 == 0) or (th == ho)        # xe/xo block 2nd-minor dim
        ok_lane = ((th * wo) % 128 == 0) or (th == ho)     # y block minor dim
        if ok_rows and ok_lane:
            cands.append(th)
    woe_p = _round_up(wo + 1, 128)
    c_p = _round_up(c, 128)
    for th in sorted(cands, reverse=True):
        blk_in = 2 * c * (2 * th) * woe_p * 4              # xe + xo blocks
        blk_tl = 2 * c * woe_p * 4                         # tail rows
        blk_y = c * _round_up(th * wo, 128) * 4
        blk_w = 9 * c * c_p * 4
        if 2 * (blk_in + blk_tl + blk_y + blk_w) <= budget_bytes:  # x2 double-buffer
            return th
    return min(cands)


def _pick_seq_tile(s, c, budget_bytes=24 * 1024 * 1024, cap=8192):
    cands = [t for t in range(1, s + 1) if s % t == 0 and (t % 128 == 0 or t == s)]
    for t in sorted(cands, reverse=True):
        if t <= cap and 2 * 2 * c * _round_up(t, 128) * 4 <= budget_bytes:
            return t
    return min(cands)


# --------------------------------------------------------------------------
# Forward pass
# --------------------------------------------------------------------------
@jax.jit
def downsample_forward(x_nchw, w, b, gamma, beta):
    """x: (N, C, H, W) f32; w: (C, C, 3, 3); b, gamma, beta: (C,) -> (N, C, Ho, Wo)."""
    N, C, H, W = x_nchw.shape
    Ho = (H + 2 - 3) // 2 + 1
    Wo = (W + 2 - 3) // 2 + 1
    S = Ho * Wo
    Woe = Wo + 1

    TH = _pick_row_tile(Ho, Wo, C)
    RB = Ho // TH

    # ---- glue: reflect pad + even/odd column split (stays NCHW, ~1x input) ------
    xp = jnp.pad(x_nchw, ((0, 0), (0, 0), (1, 1), (1, 1)), mode="reflect")
    xe = xp[:, :, : 2 * Ho, 0::2]                          # (N, C, 2*Ho, Woe)
    xo = xp[:, :, : 2 * Ho, 1::2]
    if xo.shape[-1] < Woe:                                 # odd W: pad one dead column
        xo = jnp.pad(xo, ((0, 0), (0, 0), (0, 0), (0, Woe - xo.shape[-1])))
    # the single extra padded row 2*TH*(rb+1) needed per row-block (tiny)
    xtail = xp[:, :, 2 * TH:: 2 * TH, :]                   # (N, C, RB, W+2)
    xet = jnp.transpose(xtail[..., 0::2], (0, 2, 1, 3))    # (N, RB, C, Woe)
    xot_ = xtail[..., 1::2]
    if xot_.shape[-1] < Woe:
        xot_ = jnp.pad(xot_, ((0, 0), (0, 0), (0, 0), (0, Woe - xot_.shape[-1])))
    xot = jnp.transpose(xot_, (0, 2, 1, 3))                # (N, RB, C, Woe)

    wt = jnp.transpose(w, (2, 3, 0, 1)).astype(jnp.float32)  # (3, 3, Cout, Cin)
    b_col = b.reshape(C, 1).astype(jnp.float32)

    # ---- pallas call 1: conv (in-kernel im2col) + partial BN stats ---------------
    y, stats = pl.pallas_call(
        functools.partial(_conv_stats_kernel, th=TH, wo=Wo),
        out_shape=(
            jax.ShapeDtypeStruct((N, C, S), jnp.float32),
            jax.ShapeDtypeStruct((N, RB, C, 2), jnp.float32),
        ),
        grid=(N, RB),
        in_specs=[
            pl.BlockSpec((1, C, 2 * TH, Woe), lambda n, r: (n, 0, r, 0)),
            pl.BlockSpec((1, C, 2 * TH, Woe), lambda n, r: (n, 0, r, 0)),
            pl.BlockSpec((1, 1, C, Woe), lambda n, r: (n, r, 0, 0)),
            pl.BlockSpec((1, 1, C, Woe), lambda n, r: (n, r, 0, 0)),
            pl.BlockSpec((3, 3, C, C), lambda n, r: (0, 0, 0, 0)),
            pl.BlockSpec((C, 1), lambda n, r: (0, 0)),
        ],
        out_specs=(
            pl.BlockSpec((1, C, TH * Wo), lambda n, r: (n, 0, r)),
            pl.BlockSpec((1, 1, C, 2), lambda n, r: (n, r, 0, 0)),
        ),
        compiler_params=pltpu.CompilerParams(
            dimension_semantics=("parallel", "parallel"),
            vmem_limit_bytes=64 * 1024 * 1024,
        ),
    )(xe, xo, xet, xot, wt, b_col)

    # ---- tiny XLA reduce: batch stats -> folded BN scale / shift -----------------
    tot = jnp.sum(stats, axis=(0, 1))                      # (C, 2)
    m_total = float(N * Ho * Wo)
    mean = tot[:, 0] / m_total
    var = tot[:, 1] / m_total - mean * mean                # biased (training) variance
    inv = gamma.astype(jnp.float32) * jax.lax.rsqrt(var + EPS)
    scale = inv.reshape(C, 1)
    shift = (beta.astype(jnp.float32) - mean * inv).reshape(C, 1)

    # ---- pallas call 2: in-place BN affine + LeakyReLU ---------------------------
    TS = _pick_seq_tile(S, C)
    out_flat = pl.pallas_call(
        _bn_lrelu_kernel,
        out_shape=jax.ShapeDtypeStruct((N, C, S), jnp.float32),
        grid=(N, S // TS),
        in_specs=[
            pl.BlockSpec((1, C, TS), lambda n, sb: (n, 0, sb)),
            pl.BlockSpec((C, 1), lambda n, sb: (0, 0)),
            pl.BlockSpec((C, 1), lambda n, sb: (0, 0)),
        ],
        out_specs=pl.BlockSpec((1, C, TS), lambda n, sb: (n, 0, sb)),
        input_output_aliases={0: 0},                       # normalize y in place
        compiler_params=pltpu.CompilerParams(
            dimension_semantics=("parallel", "parallel"),
        ),
    )(y, scale, shift)

    return out_flat.reshape(N, C, Ho, Wo)


# --------------------------------------------------------------------------
# Pure-JAX reference (sanity check)
# --------------------------------------------------------------------------
def downsample_ref(x_nchw, w, b, gamma, beta):
    xp = jnp.pad(x_nchw, ((0, 0), (0, 0), (1, 1), (1, 1)), mode="reflect")
    y = jax.lax.conv_general_dilated(
        xp, w, window_strides=(2, 2), padding="VALID",
        dimension_numbers=("NCHW", "OIHW", "NCHW"),
    ) + b.reshape(1, -1, 1, 1)
    mean = jnp.mean(y, axis=(0, 2, 3), keepdims=True)
    var = jnp.mean(y * y, axis=(0, 2, 3), keepdims=True) - mean * mean
    yn = (y - mean) * jax.lax.rsqrt(var + EPS)
    yn = yn * gamma.reshape(1, -1, 1, 1) + beta.reshape(1, -1, 1, 1)
    return jnp.where(yn > 0, yn, NEG_SLOPE * yn)


if __name__ == "__main__":
    key = jax.random.PRNGKey(0)
    kx, kw, kb, kg, kbeta = jax.random.split(key, 5)

    N, C, H, W = 2, 4, 16, 16
    x = jax.random.normal(kx, (N, C, H, W), dtype=jnp.float32)

    # Deterministic synthetic parameters (shapes from nn.Conv2d / nn.BatchNorm2d)
    fan_in = C * 3 * 3
    bound = 1.0 / jnp.sqrt(fan_in)
    w = jax.random.uniform(kw, (C, C, 3, 3), jnp.float32, -bound, bound)
    b = jax.random.uniform(kb, (C,), jnp.float32, -bound, bound)
    gamma = 1.0 + 0.1 * jax.random.normal(kg, (C,), jnp.float32)
    beta = 0.1 * jax.random.normal(kbeta, (C,), jnp.float32)

    out = downsample_forward(x, w, b, gamma, beta)
    out = jax.block_until_ready(out)

    ref = downsample_ref(x, w, b, gamma, beta)
    assert out.shape == (N, C, H // 2, W // 2), out.shape
    err = float(jnp.max(jnp.abs(out - ref)))
    assert jnp.allclose(out, ref, rtol=1e-4, atol=1e-4), err

    print("KERNEL_OK")
</pallas_src>

<mosaic_0001>
module attributes {stable_mosaic.version = 11 : i64} {
  func.func @_bn_lrelu_kernel(%arg0: i32, %arg1: i32, %arg2: memref<1x4x64xf32, #tpu.memory_space<vmem>>, %arg3: memref<4x1xf32, #tpu.memory_space<vmem>>, %arg4: memref<4x1xf32, #tpu.memory_space<vmem>>, %arg5: memref<1x4x64xf32, #tpu.memory_space<vmem>>) attributes {dimension_semantics = [#tpu.dimension_semantics<parallel>, #tpu.dimension_semantics<parallel>], iteration_bounds = array<i64: 2, 1>, scalar_prefetch = 0 : i64, scratch_operands = 0 : i64, tpu.core_type = #tpu.core_type<tc>, window_params = [{transform_indices = @transform_0, window_bounds = array<i64: 1, 4, 64>}, {pipeline_mode = #tpu.pipeline_mode<synchronous>, transform_indices = @transform_1, window_bounds = array<i64: 4, 1>}, {pipeline_mode = #tpu.pipeline_mode<synchronous>, transform_indices = @transform_2, window_bounds = array<i64: 4, 1>}, {transform_indices = @transform_3, window_bounds = array<i64: 1, 4, 64>}]} {
    %c0 = arith.constant 0 : index
    %c0_0 = arith.constant 0 : index
    %c0_1 = arith.constant 0 : index
    %0 = vector.load %arg2[%c0, %c0_0, %c0_1] : memref<1x4x64xf32, #tpu.memory_space<vmem>>, vector<1x4x64xf32>
    %1 = vector.shape_cast %0 : vector<1x4x64xf32> to vector<4x64xf32>
    %c0_2 = arith.constant 0 : index
    %c0_3 = arith.constant 0 : index
    %2 = vector.load %arg3[%c0_2, %c0_3] : memref<4x1xf32, #tpu.memory_space<vmem>>, vector<4x1xf32>
    %3 = vector.broadcast %2 : vector<4x1xf32> to vector<4x64xf32>
    %4 = arith.mulf %1, %3 : vector<4x64xf32>
    %c0_4 = arith.constant 0 : index
    %c0_5 = arith.constant 0 : index
    %5 = vector.load %arg4[%c0_4, %c0_5] : memref<4x1xf32, #tpu.memory_space<vmem>>, vector<4x1xf32>
    %6 = vector.broadcast %5 : vector<4x1xf32> to vector<4x64xf32>
    %7 = arith.addf %4, %6 : vector<4x64xf32>
    %cst = arith.constant 0.000000e+00 : f32
    %8 = vector.broadcast %cst : f32 to vector<4x64xf32>
    %9 = arith.cmpf ogt, %7, %8 : vector<4x64xf32>
    %cst_6 = arith.constant 0.00999999977 : f32
    %10 = vector.broadcast %cst_6 : f32 to vector<4x64xf32>
    %11 = arith.mulf %10, %7 : vector<4x64xf32>
    %12 = arith.select %9, %7, %11 : vector<4x64xi1>, vector<4x64xf32>
    %c0_7 = arith.constant 0 : index
    %c0_8 = arith.constant 0 : index
    %c0_9 = arith.constant 0 : index
    %13 = vector.load %arg5[%c0_7, %c0_8, %c0_9] : memref<1x4x64xf32, #tpu.memory_space<vmem>>, vector<1x4x64xf32>
    %14 = vector.shape_cast %13 : vector<1x4x64xf32> to vector<4x64xf32>
    %15 = vector.shape_cast %12 : vector<4x64xf32> to vector<1x4x64xf32>
    tpu.vector_store %arg5[%c0_7, %c0_8, %c0_9], %15 {strides = array<i32>} : memref<1x4x64xf32, #tpu.memory_space<vmem>>, vector<1x4x64xf32>,
    return
  }
  func.func @transform_0(%arg0: i32, %arg1: i32) -> (i32, i32, i32) {
    %c0_i32 = arith.constant 0 : i32
    %c0_i32_0 = arith.constant 0 : i32
    return %arg0, %c0_i32, %arg1 : i32, i32, i32
  }
  func.func @transform_1(%arg0: i32, %arg1: i32) -> (i32, i32) {
    %c0_i32 = arith.constant 0 : i32
    %c0_i32_0 = arith.constant 0 : i32
    %c0_i32_1 = arith.constant 0 : i32
    return %c0_i32, %c0_i32_0 : i32, i32
  }
  func.func @transform_2(%arg0: i32, %arg1: i32) -> (i32, i32) {
    %c0_i32 = arith.constant 0 : i32
    %c0_i32_0 = arith.constant 0 : i32
    %c0_i32_1 = arith.constant 0 : i32
    return %c0_i32, %c0_i32_0 : i32, i32
  }
  func.func @transform_3(%arg0: i32, %arg1: i32) -> (i32, i32, i32) {
    %c0_i32 = arith.constant 0 : i32
    %c0_i32_0 = arith.constant 0 : i32
    return %arg0, %c0_i32, %arg1 : i32, i32, i32
  }
}

module attributes {stable_mosaic.version = 11 : i64} {
  func.func @_conv_stats_kernel(%arg0: i32, %arg1: i32, %arg2: memref<1x4x16x9xf32, #tpu.memory_space<vmem>>, %arg3: memref<1x4x16x9xf32, #tpu.memory_space<vmem>>, %arg4: memref<1x1x4x9xf32, #tpu.memory_space<vmem>>, %arg5: memref<1x1x4x9xf32, #tpu.memory_space<vmem>>, %arg6: memref<3x3x4x4xf32, #tpu.memory_space<vmem>>, %arg7: memref<4x1xf32, #tpu.memory_space<vmem>>, %arg8: memref<1x4x64xf32, #tpu.memory_space<vmem>>, %arg9: memref<1x1x4x2xf32, #tpu.memory_space<vmem>>) attributes {dimension_semantics = [#tpu.dimension_semantics<parallel>, #tpu.dimension_semantics<parallel>], iteration_bounds = array<i64: 2, 1>, scalar_prefetch = 0 : i64, scratch_operands = 0 : i64, tpu.core_type = #tpu.core_type<tc>, window_params = [{transform_indices = @transform_0, window_bounds = array<i64: 1, 4, 16, 9>}, {transform_indices = @transform_1, window_bounds = array<i64: 1, 4, 16, 9>}, {transform_indices = @transform_2, window_bounds = array<i64: 1, 1, 4, 9>}, {transform_indices = @transform_3, window_bounds = array<i64: 1, 1, 4, 9>}, {pipeline_mode = #tpu.pipeline_mode<synchronous>, transform_indices = @transform_4, window_bounds = array<i64: 3, 3, 4, 4>}, {pipeline_mode = #tpu.pipeline_mode<synchronous>, transform_indices = @transform_5, window_bounds = array<i64: 4, 1>}, {transform_indices = @transform_6, window_bounds = array<i64: 1, 4, 64>}, {transform_indices = @transform_7, window_bounds = array<i64: 1, 1, 4, 2>}]} {
    %c0 = arith.constant 0 : index
    %c0_0 = arith.constant 0 : index
    %0 = vector.load %arg7[%c0, %c0_0] : memref<4x1xf32, #tpu.memory_space<vmem>>, vector<4x1xf32>
    %cst = arith.constant 0.000000e+00 : f32
    %1 = vector.broadcast %cst : f32 to vector<4x1xf32>
    %cst_1 = arith.constant 0.000000e+00 : f32
    %2 = vector.broadcast %cst_1 : f32 to vector<4x1xf32>
    %cst_2 = arith.constant 0.000000e+00 : f32
    %3 = vector.broadcast %cst_2 : f32 to vector<4x8xf32>
    %c0_3 = arith.constant 0 : index
    %c0_4 = arith.constant 0 : index
    %c0_5 = arith.constant 0 : index
    %c0_6 = arith.constant 0 : index
    %4 = vector.load %arg2[%c0_3, %c0_4, %c0_5, %c0_6] : memref<1x4x16x9xf32, #tpu.memory_space<vmem>>, vector<1x4x1x8xf32>
    %5 = vector.shape_cast %4 : vector<1x4x1x8xf32> to vector<4x8xf32>
    %c0_7 = arith.constant 0 : index
    %c0_8 = arith.constant 0 : index
    %c0_9 = arith.constant 0 : index
    %c1 = arith.constant 1 : index
    %6 = vector.load %arg2[%c0_7, %c0_8, %c0_9, %c1] : memref<1x4x16x9xf32, #tpu.memory_space<vmem>>, vector<1x4x1x8xf32>
    %7 = vector.shape_cast %6 : vector<1x4x1x8xf32> to vector<4x8xf32>
    %c0_10 = arith.constant 0 : index
    %c0_11 = arith.constant 0 : index
    %c0_12 = arith.constant 0 : index
    %c0_13 = arith.constant 0 : index
    %8 = vector.load %arg3[%c0_10, %c0_11, %c0_12, %c0_13] : memref<1x4x16x9xf32, #tpu.memory_space<vmem>>, vector<1x4x1x8xf32>
    %9 = vector.shape_cast %8 : vector<1x4x1x8xf32> to vector<4x8xf32>
    %c0_14 = arith.constant 0 : index
    %c0_15 = arith.constant 0 : index
    %c0_16 = arith.constant 0 : index
    %c0_17 = arith.constant 0 : index
    %10 = vector.load %arg6[%c0_14, %c0_15, %c0_16, %c0_17] : memref<3x3x4x4xf32, #tpu.memory_space<vmem>>, vector<1x1x4x4xf32>
    %11 = vector.shape_cast %10 : vector<1x1x4x4xf32> to vector<4x4xf32>
    %cst_18 = arith.constant dense<0.000000e+00> : vector<4x8xf32>
    %12 = tpu.matmul %11, %5, %cst_18 {dimension_numbers = #tpu.dot_dimension_numbers<[1], [0], [0], [1], [0, 0, 1, 1], [], []>} : vector<4x4xf32>, vector<4x8xf32>, vector<4x8xf32> -> vector<4x8xf32>
    %13 = arith.addf %3, %12 : vector<4x8xf32>
    %c0_19 = arith.constant 0 : index
    %c1_20 = arith.constant 1 : index
    %c0_21 = arith.constant 0 : index
    %c0_22 = arith.constant 0 : index
    %14 = vector.load %arg6[%c0_19, %c1_20, %c0_21, %c0_22] : memref<3x3x4x4xf32, #tpu.memory_space<vmem>>, vector<1x1x4x4xf32>
    %15 = vector.shape_cast %14 : vector<1x1x4x4xf32> to vector<4x4xf32>
    %cst_23 = arith.constant dense<0.000000e+00> : vector<4x8xf32>
    %16 = tpu.matmul %15, %9, %cst_23 {dimension_numbers = #tpu.dot_dimension_numbers<[1], [0], [0], [1], [0, 0, 1, 1], [], []>} : vector<4x4xf32>, vector<4x8xf32>, vector<4x8xf32> -> vector<4x8xf32>
    %17 = arith.addf %13, %16 : vector<4x8xf32>
    %c0_24 = arith.constant 0 : index
    %c2 = arith.constant 2 : index
    %c0_25 = arith.constant 0 : index
    %c0_26 = arith.constant 0 : index
    %18 = vector.load %arg6[%c0_24, %c2, %c0_25, %c0_26] : memref<3x3x4x4xf32, #tpu.memory_space<vmem>>, vector<1x1x4x4xf32>
    %19 = vector.shape_cast %18 : vector<1x1x4x4xf32> to vector<4x4xf32>
    %cst_27 = arith.constant dense<0.000000e+00> : vector<4x8xf32>
    %20 = tpu.matmul %19, %7, %cst_27 {dimension_numbers = #tpu.dot_dimension_numbers<[1], [0], [0], [1], [0, 0, 1, 1], [], []>} : vector<4x4xf32>, vector<4x8xf32>, vector<4x8xf32> -> vector<4x8xf32>
    %21 = arith.addf %17, %20 : vector<4x8xf32>
    %c0_28 = arith.constant 0 : index
    %c0_29 = arith.constant 0 : index
    %c1_30 = arith.constant 1 : index
    %c0_31 = arith.constant 0 : index
    %22 = vector.load %arg2[%c0_28, %c0_29, %c1_30, %c0_31] : memref<1x4x16x9xf32, #tpu.memory_space<vmem>>, vector<1x4x1x8xf32>
    %23 = vector.shape_cast %22 : vector<1x4x1x8xf32> to vector<4x8xf32>
    %c0_32 = arith.constant 0 : index
    %c0_33 = arith.constant 0 : index
    %c1_34 = arith.constant 1 : index
    %c1_35 = arith.constant 1 : index
    %24 = vector.load %arg2[%c0_32, %c0_33, %c1_34, %c1_35] : memref<1x4x16x9xf32, #tpu.memory_space<vmem>>, vector<1x4x1x8xf32>
    %25 = vector.shape_cast %24 : vector<1x4x1x8xf32> to vector<4x8xf32>
    %c0_36 = arith.constant 0 : index
    %c0_37 = arith.constant 0 : index
    %c1_38 = arith.constant 1 : index
    %c0_39 = arith.constant 0 : index
    %26 = vector.load %arg3[%c0_36, %c0_37, %c1_38, %c0_39] : memref<1x4x16x9xf32, #tpu.memory_space<vmem>>, vector<1x4x1x8xf32>
    %27 = vector.shape_cast %26 : vector<1x4x1x8xf32> to vector<4x8xf32>
    %c1_40 = arith.constant 1 : index
    %c0_41 = arith.constant 0 : index
    %c0_42 = arith.constant 0 : index
    %c0_43 = arith.constant 0 : index
    %28 = vector.load %arg6[%c1_40, %c0_41, %c0_42, %c0_43] : memref<3x3x4x4xf32, #tpu.memory_space<vmem>>, vector<1x1x4x4xf32>
    %29 = vector.shape_cast %28 : vector<1x1x4x4xf32> to vector<4x4xf32>
    %cst_44 = arith.constant dense<0.000000e+00> : vector<4x8xf32>
    %30 = tpu.matmul %29, %23, %cst_44 {dimension_numbers = #tpu.dot_dimension_numbers<[1], [0], [0], [1], [0, 0, 1, 1], [], []>} : vector<4x4xf32>, vector<4x8xf32>, vector<4x8xf32> -> vector<4x8xf32>
    %31 = arith.addf %21, %30 : vector<4x8xf32>
    %c1_45 = arith.constant 1 : index
    %c1_46 = arith.constant 1 : index
    %c0_47 = arith.constant 0 : index
    %c0_48 = arith.constant 0 : index
    %32 = vector.load %arg6[%c1_45, %c1_46, %c0_47, %c0_48] : memref<3x3x4x4xf32, #tpu.memory_space<vmem>>, vector<1x1x4x4xf32>
    %33 = vector.shape_cast %32 : vector<1x1x4x4xf32> to vector<4x4xf32>
    %cst_49 = arith.constant dense<0.000000e+00> : vector<4x8xf32>
    %34 = tpu.matmul %33, %27, %cst_49 {dimension_numbers = #tpu.dot_dimension_numbers<[1], [0], [0], [1], [0, 0, 1, 1], [], []>} : vector<4x4xf32>, vector<4x8xf32>, vector<4x8xf32> -> vector<4x8xf32>
    %35 = arith.addf %31, %34 : vector<4x8xf32>
    %c1_50 = arith.constant 1 : index
    %c2_51 = arith.constant 2 : index
    %c0_52 = arith.constant 0 : index
    %c0_53 = arith.constant 0 : index
    %36 = vector.load %arg6[%c1_50, %c2_51, %c0_52, %c0_53] : memref<3x3x4x4xf32, #tpu.memory_space<vmem>>, vector<1x1x4x4xf32>
    %37 = vector.shape_cast %36 : vector<1x1x4x4xf32> to vector<4x4xf32>
    %cst_54 = arith.constant dense<0.000000e+00> : vector<4x8xf32>
    %38 = tpu.matmul %37, %25, %cst_54 {dimension_numbers = #tpu.dot_dimension_numbers<[1], [0], [0], [1], [0, 0, 1, 1], [], []>} : vector<4x4xf32>, vector<4x8xf32>, vector<4x8xf32> -> vector<4x8xf32>
    %39 = arith.addf %35, %38 : vector<4x8xf32>
    %c0_55 = arith.constant 0 : index
    %c0_56 = arith.constant 0 : index
    %c2_57 = arith.constant 2 : index
    %c0_58 = arith.constant 0 : index
    %40 = vector.load %arg2[%c0_55, %c0_56, %c2_57, %c0_58] : memref<1x4x16x9xf32, #tpu.memory_space<vmem>>, vector<1x4x1x8xf32>
    %41 = vector.shape_cast %40 : vector<1x4x1x8xf32> to vector<4x8xf32>
    %c0_59 = arith.constant 0 : index
    %c0_60 = arith.constant 0 : index
    %c2_61 = arith.constant 2 : index
    %c1_62 = arith.constant 1 : index
    %42 = vector.load %arg2[%c0_59, %c0_60, %c2_61, %c1_62] : memref<1x4x16x9xf32, #tpu.memory_space<vmem>>, vector<1x4x1x8xf32>
    %43 = vector.shape_cast %42 : vector<1x4x1x8xf32> to vector<4x8xf32>
    %c0_63 = arith.constant 0 : index
    %c0_64 = arith.constant 0 : index
    %c2_65 = arith.constant 2 : index
    %c0_66 = arith.constant 0 : index
    %44 = vector.load %arg3[%c0_63, %c0_64, %c2_65, %c0_66] : memref<1x4x16x9xf32, #tpu.memory_space<vmem>>, vector<1x4x1x8xf32>
    %45 = vector.shape_cast %44 : vector<1x4x1x8xf32> to vector<4x8xf32>
    %c2_67 = arith.constant 2 : index
    %c0_68 = arith.constant 0 : index
    %c0_69 = arith.constant 0 : index
    %c0_70 = arith.constant 0 : index
    %46 = vector.load %arg6[%c2_67, %c0_68, %c0_69, %c0_70] : memref<3x3x4x4xf32, #tpu.memory_space<vmem>>, vector<1x1x4x4xf32>
    %47 = vector.shape_cast %46 : vector<1x1x4x4xf32> to vector<4x4xf32>
    %cst_71 = arith.constant dense<0.000000e+00> : vector<4x8xf32>
    %48 = tpu.matmul %47, %41, %cst_71 {dimension_numbers = #tpu.dot_dimension_numbers<[1], [0], [0], [1], [0, 0, 1, 1], [], []>} : vector<4x4xf32>, vector<4x8xf32>, vector<4x8xf32> -> vector<4x8xf32>
    %49 = arith.addf %39, %48 : vector<4x8xf32>
    %c2_72 = arith.constant 2 : index
    %c1_73 = arith.constant 1 : index
    %c0_74 = arith.constant 0 : index
    %c0_75 = arith.constant 0 : index
    %50 = vector.load %arg6[%c2_72, %c1_73, %c0_74, %c0_75] : memref<3x3x4x4xf32, #tpu.memory_space<vmem>>, vector<1x1x4x4xf32>
    %51 = vector.shape_cast %50 : vector<1x1x4x4xf32> to vector<4x4xf32>
    %cst_76 = arith.constant dense<0.000000e+00> : vector<4x8xf32>
    %52 = tpu.matmul %51, %45, %cst_76 {dimension_numbers = #tpu.dot_dimension_numbers<[1], [0], [0], [1], [0, 0, 1, 1], [], []>} : vector<4x4xf32>, vector<4x8xf32>, vector<4x8xf32> -> vector<4x8xf32>
    %53 = arith.addf %49, %52 : vector<4x8xf32>
    %c2_77 = arith.constant 2 : index
    %c2_78 = arith.constant 2 : index
    %c0_79 = arith.constant 0 : index
    %c0_80 = arith.constant 0 : index
    %54 = vector.load %arg6[%c2_77, %c2_78, %c0_79, %c0_80] : memref<3x3x4x4xf32, #tpu.memory_space<vmem>>, vector<1x1x4x4xf32>
    %55 = vector.shape_cast %54 : vector<1x1x4x4xf32> to vector<4x4xf32>
    %cst_81 = arith.constant dense<0.000000e+00> : vector<4x8xf32>
    %56 = tpu.matmul %55, %43, %cst_81 {dimension_numbers = #tpu.dot_dimension_numbers<[1], [0], [0], [1], [0, 0, 1, 1], [], []>} : vector<4x4xf32>, vector<4x8xf32>, vector<4x8xf32> -> vector<4x8xf32>
    %57 = arith.addf %53, %56 : vector<4x8xf32>
    %58 = vector.broadcast %0 : vector<4x1xf32> to vector<4x8xf32>
    %59 = arith.addf %57, %58 : vector<4x8xf32>
    %c0_82 = arith.constant 0 : index
    %c0_83 = arith.constant 0 : index
    %c0_84 = arith.constant 0 : index
    %60 = vector.load %arg8[%c0_82, %c0_83, %c0_84] : memref<1x4x64xf32, #tpu.memory_space<vmem>>, vector<1x4x8xf32>
    %61 = vector.shape_cast %60 : vector<1x4x8xf32> to vector<4x8xf32>
    %62 = vector.shape_cast %59 : vector<4x8xf32> to vector<1x4x8xf32>
    tpu.vector_store %arg8[%c0_82, %c0_83, %c0_84], %62 {strides = array<i32>} : memref<1x4x64xf32, #tpu.memory_space<vmem>>, vector<1x4x8xf32>,
    %cst_85 = arith.constant dense<0.000000e+00> : vector<4xf32>
    %63 = vector.multi_reduction <add>, %59, %cst_85 [1] : vector<4x8xf32> to vector<4xf32>
    %64 = vector.shape_cast %63 : vector<4xf32> to vector<4x1xf32>
    %65 = arith.addf %1, %64 : vector<4x1xf32>
    %66 = arith.mulf %59, %59 : vector<4x8xf32>
    %cst_86 = arith.constant dense<0.000000e+00> : vector<4xf32>
    %67 = vector.multi_reduction <add>, %66, %cst_86 [1] : vector<4x8xf32> to vector<4xf32>
    %68 = vector.shape_cast %67 : vector<4xf32> to vector<4x1xf32>
    %69 = arith.addf %2, %68 : vector<4x1xf32>
    %cst_87 = arith.constant 0.000000e+00 : f32
    %70 = vector.broadcast %cst_87 : f32 to vector<4x8xf32>
    %c0_88 = arith.constant 0 : index
    %c0_89 = arith.constant 0 : index
    %c2_90 = arith.constant 2 : index
    %c0_91 = arith.constant 0 : index
    %71 = vector.load %arg2[%c0_88, %c0_89, %c2_90, %c0_91] : memref<1x4x16x9xf32, #tpu.memory_space<vmem>>, vector<1x4x1x8xf32>
    %72 = vector.shape_cast %71 : vector<1x4x1x8xf32> to vector<4x8xf32>
    %c0_92 = arith.constant 0 : index
    %c0_93 = arith.constant 0 : index
    %c2_94 = arith.constant 2 : index
    %c1_95 = arith.constant 1 : index
    %73 = vector.load %arg2[%c0_92, %c0_93, %c2_94, %c1_95] : memref<1x4x16x9xf32, #tpu.memory_space<vmem>>, vector<1x4x1x8xf32>
    %74 = vector.shape_cast %73 : vector<1x4x1x8xf32> to vector<4x8xf32>
    %c0_96 = arith.constant 0 : index
    %c0_97 = arith.constant 0 : index
    %c2_98 = arith.constant 2 : index
    %c0_99 = arith.constant 0 : index
    %75 = vector.load %arg3[%c0_96, %c0_97, %c2_98, %c0_99] : memref<1x4x16x9xf32, #tpu.memory_space<vmem>>, vector<1x4x1x8xf32>
    %76 = vector.shape_cast %75 : vector<1x4x1x8xf32> to vector<4x8xf32>
    %c0_100 = arith.constant 0 : index
    %c0_101 = arith.constant 0 : index
    %c0_102 = arith.constant 0 : index
    %c0_103 = arith.constant 0 : index
    %77 = vector.load %arg6[%c0_100, %c0_101, %c0_102, %c0_103] : memref<3x3x4x4xf32, #tpu.memory_space<vmem>>, vector<1x1x4x4xf32>
    %78 = vector.shape_cast %77 : vector<1x1x4x4xf32> to vector<4x4xf32>
    %cst_104 = arith.constant dense<0.000000e+00> : vector<4x8xf32>
    %79 = tpu.matmul %78, %72, %cst_104 {dimension_numbers = #tpu.dot_dimension_numbers<[1], [0], [0], [1], [0, 0, 1, 1], [], []>} : vector<4x4xf32>, vector<4x8xf32>, vector<4x8xf32> -> vector<4x8xf32>
    %80 = arith.addf %70, %79 : vector<4x8xf32>
    %c0_105 = arith.constant 0 : index
    %c1_106 = arith.constant 1 : index
    %c0_107 = arith.constant 0 : index
    %c0_108 = arith.constant 0 : index
    %81 = vector.load %arg6[%c0_105, %c1_106, %c0_107, %c0_108] : memref<3x3x4x4xf32, #tpu.memory_space<vmem>>, vector<1x1x4x4xf32>
    %82 = vector.shape_cast %81 : vector<1x1x4x4xf32> to vector<4x4xf32>
    %cst_109 = arith.constant dense<0.000000e+00> : vector<4x8xf32>
    %83 = tpu.matmul %82, %76, %cst_109 {dimension_numbers = #tpu.dot_dimension_numbers<[1], [0], [0], [1], [0, 0, 1, 1], [], []>} : vector<4x4xf32>, vector<4x8xf32>, vector<4x8xf32> -> vector<4x8xf32>
    %84 = arith.addf %80, %83 : vector<4x8xf32>
    %c0_110 = arith.constant 0 : index
    %c2_111 = arith.constant 2 : index
    %c0_112 = arith.constant 0 : index
    %c0_113 = arith.constant 0 : index
    %85 = vector.load %arg6[%c0_110, %c2_111, %c0_112, %c0_113] : memref<3x3x4x4xf32, #tpu.memory_space<vmem>>, vector<1x1x4x4xf32>
    %86 = vector.shape_cast %85 : vector<1x1x4x4xf32> to vector<4x4xf32>
    %cst_114 = arith.constant dense<0.000000e+00> : vector<4x8xf32>
    %87 = tpu.matmul %86, %74, %cst_114 {dimension_numbers = #tpu.dot_dimension_numbers<[1], [0], [0], [1], [0, 0, 1, 1], [], []>} : vector<4x4xf32>, vector<4x8xf32>, vector<4x8xf32> -> vector<4x8xf32>
    %88 = arith.addf %84, %87 : vector<4x8xf32>
    %c0_115 = arith.constant 0 : index
    %c0_116 = arith.constant 0 : index
    %c3 = arith.constant 3 : index
    %c0_117 = arith.constant 0 : index
    %89 = vector.load %arg2[%c0_115, %c0_116, %c3, %c0_117] : memref<1x4x16x9xf32, #tpu.memory_space<vmem>>, vector<1x4x1x8xf32>
    %90 = vector.shape_cast %89 : vector<1x4x1x8xf32> to vector<4x8xf32>
    %c0_118 = arith.constant 0 : index
    %c0_119 = arith.constant 0 : index
    %c3_120 = arith.constant 3 : index
    %c1_121 = arith.constant 1 : index
    %91 = vector.load %arg2[%c0_118, %c0_119, %c3_120, %c1_121] : memref<1x4x16x9xf32, #tpu.memory_space<vmem>>, vector<1x4x1x8xf32>
    %92 = vector.shape_cast %91 : vector<1x4x1x8xf32> to vector<4x8xf32>
    %c0_122 = arith.constant 0 : index
    %c0_123 = arith.constant 0 : index
    %c3_124 = arith.constant 3 : index
    %c0_125 = arith.constant 0 : index
    %93 = vector.load %arg3[%c0_122, %c0_123, %c3_124, %c0_125] : memref<1x4x16x9xf32, #tpu.memory_space<vmem>>, vector<1x4x1x8xf32>
    %94 = vector.shape_cast %93 : vector<1x4x1x8xf32> to vector<4x8xf32>
    %c1_126 = arith.constant 1 : index
    %c0_127 = arith.constant 0 : index
    %c0_128 = arith.constant 0 : index
    %c0_129 = arith.constant 0 : index
    %95 = vector.load %arg6[%c1_126, %c0_127, %c0_128, %c0_129] : memref<3x3x4x4xf32, #tpu.memory_space<vmem>>, vector<1x1x4x4xf32>
    %96 = vector.shape_cast %95 : vector<1x1x4x4xf32> to vector<4x4xf32>
    %cst_130 = arith.constant dense<0.000000e+00> : vector<4x8xf32>
    %97 = tpu.matmul %96, %90, %cst_130 {dimension_numbers = #tpu.dot_dimension_numbers<[1], [0], [0], [1], [0, 0, 1, 1], [], []>} : vector<4x4xf32>, vector<4x8xf32>, vector<4x8xf32> -> vector<4x8xf32>
    %98 = arith.addf %88, %97 : vector<4x8xf32>
    %c1_131 = arith.constant 1 : index
    %c1_132 = arith.constant 1 : index
    %c0_133 = arith.constant 0 : index
    %c0_134 = arith.constant 0 : index
    %99 = vector.load %arg6[%c1_131, %c1_132, %c0_133, %c0_134] : memref<3x3x4x4xf32, #tpu.memory_space<vmem>>, vector<1x1x4x4xf32>
    %100 = vector.shape_cast %99 : vector<1x1x4x4xf32> to vector<4x4xf32>
    %cst_135 = arith.constant dense<0.000000e+00> : vector<4x8xf32>
    %101 = tpu.matmul %100, %94, %cst_135 {dimension_numbers = #tpu.dot_dimension_numbers<[1], [0], [0], [1], [0, 0, 1, 1], [], []>} : vector<4x4xf32>, vector<4x8xf32>, vector<4x8xf32> -> vector<4x8xf32>
    %102 = arith.addf %98, %101 : vector<4x8xf32>
    %c1_136 = arith.constant 1 : index
    %c2_137 = arith.constant 2 : index
    %c0_138 = arith.constant 0 : index
    %c0_139 = arith.constant 0 : index
    %103 = vector.load %arg6[%c1_136, %c2_137, %c0_138, %c0_139] : memref<3x3x4x4xf32, #tpu.memory_space<vmem>>, vector<1x1x4x4xf32>
    %104 = vector.shape_cast %103 : vector<1x1x4x4xf32> to vector<4x4xf32>
    %cst_140 = arith.constant dense<0.000000e+00> : vector<4x8xf32>
    %105 = tpu.matmul %104, %92, %cst_140 {dimension_numbers = #tpu.dot_dimension_numbers<[1], [0], [0], [1], [0, 0, 1, 1], [], []>} : vector<4x4xf32>, vector<4x8xf32>, vector<4x8xf32> -> vector<4x8xf32>
    %106 = arith.addf %102, %105 : vector<4x8xf32>
    %c0_141 = arith.constant 0 : index
    %c0_142 = arith.constant 0 : index
    %c4 = arith.constant 4 : index
    %c0_143 = arith.constant 0 : index
    %107 = vector.load %arg2[%c0_141, %c0_142, %c4, %c0_143] : memref<1x4x16x9xf32, #tpu.memory_space<vmem>>, vector<1x4x1x8xf32>
    %108 = vector.shape_cast %107 : vector<1x4x1x8xf32> to vector<4x8xf32>
    %c0_144 = arith.constant 0 : index
    %c0_145 = arith.constant 0 : index
    %c4_146 = arith.constant 4 : index
    %c1_147 = arith.constant 1 : index
    %109 = vector.load %arg2[%c0_144, %c0_145, %c4_146, %c1_147] : memref<1x4x16x9xf32, #tpu.memory_space<vmem>>, vector<1x4x1x8xf32>
    %110 = vector.shape_cast %109 : vector<1x4x1x8xf32> to vector<4x8xf32>
    %c0_148 = arith.constant 0 : index
    %c0_149 = arith.constant 0 : index
    %c4_150 = arith.constant 4 : index
    %c0_151 = arith.constant 0 : index
    %111 = vector.load %arg3[%c0_148, %c0_149, %c4_150, %c0_151] : memref<1x4x16x9xf32, #tpu.memory_space<vmem>>, vector<1x4x1x8xf32>
    %112 = vector.shape_cast %111 : vector<1x4x1x8xf32> to vector<4x8xf32>
    %c2_152 = arith.constant 2 : index
    %c0_153 = arith.constant 0 : index
    %c0_154 = arith.constant 0 : index
    %c0_155 = arith.constant 0 : index
    %113 = vector.load %arg6[%c2_152, %c0_153, %c0_154, %c0_155] : memref<3x3x4x4xf32, #tpu.memory_space<vmem>>, vector<1x1x4x4xf32>
    %114 = vector.shape_cast %113 : vector<1x1x4x4xf32> to vector<4x4xf32>
    %cst_156 = arith.constant dense<0.000000e+00> : vector<4x8xf32>
    %115 = tpu.matmul %114, %108, %cst_156 {dimension_numbers = #tpu.dot_dimension_numbers<[1], [0], [0], [1], [0, 0, 1, 1], [], []>} : vector<4x4xf32>, vector<4x8xf32>, vector<4x8xf32> -> vector<4x8xf32>
    %116 = arith.addf %106, %115 : vector<4x8xf32>
    %c2_157 = arith.constant 2 : index
    %c1_158 = arith.constant 1 : index
    %c0_159 = arith.constant 0 : index
    %c0_160 = arith.constant 0 : index
    %117 = vector.load %arg6[%c2_157, %c1_158, %c0_159, %c0_160] : memref<3x3x4x4xf32, #tpu.memory_space<vmem>>, vector<1x1x4x4xf32>
    %118 = vector.shape_cast %117 : vector<1x1x4x4xf32> to vector<4x4xf32>
    %cst_161 = arith.constant dense<0.000000e+00> : vector<4x8xf32>
    %119 = tpu.matmul %118, %112, %cst_161 {dimension_numbers = #tpu.dot_dimension_numbers<[1], [0], [0], [1], [0, 0, 1, 1], [], []>} : vector<4x4xf32>, vector<4x8xf32>, vector<4x8xf32> -> vector<4x8xf32>
    %120 = arith.addf %116, %119 : vector<4x8xf32>
    %c2_162 = arith.constant 2 : index
    %c2_163 = arith.constant 2 : index
    %c0_164 = arith.constant 0 : index
    %c0_165 = arith.constant 0 : index
    %121 = vector.load %arg6[%c2_162, %c2_163, %c0_164, %c0_165] : memref<3x3x4x4xf32, #tpu.memory_space<vmem>>, vector<1x1x4x4xf32>
    %122 = vector.shape_cast %121 : vector<1x1x4x4xf32> to vector<4x4xf32>
    %cst_166 = arith.constant dense<0.000000e+00> : vector<4x8xf32>
    %123 = tpu.matmul %122, %110, %cst_166 {dimension_numbers = #tpu.dot_dimension_numbers<[1], [0], [0], [1], [0, 0, 1, 1], [], []>} : vector<4x4xf32>, vector<4x8xf32>, vector<4x8xf32> -> vector<4x8xf32>
    %124 = arith.addf %120, %123 : vector<4x8xf32>
    %125 = vector.broadcast %0 : vector<4x1xf32> to vector<4x8xf32>
    %126 = arith.addf %124, %125 : vector<4x8xf32>
    %c0_167 = arith.constant 0 : index
    %c0_168 = arith.constant 0 : index
    %c8 = arith.constant 8 : index
    %127 = vector.load %arg8[%c0_167, %c0_168, %c8] : memref<1x4x64xf32, #tpu.memory_space<vmem>>, vector<1x4x8xf32>
    %128 = vector.shape_cast %127 : vector<1x4x8xf32> to vector<4x8xf32>
    %129 = vector.shape_cast %126 : vector<4x8xf32> to vector<1x4x8xf32>
    tpu.vector_store %arg8[%c0_167, %c0_168, %c8], %129 {strides = array<i32>} : memref<1x4x64xf32, #tpu.memory_space<vmem>>, vector<1x4x8xf32>,
    %cst_169 = arith.constant dense<0.000000e+00> : vector<4xf32>
    %130 = vector.multi_reduction <add>, %126, %cst_169 [1] : vector<4x8xf32> to vector<4xf32>
    %131 = vector.shape_cast %130 : vector<4xf32> to vector<4x1xf32>
    %132 = arith.addf %65, %131 : vector<4x1xf32>
    %133 = arith.mulf %126, %126 : vector<4x8xf32>
    %cst_170 = arith.constant dense<0.000000e+00> : vector<4xf32>
    %134 = vector.multi_reduction <add>, %133, %cst_170 [1] : vector<4x8xf32> to vector<4xf32>
    %135 = vector.shape_cast %134 : vector<4xf32> to vector<4x1xf32>
    %136 = arith.addf %69, %135 : vector<4x1xf32>
    %cst_171 = arith.constant 0.000000e+00 : f32
    %137 = vector.broadcast %cst_171 : f32 to vector<4x8xf32>
    %c0_172 = arith.constant 0 : index
    %c0_173 = arith.constant 0 : index
    %c4_174 = arith.constant 4 : index
    %c0_175 = arith.constant 0 : index
    %138 = vector.load %arg2[%c0_172, %c0_173, %c4_174, %c0_175] : memref<1x4x16x9xf32, #tpu.memory_space<vmem>>, vector<1x4x1x8xf32>
    %139 = vector.shape_cast %138 : vector<1x4x1x8xf32> to vector<4x8xf32>
    %c0_176 = arith.constant 0 : index
    %c0_177 = arith.constant 0 : index
    %c4_178 = arith.constant 4 : index
    %c1_179 = arith.constant 1 : index
    %140 = vector.load %arg2[%c0_176, %c0_177, %c4_178, %c1_179] : memref<1x4x16x9xf32, #tpu.memory_space<vmem>>, vector<1x4x1x8xf32>
    %141 = vector.shape_cast %140 : vector<1x4x1x8xf32> to vector<4x8xf32>
    %c0_180 = arith.constant 0 : index
    %c0_181 = arith.constant 0 : index
    %c4_182 = arith.constant 4 : index
    %c0_183 = arith.constant 0 : index
    %142 = vector.load %arg3[%c0_180, %c0_181, %c4_182, %c0_183] : memref<1x4x16x9xf32, #tpu.memory_space<vmem>>, vector<1x4x1x8xf32>
    %143 = vector.shape_cast %142 : vector<1x4x1x8xf32> to vector<4x8xf32>
    %c0_184 = arith.constant 0 : index
    %c0_185 = arith.constant 0 : index
    %c0_186 = arith.constant 0 : index
    %c0_187 = arith.constant 0 : index
    %144 = vector.load %arg6[%c0_184, %c0_185, %c0_186, %c0_187] : memref<3x3x4x4xf32, #tpu.memory_space<vmem>>, vector<1x1x4x4xf32>
    %145 = vector.shape_cast %144 : vector<1x1x4x4xf32> to vector<4x4xf32>
    %cst_188 = arith.constant dense<0.000000e+00> : vector<4x8xf32>
    %146 = tpu.matmul %145, %139, %cst_188 {dimension_numbers = #tpu.dot_dimension_numbers<[1], [0], [0], [1], [0, 0, 1, 1], [], []>} : vector<4x4xf32>, vector<4x8xf32>, vector<4x8xf32> -> vector<4x8xf32>
    %147 = arith.addf %137, %146 : vector<4x8xf32>
    %c0_189 = arith.constant 0 : index
    %c1_190 = arith.constant 1 : index
    %c0_191 = arith.constant 0 : index
    %c0_192 = arith.constant 0 : index
    %148 = vector.load %arg6[%c0_189, %c1_190, %c0_191, %c0_192] : memref<3x3x4x4xf32, #tpu.memory_space<vmem>>, vector<1x1x4x4xf32>
    %149 = vector.shape_cast %148 : vector<1x1x4x4xf32> to vector<4x4xf32>
    %cst_193 = arith.constant dense<0.000000e+00> : vector<4x8xf32>
    %150 = tpu.matmul %149, %143, %cst_193 {dimension_numbers = #tpu.dot_dimension_numbers<[1], [0], [0], [1], [0, 0, 1, 1], [], []>} : vector<4x4xf32>, vector<4x8xf32>, vector<4x8xf32> -> vector<4x8xf32>
    %151 = arith.addf %147, %150 : vector<4x8xf32>
    %c0_194 = arith.constant 0 : index
    %c2_195 = arith.constant 2 : index
    %c0_196 = arith.constant 0 : index
    %c0_197 = arith.constant 0 : index
    %152 = vector.load %arg6[%c0_194, %c2_195, %c0_196, %c0_197] : memref<3x3x4x4xf32, #tpu.memory_space<vmem>>, vector<1x1x4x4xf32>
    %153 = vector.shape_cast %152 : vector<1x1x4x4xf32> to vector<4x4xf32>
    %cst_198 = arith.constant dense<0.000000e+00> : vector<4x8xf32>
    %154 = tpu.matmul %153, %141, %cst_198 {dimension_numbers = #tpu.dot_dimension_numbers<[1], [0], [0], [1], [0, 0, 1, 1], [], []>} : vector<4x4xf32>, vector<4x8xf32>, vector<4x8xf32> -> vector<4x8xf32>
    %155 = arith.addf %151, %154 : vector<4x8xf32>
    %c0_199 = arith.constant 0 : index
    %c0_200 = arith.constant 0 : index
    %c5 = arith.constant 5 : index
    %c0_201 = arith.constant 0 : index
    %156 = vector.load %arg2[%c0_199, %c0_200, %c5, %c0_201] : memref<1x4x16x9xf32, #tpu.memory_space<vmem>>, vector<1x4x1x8xf32>
    %157 = vector.shape_cast %156 : vector<1x4x1x8xf32> to vector<4x8xf32>
    %c0_202 = arith.constant 0 : index
    %c0_203 = arith.constant 0 : index
    %c5_204 = arith.constant 5 : index
    %c1_205 = arith.constant 1 : index
    %158 = vector.load %arg2[%c0_202, %c0_203, %c5_204, %c1_205] : memref<1x4x16x9xf32, #tpu.memory_space<vmem>>, vector<1x4x1x8xf32>
    %159 = vector.shape_cast %158 : vector<1x4x1x8xf32> to vector<4x8xf32>
    %c0_206 = arith.constant 0 : index
    %c0_207 = arith.constant 0 : index
    %c5_208 = arith.constant 5 : index
    %c0_209 = arith.constant 0 : index
    %160 = vector.load %arg3[%c0_206, %c0_207, %c5_208, %c0_209] : memref<1x4x16x9xf32, #tpu.memory_space<vmem>>, vector<1x4x1x8xf32>
    %161 = vector.shape_cast %160 : vector<1x4x1x8xf32> to vector<4x8xf32>
    %c1_210 = arith.constant 1 : index
    %c0_211 = arith.constant 0 : index
    %c0_212 = arith.constant 0 : index
    %c0_213 = arith.constant 0 : index
    %162 = vector.load %arg6[%c1_210, %c0_211, %c0_212, %c0_213] : memref<3x3x4x4xf32, #tpu.memory_space<vmem>>, vector<1x1x4x4xf32>
    %163 = vector.shape_cast %162 : vector<1x1x4x4xf32> to vector<4x4xf32>
    %cst_214 = arith.constant dense<0.000000e+00> : vector<4x8xf32>
    %164 = tpu.matmul %163, %157, %cst_214 {dimension_numbers = #tpu.dot_dimension_numbers<[1], [0], [0], [1], [0, 0, 1, 1], [], []>} : vector<4x4xf32>, vector<4x8xf32>, vector<4x8xf32> -> vector<4x8xf32>
    %165 = arith.addf %155, %164 : vector<4x8xf32>
    %c1_215 = arith.constant 1 : index
    %c1_216 = arith.constant 1 : index
    %c0_217 = arith.constant 0 : index
    %c0_218 = arith.constant 0 : index
    %166 = vector.load %arg6[%c1_215, %c1_216, %c0_217, %c0_218] : memref<3x3x4x4xf32, #tpu.memory_space<vmem>>, vector<1x1x4x4xf32>
    %167 = vector.shape_cast %166 : vector<1x1x4x4xf32> to vector<4x4xf32>
    %cst_219 = arith.constant dense<0.000000e+00> : vector<4x8xf32>
    %168 = tpu.matmul %167, %161, %cst_219 {dimension_numbers = #tpu.dot_dimension_numbers<[1], [0], [0], [1], [0, 0, 1, 1], [], []>} : vector<4x4xf32>, vector<4x8xf32>, vector<4x8xf32> -> vector<4x8xf32>
    %169 = arith.addf %165, %168 : vector<4x8xf32>
    %c1_220 = arith.constant 1 : index
    %c2_221 = arith.constant 2 : index
    %c0_222 = arith.constant 0 : index
    %c0_223 = arith.constant 0 : index
    %170 = vector.load %arg6[%c1_220, %c2_221, %c0_222, %c0_223] : memref<3x3x4x4xf32, #tpu.memory_space<vmem>>, vector<1x1x4x4xf32>
    %171 = vector.shape_cast %170 : vector<1x1x4x4xf32> to vector<4x4xf32>
    %cst_224 = arith.constant dense<0.000000e+00> : vector<4x8xf32>
    %172 = tpu.matmul %171, %159, %cst_224 {dimension_numbers = #tpu.dot_dimension_numbers<[1], [0], [0], [1], [0, 0, 1, 1], [], []>} : vector<4x4xf32>, vector<4x8xf32>, vector<4x8xf32> -> vector<4x8xf32>
    %173 = arith.addf %169, %172 : vector<4x8xf32>
    %c0_225 = arith.constant 0 : index
    %c0_226 = arith.constant 0 : index
    %c6 = arith.constant 6 : index
    %c0_227 = arith.constant 0 : index
    %174 = vector.load %arg2[%c0_225, %c0_226, %c6, %c0_227] : memref<1x4x16x9xf32, #tpu.memory_space<vmem>>, vector<1x4x1x8xf32>
    %175 = vector.shape_cast %174 : vector<1x4x1x8xf32> to vector<4x8xf32>
    %c0_228 = arith.constant 0 : index
    %c0_229 = arith.constant 0 : index
    %c6_230 = arith.constant 6 : index
    %c1_231 = arith.constant 1 : index
    %176 = vector.load %arg2[%c0_228, %c0_229, %c6_230, %c1_231] : memref<1x4x16x9xf32, #tpu.memory_space<vmem>>, vector<1x4x1x8xf32>
    %177 = vector.shape_cast %176 : vector<1x4x1x8xf32> to vector<4x8xf32>
    %c0_232 = arith.constant 0 : index
    %c0_233 = arith.constant 0 : index
    %c6_234 = arith.constant 6 : index
    %c0_235 = arith.constant 0 : index
    %178 = vector.load %arg3[%c0_232, %c0_233, %c6_234, %c0_235] : memref<1x4x16x9xf32, #tpu.memory_space<vmem>>, vector<1x4x1x8xf32>
    %179 = vector.shape_cast %178 : vector<1x4x1x8xf32> to vector<4x8xf32>
    %c2_236 = arith.constant 2 : index
    %c0_237 = arith.constant 0 : index
    %c0_238 = arith.constant 0 : index
    %c0_239 = arith.constant 0 : index
    %180 = vector.load %arg6[%c2_236, %c0_237, %c0_238, %c0_239] : memref<3x3x4x4xf32, #tpu.memory_space<vmem>>, vector<1x1x4x4xf32>
    %181 = vector.shape_cast %180 : vector<1x1x4x4xf32> to vector<4x4xf32>
    %cst_240 = arith.constant dense<0.000000e+00> : vector<4x8xf32>
    %182 = tpu.matmul %181, %175, %cst_240 {dimension_numbers = #tpu.dot_dimension_numbers<[1], [0], [0], [1], [0, 0, 1, 1], [], []>} : vector<4x4xf32>, vector<4x8xf32>, vector<4x8xf32> -> vector<4x8xf32>
    %183 = arith.addf %173, %182 : vector<4x8xf32>
    %c2_241 = arith.constant 2 : index
    %c1_242 = arith.constant 1 : index
    %c0_243 = arith.constant 0 : index
    %c0_244 = arith.constant 0 : index
    %184 = vector.load %arg6[%c2_241, %c1_242, %c0_243, %c0_244] : memref<3x3x4x4xf32, #tpu.memory_space<vmem>>, vector<1x1x4x4xf32>
    %185 = vector.shape_cast %184 : vector<1x1x4x4xf32> to vector<4x4xf32>
    %cst_245 = arith.constant dense<0.000000e+00> : vector<4x8xf32>
    %186 = tpu.matmul %185, %179, %cst_245 {dimension_numbers = #tpu.dot_dimension_numbers<[1], [0], [0], [1], [0, 0, 1, 1], [], []>} : vector<4x4xf32>, vector<4x8xf32>, vector<4x8xf32> -> vector<4x8xf32>
    %187 = arith.addf %183, %186 : vector<4x8xf32>
    %c2_246 = arith.constant 2 : index
    %c2_247 = arith.constant 2 : index
    %c0_248 = arith.constant 0 : index
    %c0_249 = arith.constant 0 : index
    %188 = vector.load %arg6[%c2_246, %c2_247, %c0_248, %c0_249] : memref<3x3x4x4xf32, #tpu.memory_space<vmem>>, vector<1x1x4x4xf32>
    %189 = vector.shape_cast %188 : vector<1x1x4x4xf32> to vector<4x4xf32>
    %cst_250 = arith.constant dense<0.000000e+00> : vector<4x8xf32>
    %190 = tpu.matmul %189, %177, %cst_250 {dimension_numbers = #tpu.dot_dimension_numbers<[1], [0], [0], [1], [0, 0, 1, 1], [], []>} : vector<4x4xf32>, vector<4x8xf32>, vector<4x8xf32> -> vector<4x8xf32>
    %191 = arith.addf %187, %190 : vector<4x8xf32>
    %192 = vector.broadcast %0 : vector<4x1xf32> to vector<4x8xf32>
    %193 = arith.addf %191, %192 : vector<4x8xf32>
    %c0_251 = arith.constant 0 : index
    %c0_252 = arith.constant 0 : index
    %c16 = arith.constant 16 : index
    %194 = vector.load %arg8[%c0_251, %c0_252, %c16] : memref<1x4x64xf32, #tpu.memory_space<vmem>>, vector<1x4x8xf32>
    %195 = vector.shape_cast %194 : vector<1x4x8xf32> to vector<4x8xf32>
    %196 = vector.shape_cast %193 : vector<4x8xf32> to vector<1x4x8xf32>
    tpu.vector_store %arg8[%c0_251, %c0_252, %c16], %196 {strides = array<i32>} : memref<1x4x64xf32, #tpu.memory_space<vmem>>, vector<1x4x8xf32>,
    %cst_253 = arith.constant dense<0.000000e+00> : vector<4xf32>
    %197 = vector.multi_reduction <add>, %193, %cst_253 [1] : vector<4x8xf32> to vector<4xf32>
    %198 = vector.shape_cast %197 : vector<4xf32> to vector<4x1xf32>
    %199 = arith.addf %132, %198 : vector<4x1xf32>
    %200 = arith.mulf %193, %193 : vector<4x8xf32>
    %cst_254 = arith.constant dense<0.000000e+00> : vector<4xf32>
    %201 = vector.multi_reduction <add>, %200, %cst_254 [1] : vector<4x8xf32> to vector<4xf32>
    %202 = vector.shape_cast %201 : vector<4xf32> to vector<4x1xf32>
    %203 = arith.addf %136, %202 : vector<4x1xf32>
    %cst_255 = arith.constant 0.000000e+00 : f32
    %204 = vector.broadcast %cst_255 : f32 to vector<4x8xf32>
    %c0_256 = arith.constant 0 : index
    %c0_257 = arith.constant 0 : index
    %c6_258 = arith.constant 6 : index
    %c0_259 = arith.constant 0 : index
    %205 = vector.load %arg2[%c0_256, %c0_257, %c6_258, %c0_259] : memref<1x4x16x9xf32, #tpu.memory_space<vmem>>, vector<1x4x1x8xf32>
    %206 = vector.shape_cast %205 : vector<1x4x1x8xf32> to vector<4x8xf32>
    %c0_260 = arith.constant 0 : index
    %c0_261 = arith.constant 0 : index
    %c6_262 = arith.constant 6 : index
    %c1_263 = arith.constant 1 : index
    %207 = vector.load %arg2[%c0_260, %c0_261, %c6_262, %c1_263] : memref<1x4x16x9xf32, #tpu.memory_space<vmem>>, vector<1x4x1x8xf32>
    %208 = vector.shape_cast %207 : vector<1x4x1x8xf32> to vector<4x8xf32>
    %c0_264 = arith.constant 0 : index
    %c0_265 = arith.constant 0 : index
    %c6_266 = arith.constant 6 : index
    %c0_267 = arith.constant 0 : index
    %209 = vector.load %arg3[%c0_264, %c0_265, %c6_266, %c0_267] : memref<1x4x16x9xf32, #tpu.memory_space<vmem>>, vector<1x4x1x8xf32>
    %210 = vector.shape_cast %209 : vector<1x4x1x8xf32> to vector<4x8xf32>
    %c0_268 = arith.constant 0 : index
    %c0_269 = arith.constant 0 : index
    %c0_270 = arith.constant 0 : index
    %c0_271 = arith.constant 0 : index
    %211 = vector.load %arg6[%c0_268, %c0_269, %c0_270, %c0_271] : memref<3x3x4x4xf32, #tpu.memory_space<vmem>>, vector<1x1x4x4xf32>
    %212 = vector.shape_cast %211 : vector<1x1x4x4xf32> to vector<4x4xf32>
    %cst_272 = arith.constant dense<0.000000e+00> : vector<4x8xf32>
    %213 = tpu.matmul %212, %206, %cst_272 {dimension_numbers = #tpu.dot_dimension_numbers<[1], [0], [0], [1], [0, 0, 1, 1], [], []>} : vector<4x4xf32>, vector<4x8xf32>, vector<4x8xf32> -> vector<4x8xf32>
    %214 = arith.addf %204, %213 : vector<4x8xf32>
    %c0_273 = arith.constant 0 : index
    %c1_274 = arith.constant 1 : index
    %c0_275 = arith.constant 0 : index
    %c0_276 = arith.constant 0 : index
    %215 = vector.load %arg6[%c0_273, %c1_274, %c0_275, %c0_276] : memref<3x3x4x4xf32, #tpu.memory_space<vmem>>, vector<1x1x4x4xf32>
    %216 = vector.shape_cast %215 : vector<1x1x4x4xf32> to vector<4x4xf32>
    %cst_277 = arith.constant dense<0.000000e+00> : vector<4x8xf32>
    %217 = tpu.matmul %216, %210, %cst_277 {dimension_numbers = #tpu.dot_dimension_numbers<[1], [0], [0], [1], [0, 0, 1, 1], [], []>} : vector<4x4xf32>, vector<4x8xf32>, vector<4x8xf32> -> vector<4x8xf32>
    %218 = arith.addf %214, %217 : vector<4x8xf32>
    %c0_278 = arith.constant 0 : index
    %c2_279 = arith.constant 2 : index
    %c0_280 = arith.constant 0 : index
    %c0_281 = arith.constant 0 : index
    %219 = vector.load %arg6[%c0_278, %c2_279, %c0_280, %c0_281] : memref<3x3x4x4xf32, #tpu.memory_space<vmem>>, vector<1x1x4x4xf32>
    %220 = vector.shape_cast %219 : vector<1x1x4x4xf32> to vector<4x4xf32>
    %cst_282 = arith.constant dense<0.000000e+00> : vector<4x8xf32>
    %221 = tpu.matmul %220, %208, %cst_282 {dimension_numbers = #tpu.dot_dimension_numbers<[1], [0], [0], [1], [0, 0, 1, 1], [], []>} : vector<4x4xf32>, vector<4x8xf32>, vector<4x8xf32> -> vector<4x8xf32>
    %222 = arith.addf %218, %221 : vector<4x8xf32>
    %c0_283 = arith.constant 0 : index
    %c0_284 = arith.constant 0 : index
    %c7 = arith.constant 7 : index
    %c0_285 = arith.constant 0 : index
    %223 = vector.load %arg2[%c0_283, %c0_284, %c7, %c0_285] : memref<1x4x16x9xf32, #tpu.memory_space<vmem>>, vector<1x4x1x8xf32>
    %224 = vector.shape_cast %223 : vector<1x4x1x8xf32> to vector<4x8xf32>
    %c0_286 = arith.constant 0 : index
    %c0_287 = arith.constant 0 : index
    %c7_288 = arith.constant 7 : index
    %c1_289 = arith.constant 1 : index
    %225 = vector.load %arg2[%c0_286, %c0_287, %c7_288, %c1_289] : memref<1x4x16x9xf32, #tpu.memory_space<vmem>>, vector<1x4x1x8xf32>
    %226 = vector.shape_cast %225 : vector<1x4x1x8xf32> to vector<4x8xf32>
    %c0_290 = arith.constant 0 : index
    %c0_291 = arith.constant 0 : index
    %c7_292 = arith.constant 7 : index
    %c0_293 = arith.constant 0 : index
    %227 = vector.load %arg3[%c0_290, %c0_291, %c7_292, %c0_293] : memref<1x4x16x9xf32, #tpu.memory_space<vmem>>, vector<1x4x1x8xf32>
    %228 = vector.shape_cast %227 : vector<1x4x1x8xf32> to vector<4x8xf32>
    %c1_294 = arith.constant 1 : index
    %c0_295 = arith.constant 0 : index
    %c0_296 = arith.constant 0 : index
    %c0_297 = arith.constant 0 : index
    %229 = vector.load %arg6[%c1_294, %c0_295, %c0_296, %c0_297] : memref<3x3x4x4xf32, #tpu.memory_space<vmem>>, vector<1x1x4x4xf32>
    %230 = vector.shape_cast %229 : vector<1x1x4x4xf32> to vector<4x4xf32>
    %cst_298 = arith.constant dense<0.000000e+00> : vector<4x8xf32>
    %231 = tpu.matmul %230, %224, %cst_298 {dimension_numbers = #tpu.dot_dimension_numbers<[1], [0], [0], [1], [0, 0, 1, 1], [], []>} : vector<4x4xf32>, vector<4x8xf32>, vector<4x8xf32> -> vector<4x8xf32>
    %232 = arith.addf %222, %231 : vector<4x8xf32>
    %c1_299 = arith.constant 1 : index
    %c1_300 = arith.constant 1 : index
    %c0_301 = arith.constant 0 : index
    %c0_302 = arith.constant 0 : index
    %233 = vector.load %arg6[%c1_299, %c1_300, %c0_301, %c0_302] : memref<3x3x4x4xf32, #tpu.memory_space<vmem>>, vector<1x1x4x4xf32>
    %234 = vector.shape_cast %233 : vector<1x1x4x4xf32> to vector<4x4xf32>
    %cst_303 = arith.constant dense<0.000000e+00> : vector<4x8xf32>
    %235 = tpu.matmul %234, %228, %cst_303 {dimension_numbers = #tpu.dot_dimension_numbers<[1], [0], [0], [1], [0, 0, 1, 1], [], []>} : vector<4x4xf32>, vector<4x8xf32>, vector<4x8xf32> -> vector<4x8xf32>
    %236 = arith.addf %232, %235 : vector<4x8xf32>
    %c1_304 = arith.constant 1 : index
    %c2_305 = arith.constant 2 : index
    %c0_306 = arith.constant 0 : index
    %c0_307 = arith.constant 0 : index
    %237 = vector.load %arg6[%c1_304, %c2_305, %c0_306, %c0_307] : memref<3x3x4x4xf32, #tpu.memory_space<vmem>>, vector<1x1x4x4xf32>
    %238 = vector.shape_cast %237 : vector<1x1x4x4xf32> to vector<4x4xf32>
    %cst_308 = arith.constant dense<0.000000e+00> : vector<4x8xf32>
    %239 = tpu.matmul %238, %226, %cst_308 {dimension_numbers = #tpu.dot_dimension_numbers<[1], [0], [0], [1], [0, 0, 1, 1], [], []>} : vector<4x4xf32>, vector<4x8xf32>, vector<4x8xf32> -> vector<4x8xf32>
    %240 = arith.addf %236, %239 : vector<4x8xf32>
    %c0_309 = arith.constant 0 : index
    %c0_310 = arith.constant 0 : index
    %c8_311 = arith.constant 8 : index
    %c0_312 = arith.constant 0 : index
    %241 = vector.load %arg2[%c0_309, %c0_310, %c8_311, %c0_312] : memref<1x4x16x9xf32, #tpu.memory_space<vmem>>, vector<1x4x1x8xf32>
    %242 = vector.shape_cast %241 : vector<1x4x1x8xf32> to vector<4x8xf32>
    %c0_313 = arith.constant 0 : index
    %c0_314 = arith.constant 0 : index
    %c8_315 = arith.constant 8 : index
    %c1_316 = arith.constant 1 : index
    %243 = vector.load %arg2[%c0_313, %c0_314, %c8_315, %c1_316] : memref<1x4x16x9xf32, #tpu.memory_space<vmem>>, vector<1x4x1x8xf32>
    %244 = vector.shape_cast %243 : vector<1x4x1x8xf32> to vector<4x8xf32>
    %c0_317 = arith.constant 0 : index
    %c0_318 = arith.constant 0 : index
    %c8_319 = arith.constant 8 : index
    %c0_320 = arith.constant 0 : index
    %245 = vector.load %arg3[%c0_317, %c0_318, %c8_319, %c0_320] : memref<1x4x16x9xf32, #tpu.memory_space<vmem>>, vector<1x4x1x8xf32>
    %246 = vector.shape_cast %245 : vector<1x4x1x8xf32> to vector<4x8xf32>
    %c2_321 = arith.constant 2 : index
    %c0_322 = arith.constant 0 : index
    %c0_323 = arith.constant 0 : index
    %c0_324 = arith.constant 0 : index
    %247 = vector.load %arg6[%c2_321, %c0_322, %c0_323, %c0_324] : memref<3x3x4x4xf32, #tpu.memory_space<vmem>>, vector<1x1x4x4xf32>
    %248 = vector.shape_cast %247 : vector<1x1x4x4xf32> to vector<4x4xf32>
    %cst_325 = arith.constant dense<0.000000e+00> : vector<4x8xf32>
    %249 = tpu.matmul %248, %242, %cst_325 {dimension_numbers = #tpu.dot_dimension_numbers<[1], [0], [0], [1], [0, 0, 1, 1], [], []>} : vector<4x4xf32>, vector<4x8xf32>, vector<4x8xf32> -> vector<4x8xf32>
    %250 = arith.addf %240, %249 : vector<4x8xf32>
    %c2_326 = arith.constant 2 : index
    %c1_327 = arith.constant 1 : index
    %c0_328 = arith.constant 0 : index
    %c0_329 = arith.constant 0 : index
    %251 = vector.load %arg6[%c2_326, %c1_327, %c0_328, %c0_329] : memref<3x3x4x4xf32, #tpu.memory_space<vmem>>, vector<1x1x4x4xf32>
    %252 = vector.shape_cast %251 : vector<1x1x4x4xf32> to vector<4x4xf32>
    %cst_330 = arith.constant dense<0.000000e+00> : vector<4x8xf32>
    %253 = tpu.matmul %252, %246, %cst_330 {dimension_numbers = #tpu.dot_dimension_numbers<[1], [0], [0], [1], [0, 0, 1, 1], [], []>} : vector<4x4xf32>, vector<4x8xf32>, vector<4x8xf32> -> vector<4x8xf32>
    %254 = arith.addf %250, %253 : vector<4x8xf32>
    %c2_331 = arith.constant 2 : index
    %c2_332 = arith.constant 2 : index
    %c0_333 = arith.constant 0 : index
    %c0_334 = arith.constant 0 : index
    %255 = vector.load %arg6[%c2_331, %c2_332, %c0_333, %c0_334] : memref<3x3x4x4xf32, #tpu.memory_space<vmem>>, vector<1x1x4x4xf32>
    %256 = vector.shape_cast %255 : vector<1x1x4x4xf32> to vector<4x4xf32>
    %cst_335 = arith.constant dense<0.000000e+00> : vector<4x8xf32>
    %257 = tpu.matmul %256, %244, %cst_335 {dimension_numbers = #tpu.dot_dimension_numbers<[1], [0], [0], [1], [0, 0, 1, 1], [], []>} : vector<4x4xf32>, vector<4x8xf32>, vector<4x8xf32> -> vector<4x8xf32>
    %258 = arith.addf %254, %257 : vector<4x8xf32>
    %259 = vector.broadcast %0 : vector<4x1xf32> to vector<4x8xf32>
    %260 = arith.addf %258, %259 : vector<4x8xf32>
    %c0_336 = arith.constant 0 : index
    %c0_337 = arith.constant 0 : index
    %c24 = arith.constant 24 : index
    %261 = vector.load %arg8[%c0_336, %c0_337, %c24] : memref<1x4x64xf32, #tpu.memory_space<vmem>>, vector<1x4x8xf32>
    %262 = vector.shape_cast %261 : vector<1x4x8xf32> to vector<4x8xf32>
    %263 = vector.shape_cast %260 : vector<4x8xf32> to vector<1x4x8xf32>
    tpu.vector_store %arg8[%c0_336, %c0_337, %c24], %263 {strides = array<i32>} : memref<1x4x64xf32, #tpu.memory_space<vmem>>, vector<1x4x8xf32>,
    %cst_338 = arith.constant dense<0.000000e+00> : vector<4xf32>
    %264 = vector.multi_reduction <add>, %260, %cst_338 [1] : vector<4x8xf32> to vector<4xf32>
    %265 = vector.shape_cast %264 : vector<4xf32> to vector<4x1xf32>
    %266 = arith.addf %199, %265 : vector<4x1xf32>
    %267 = arith.mulf %260, %260 : vector<4x8xf32>
    %cst_339 = arith.constant dense<0.000000e+00> : vector<4xf32>
    %268 = vector.multi_reduction <add>, %267, %cst_339 [1] : vector<4x8xf32> to vector<4xf32>
    %269 = vector.shape_cast %268 : vector<4xf32> to vector<4x1xf32>
    %270 = arith.addf %203, %269 : vector<4x1xf32>
    %cst_340 = arith.constant 0.000000e+00 : f32
    %271 = vector.broadcast %cst_340 : f32 to vector<4x8xf32>
    %c0_341 = arith.constant 0 : index
    %c0_342 = arith.constant 0 : index
    %c8_343 = arith.constant 8 : index
    %c0_344 = arith.constant 0 : index
    %272 = vector.load %arg2[%c0_341, %c0_342, %c8_343, %c0_344] : memref<1x4x16x9xf32, #tpu.memory_space<vmem>>, vector<1x4x1x8xf32>
    %273 = vector.shape_cast %272 : vector<1x4x1x8xf32> to vector<4x8xf32>
    %c0_345 = arith.constant 0 : index
    %c0_346 = arith.constant 0 : index
    %c8_347 = arith.constant 8 : index
    %c1_348 = arith.constant 1 : index
    %274 = vector.load %arg2[%c0_345, %c0_346, %c8_347, %c1_348] : memref<1x4x16x9xf32, #tpu.memory_space<vmem>>, vector<1x4x1x8xf32>
    %275 = vector.shape_cast %274 : vector<1x4x1x8xf32> to vector<4x8xf32>
    %c0_349 = arith.constant 0 : index
    %c0_350 = arith.constant 0 : index
    %c8_351 = arith.constant 8 : index
    %c0_352 = arith.constant 0 : index
    %276 = vector.load %arg3[%c0_349, %c0_350, %c8_351, %c0_352] : memref<1x4x16x9xf32, #tpu.memory_space<vmem>>, vector<1x4x1x8xf32>
    %277 = vector.shape_cast %276 : vector<1x4x1x8xf32> to vector<4x8xf32>
    %c0_353 = arith.constant 0 : index
    %c0_354 = arith.constant 0 : index
    %c0_355 = arith.constant 0 : index
    %c0_356 = arith.constant 0 : index
    %278 = vector.load %arg6[%c0_353, %c0_354, %c0_355, %c0_356] : memref<3x3x4x4xf32, #tpu.memory_space<vmem>>, vector<1x1x4x4xf32>
    %279 = vector.shape_cast %278 : vector<1x1x4x4xf32> to vector<4x4xf32>
    %cst_357 = arith.constant dense<0.000000e+00> : vector<4x8xf32>
    %280 = tpu.matmul %279, %273, %cst_357 {dimension_numbers = #tpu.dot_dimension_numbers<[1], [0], [0], [1], [0, 0, 1, 1], [], []>} : vector<4x4xf32>, vector<4x8xf32>, vector<4x8xf32> -> vector<4x8xf32>
    %281 = arith.addf %271, %280 : vector<4x8xf32>
    %c0_358 = arith.constant 0 : index
    %c1_359 = arith.constant 1 : index
    %c0_360 = arith.constant 0 : index
    %c0_361 = arith.constant 0 : index
    %282 = vector.load %arg6[%c0_358, %c1_359, %c0_360, %c0_361] : memref<3x3x4x4xf32, #tpu.memory_space<vmem>>, vector<1x1x4x4xf32>
    %283 = vector.shape_cast %282 : vector<1x1x4x4xf32> to vector<4x4xf32>
    %cst_362 = arith.constant dense<0.000000e+00> : vector<4x8xf32>
    %284 = tpu.matmul %283, %277, %cst_362 {dimension_numbers = #tpu.dot_dimension_numbers<[1], [0], [0], [1], [0, 0, 1, 1], [], []>} : vector<4x4xf32>, vector<4x8xf32>, vector<4x8xf32> -> vector<4x8xf32>
    %285 = arith.addf %281, %284 : vector<4x8xf32>
    %c0_363 = arith.constant 0 : index
    %c2_364 = arith.constant 2 : index
    %c0_365 = arith.constant 0 : index
    %c0_366 = arith.constant 0 : index
    %286 = vector.load %arg6[%c0_363, %c2_364, %c0_365, %c0_366] : memref<3x3x4x4xf32, #tpu.memory_space<vmem>>, vector<1x1x4x4xf32>
    %287 = vector.shape_cast %286 : vector<1x1x4x4xf32> to vector<4x4xf32>
    %cst_367 = arith.constant dense<0.000000e+00> : vector<4x8xf32>
    %288 = tpu.matmul %287, %275, %cst_367 {dimension_numbers = #tpu.dot_dimension_numbers<[1], [0], [0], [1], [0, 0, 1, 1], [], []>} : vector<4x4xf32>, vector<4x8xf32>, vector<4x8xf32> -> vector<4x8xf32>
    %289 = arith.addf %285, %288 : vector<4x8xf32>
    %c0_368 = arith.constant 0 : index
    %c0_369 = arith.constant 0 : index
    %c9 = arith.constant 9 : index
    %c0_370 = arith.constant 0 : index
    %290 = vector.load %arg2[%c0_368, %c0_369, %c9, %c0_370] : memref<1x4x16x9xf32, #tpu.memory_space<vmem>>, vector<1x4x1x8xf32>
    %291 = vector.shape_cast %290 : vector<1x4x1x8xf32> to vector<4x8xf32>
    %c0_371 = arith.constant 0 : index
    %c0_372 = arith.constant 0 : index
    %c9_373 = arith.constant 9 : index
    %c1_374 = arith.constant 1 : index
    %292 = vector.load %arg2[%c0_371, %c0_372, %c9_373, %c1_374] : memref<1x4x16x9xf32, #tpu.memory_space<vmem>>, vector<1x4x1x8xf32>
    %293 = vector.shape_cast %292 : vector<1x4x1x8xf32> to vector<4x8xf32>
    %c0_375 = arith.constant 0 : index
    %c0_376 = arith.constant 0 : index
    %c9_377 = arith.constant 9 : index
    %c0_378 = arith.constant 0 : index
    %294 = vector.load %arg3[%c0_375, %c0_376, %c9_377, %c0_378] : memref<1x4x16x9xf32, #tpu.memory_space<vmem>>, vector<1x4x1x8xf32>
    %295 = vector.shape_cast %294 : vector<1x4x1x8xf32> to vector<4x8xf32>
    %c1_379 = arith.constant 1 : index
    %c0_380 = arith.constant 0 : index
    %c0_381 = arith.constant 0 : index
    %c0_382 = arith.constant 0 : index
    %296 = vector.load %arg6[%c1_379, %c0_380, %c0_381, %c0_382] : memref<3x3x4x4xf32, #tpu.memory_space<vmem>>, vector<1x1x4x4xf32>
    %297 = vector.shape_cast %296 : vector<1x1x4x4xf32> to vector<4x4xf32>
    %cst_383 = arith.constant dense<0.000000e+00> : vector<4x8xf32>
    %298 = tpu.matmul %297, %291, %cst_383 {dimension_numbers = #tpu.dot_dimension_numbers<[1], [0], [0], [1], [0, 0, 1, 1], [], []>} : vector<4x4xf32>, vector<4x8xf32>, vector<4x8xf32> -> vector<4x8xf32>
    %299 = arith.addf %289, %298 : vector<4x8xf32>
    %c1_384 = arith.constant 1 : index
    %c1_385 = arith.constant 1 : index
    %c0_386 = arith.constant 0 : index
    %c0_387 = arith.constant 0 : index
    %300 = vector.load %arg6[%c1_384, %c1_385, %c0_386, %c0_387] : memref<3x3x4x4xf32, #tpu.memory_space<vmem>>, vector<1x1x4x4xf32>
    %301 = vector.shape_cast %300 : vector<1x1x4x4xf32> to vector<4x4xf32>
    %cst_388 = arith.constant dense<0.000000e+00> : vector<4x8xf32>
    %302 = tpu.matmul %301, %295, %cst_388 {dimension_numbers = #tpu.dot_dimension_numbers<[1], [0], [0], [1], [0, 0, 1, 1], [], []>} : vector<4x4xf32>, vector<4x8xf32>, vector<4x8xf32> -> vector<4x8xf32>
    %303 = arith.addf %299, %302 : vector<4x8xf32>
    %c1_389 = arith.constant 1 : index
    %c2_390 = arith.constant 2 : index
    %c0_391 = arith.constant 0 : index
    %c0_392 = arith.constant 0 : index
    %304 = vector.load %arg6[%c1_389, %c2_390, %c0_391, %c0_392] : memref<3x3x4x4xf32, #tpu.memory_space<vmem>>, vector<1x1x4x4xf32>
    %305 = vector.shape_cast %304 : vector<1x1x4x4xf32> to vector<4x4xf32>
    %cst_393 = arith.constant dense<0.000000e+00> : vector<4x8xf32>
    %306 = tpu.matmul %305, %293, %cst_393 {dimension_numbers = #tpu.dot_dimension_numbers<[1], [0], [0], [1], [0, 0, 1, 1], [], []>} : vector<4x4xf32>, vector<4x8xf32>, vector<4x8xf32> -> vector<4x8xf32>
    %307 = arith.addf %303, %306 : vector<4x8xf32>
    %c0_394 = arith.constant 0 : index
    %c0_395 = arith.constant 0 : index
    %c10 = arith.constant 10 : index
    %c0_396 = arith.constant 0 : index
    %308 = vector.load %arg2[%c0_394, %c0_395, %c10, %c0_396] : memref<1x4x16x9xf32, #tpu.memory_space<vmem>>, vector<1x4x1x8xf32>
    %309 = vector.shape_cast %308 : vector<1x4x1x8xf32> to vector<4x8xf32>
    %c0_397 = arith.constant 0 : index
    %c0_398 = arith.constant 0 : index
    %c10_399 = arith.constant 10 : index
    %c1_400 = arith.constant 1 : index
    %310 = vector.load %arg2[%c0_397, %c0_398, %c10_399, %c1_400] : memref<1x4x16x9xf32, #tpu.memory_space<vmem>>, vector<1x4x1x8xf32>
    %311 = vector.shape_cast %310 : vector<1x4x1x8xf32> to vector<4x8xf32>
    %c0_401 = arith.constant 0 : index
    %c0_402 = arith.constant 0 : index
    %c10_403 = arith.constant 10 : index
    %c0_404 = arith.constant 0 : index
    %312 = vector.load %arg3[%c0_401, %c0_402, %c10_403, %c0_404] : memref<1x4x16x9xf32, #tpu.memory_space<vmem>>, vector<1x4x1x8xf32>
    %313 = vector.shape_cast %312 : vector<1x4x1x8xf32> to vector<4x8xf32>
    %c2_405 = arith.constant 2 : index
    %c0_406 = arith.constant 0 : index
    %c0_407 = arith.constant 0 : index
    %c0_408 = arith.constant 0 : index
    %314 = vector.load %arg6[%c2_405, %c0_406, %c0_407, %c0_408] : memref<3x3x4x4xf32, #tpu.memory_space<vmem>>, vector<1x1x4x4xf32>
    %315 = vector.shape_cast %314 : vector<1x1x4x4xf32> to vector<4x4xf32>
    %cst_409 = arith.constant dense<0.000000e+00> : vector<4x8xf32>
    %316 = tpu.matmul %315, %309, %cst_409 {dimension_numbers = #tpu.dot_dimension_numbers<[1], [0], [0], [1], [0, 0, 1, 1], [], []>} : vector<4x4xf32>, vector<4x8xf32>, vector<4x8xf32> -> vector<4x8xf32>
    %317 = arith.addf %307, %316 : vector<4x8xf32>
    %c2_410 = arith.constant 2 : index
    %c1_411 = arith.constant 1 : index
    %c0_412 = arith.constant 0 : index
    %c0_413 = arith.constant 0 : index
    %318 = vector.load %arg6[%c2_410, %c1_411, %c0_412, %c0_413] : memref<3x3x4x4xf32, #tpu.memory_space<vmem>>, vector<1x1x4x4xf32>
    %319 = vector.shape_cast %318 : vector<1x1x4x4xf32> to vector<4x4xf32>
    %cst_414 = arith.constant dense<0.000000e+00> : vector<4x8xf32>
    %320 = tpu.matmul %319, %313, %cst_414 {dimension_numbers = #tpu.dot_dimension_numbers<[1], [0], [0], [1], [0, 0, 1, 1], [], []>} : vector<4x4xf32>, vector<4x8xf32>, vector<4x8xf32> -> vector<4x8xf32>
    %321 = arith.addf %317, %320 : vector<4x8xf32>
    %c2_415 = arith.constant 2 : index
    %c2_416 = arith.constant 2 : index
    %c0_417 = arith.constant 0 : index
    %c0_418 = arith.constant 0 : index
    %322 = vector.load %arg6[%c2_415, %c2_416, %c0_417, %c0_418] : memref<3x3x4x4xf32, #tpu.memory_space<vmem>>, vector<1x1x4x4xf32>
    %323 = vector.shape_cast %322 : vector<1x1x4x4xf32> to vector<4x4xf32>
    %cst_419 = arith.constant dense<0.000000e+00> : vector<4x8xf32>
    %324 = tpu.matmul %323, %311, %cst_419 {dimension_numbers = #tpu.dot_dimension_numbers<[1], [0], [0], [1], [0, 0, 1, 1], [], []>} : vector<4x4xf32>, vector<4x8xf32>, vector<4x8xf32> -> vector<4x8xf32>
    %325 = arith.addf %321, %324 : vector<4x8xf32>
    %326 = vector.broadcast %0 : vector<4x1xf32> to vector<4x8xf32>
    %327 = arith.addf %325, %326 : vector<4x8xf32>
    %c0_420 = arith.constant 0 : index
    %c0_421 = arith.constant 0 : index
    %c32 = arith.constant 32 : index
    %328 = vector.load %arg8[%c0_420, %c0_421, %c32] : memref<1x4x64xf32, #tpu.memory_space<vmem>>, vector<1x4x8xf32>
    %329 = vector.shape_cast %328 : vector<1x4x8xf32> to vector<4x8xf32>
    %330 = vector.shape_cast %327 : vector<4x8xf32> to vector<1x4x8xf32>
    tpu.vector_store %arg8[%c0_420, %c0_421, %c32], %330 {strides = array<i32>} : memref<1x4x64xf32, #tpu.memory_space<vmem>>, vector<1x4x8xf32>,
    %cst_422 = arith.constant dense<0.000000e+00> : vector<4xf32>
    %331 = vector.multi_reduction <add>, %327, %cst_422 [1] : vector<4x8xf32> to vector<4xf32>
    %332 = vector.shape_cast %331 : vector<4xf32> to vector<4x1xf32>
    %333 = arith.addf %266, %332 : vector<4x1xf32>
    %334 = arith.mulf %327, %327 : vector<4x8xf32>
    %cst_423 = arith.constant dense<0.000000e+00> : vector<4xf32>
    %335 = vector.multi_reduction <add>, %334, %cst_423 [1] : vector<4x8xf32> to vector<4xf32>
    %336 = vector.shape_cast %335 : vector<4xf32> to vector<4x1xf32>
    %337 = arith.addf %270, %336 : vector<4x1xf32>
    %cst_424 = arith.constant 0.000000e+00 : f32
    %338 = vector.broadcast %cst_424 : f32 to vector<4x8xf32>
    %c0_425 = arith.constant 0 : index
    %c0_426 = arith.constant 0 : index
    %c10_427 = arith.constant 10 : index
    %c0_428 = arith.constant 0 : index
    %339 = vector.load %arg2[%c0_425, %c0_426, %c10_427, %c0_428] : memref<1x4x16x9xf32, #tpu.memory_space<vmem>>, vector<1x4x1x8xf32>
    %340 = vector.shape_cast %339 : vector<1x4x1x8xf32> to vector<4x8xf32>
    %c0_429 = arith.constant 0 : index
    %c0_430 = arith.constant 0 : index
    %c10_431 = arith.constant 10 : index
    %c1_432 = arith.constant 1 : index
    %341 = vector.load %arg2[%c0_429, %c0_430, %c10_431, %c1_432] : memref<1x4x16x9xf32, #tpu.memory_space<vmem>>, vector<1x4x1x8xf32>
    %342 = vector.shape_cast %341 : vector<1x4x1x8xf32> to vector<4x8xf32>
    %c0_433 = arith.constant 0 : index
    %c0_434 = arith.constant 0 : index
    %c10_435 = arith.constant 10 : index
    %c0_436 = arith.constant 0 : index
    %343 = vector.load %arg3[%c0_433, %c0_434, %c10_435, %c0_436] : memref<1x4x16x9xf32, #tpu.memory_space<vmem>>, vector<1x4x1x8xf32>
    %344 = vector.shape_cast %343 : vector<1x4x1x8xf32> to vector<4x8xf32>
    %c0_437 = arith.constant 0 : index
    %c0_438 = arith.constant 0 : index
    %c0_439 = arith.constant 0 : index
    %c0_440 = arith.constant 0 : index
    %345 = vector.load %arg6[%c0_437, %c0_438, %c0_439, %c0_440] : memref<3x3x4x4xf32, #tpu.memory_space<vmem>>, vector<1x1x4x4xf32>
    %346 = vector.shape_cast %345 : vector<1x1x4x4xf32> to vector<4x4xf32>
    %cst_441 = arith.constant dense<0.000000e+00> : vector<4x8xf32>
    %347 = tpu.matmul %346, %340, %cst_441 {dimension_numbers = #tpu.dot_dimension_numbers<[1], [0], [0], [1], [0, 0, 1, 1], [], []>} : vector<4x4xf32>, vector<4x8xf32>, vector<4x8xf32> -> vector<4x8xf32>
    %348 = arith.addf %338, %347 : vector<4x8xf32>
    %c0_442 = arith.constant 0 : index
    %c1_443 = arith.constant 1 : index
    %c0_444 = arith.constant 0 : index
    %c0_445 = arith.constant 0 : index
    %349 = vector.load %arg6[%c0_442, %c1_443, %c0_444, %c0_445] : memref<3x3x4x4xf32, #tpu.memory_space<vmem>>, vector<1x1x4x4xf32>
    %350 = vector.shape_cast %349 : vector<1x1x4x4xf32> to vector<4x4xf32>
    %cst_446 = arith.constant dense<0.000000e+00> : vector<4x8xf32>
    %351 = tpu.matmul %350, %344, %cst_446 {dimension_numbers = #tpu.dot_dimension_numbers<[1], [0], [0], [1], [0, 0, 1, 1], [], []>} : vector<4x4xf32>, vector<4x8xf32>, vector<4x8xf32> -> vector<4x8xf32>
    %352 = arith.addf %348, %351 : vector<4x8xf32>
    %c0_447 = arith.constant 0 : index
    %c2_448 = arith.constant 2 : index
    %c0_449 = arith.constant 0 : index
    %c0_450 = arith.constant 0 : index
    %353 = vector.load %arg6[%c0_447, %c2_448, %c0_449, %c0_450] : memref<3x3x4x4xf32, #tpu.memory_space<vmem>>, vector<1x1x4x4xf32>
    %354 = vector.shape_cast %353 : vector<1x1x4x4xf32> to vector<4x4xf32>
    %cst_451 = arith.constant dense<0.000000e+00> : vector<4x8xf32>
    %355 = tpu.matmul %354, %342, %cst_451 {dimension_numbers = #tpu.dot_dimension_numbers<[1], [0], [0], [1], [0, 0, 1, 1], [], []>} : vector<4x4xf32>, vector<4x8xf32>, vector<4x8xf32> -> vector<4x8xf32>
    %356 = arith.addf %352, %355 : vector<4x8xf32>
    %c0_452 = arith.constant 0 : index
    %c0_453 = arith.constant 0 : index
    %c11 = arith.constant 11 : index
    %c0_454 = arith.constant 0 : index
    %357 = vector.load %arg2[%c0_452, %c0_453, %c11, %c0_454] : memref<1x4x16x9xf32, #tpu.memory_space<vmem>>, vector<1x4x1x8xf32>
    %358 = vector.shape_cast %357 : vector<1x4x1x8xf32> to vector<4x8xf32>
    %c0_455 = arith.constant 0 : index
    %c0_456 = arith.constant 0 : index
    %c11_457 = arith.constant 11 : index
    %c1_458 = arith.constant 1 : index
    %359 = vector.load %arg2[%c0_455, %c0_456, %c11_457, %c1_458] : memref<1x4x16x9xf32, #tpu.memory_space<vmem>>, vector<1x4x1x8xf32>
    %360 = vector.shape_cast %359 : vector<1x4x1x8xf32> to vector<4x8xf32>
    %c0_459 = arith.constant 0 : index
    %c0_460 = arith.constant 0 : index
    %c11_461 = arith.constant 11 : index
    %c0_462 = arith.constant 0 : index
    %361 = vector.load %arg3[%c0_459, %c0_460, %c11_461, %c0_462] : memref<1x4x16x9xf32, #tpu.memory_space<vmem>>, vector<1x4x1x8xf32>
    %362 = vector.shape_cast %361 : vector<1x4x1x8xf32> to vector<4x8xf32>
    %c1_463 = arith.constant 1 : index
    %c0_464 = arith.constant 0 : index
    %c0_465 = arith.constant 0 : index
    %c0_466 = arith.constant 0 : index
    %363 = vector.load %arg6[%c1_463, %c0_464, %c0_465, %c0_466] : memref<3x3x4x4xf32, #tpu.memory_space<vmem>>, vector<1x1x4x4xf32>
    %364 = vector.shape_cast %363 : vector<1x1x4x4xf32> to vector<4x4xf32>
    %cst_467 = arith.constant dense<0.000000e+00> : vector<4x8xf32>
    %365 = tpu.matmul %364, %358, %cst_467 {dimension_numbers = #tpu.dot_dimension_numbers<[1], [0], [0], [1], [0, 0, 1, 1], [], []>} : vector<4x4xf32>, vector<4x8xf32>, vector<4x8xf32> -> vector<4x8xf32>
    %366 = arith.addf %356, %365 : vector<4x8xf32>
    %c1_468 = arith.constant 1 : index
    %c1_469 = arith.constant 1 : index
    %c0_470 = arith.constant 0 : index
    %c0_471 = arith.constant 0 : index
    %367 = vector.load %arg6[%c1_468, %c1_469, %c0_470, %c0_471] : memref<3x3x4x4xf32, #tpu.memory_space<vmem>>, vector<1x1x4x4xf32>
    %368 = vector.shape_cast %367 : vector<1x1x4x4xf32> to vector<4x4xf32>
    %cst_472 = arith.constant dense<0.000000e+00> : vector<4x8xf32>
    %369 = tpu.matmul %368, %362, %cst_472 {dimension_numbers = #tpu.dot_dimension_numbers<[1], [0], [0], [1], [0, 0, 1, 1], [], []>} : vector<4x4xf32>, vector<4x8xf32>, vector<4x8xf32> -> vector<4x8xf32>
    %370 = arith.addf %366, %369 : vector<4x8xf32>
    %c1_473 = arith.constant 1 : index
    %c2_474 = arith.constant 2 : index
    %c0_475 = arith.constant 0 : index
    %c0_476 = arith.constant 0 : index
    %371 = vector.load %arg6[%c1_473, %c2_474, %c0_475, %c0_476] : memref<3x3x4x4xf32, #tpu.memory_space<vmem>>, vector<1x1x4x4xf32>
    %372 = vector.shape_cast %371 : vector<1x1x4x4xf32> to vector<4x4xf32>
    %cst_477 = arith.constant dense<0.000000e+00> : vector<4x8xf32>
    %373 = tpu.matmul %372, %360, %cst_477 {dimension_numbers = #tpu.dot_dimension_numbers<[1], [0], [0], [1], [0, 0, 1, 1], [], []>} : vector<4x4xf32>, vector<4x8xf32>, vector<4x8xf32> -> vector<4x8xf32>
    %374 = arith.addf %370, %373 : vector<4x8xf32>
    %c0_478 = arith.constant 0 : index
    %c0_479 = arith.constant 0 : index
    %c12 = arith.constant 12 : index
    %c0_480 = arith.constant 0 : index
    %375 = vector.load %arg2[%c0_478, %c0_479, %c12, %c0_480] : memref<1x4x16x9xf32, #tpu.memory_space<vmem>>, vector<1x4x1x8xf32>
    %376 = vector.shape_cast %375 : vector<1x4x1x8xf32> to vector<4x8xf32>
    %c0_481 = arith.constant 0 : index
    %c0_482 = arith.constant 0 : index
    %c12_483 = arith.constant 12 : index
    %c1_484 = arith.constant 1 : index
    %377 = vector.load %arg2[%c0_481, %c0_482, %c12_483, %c1_484] : memref<1x4x16x9xf32, #tpu.memory_space<vmem>>, vector<1x4x1x8xf32>
    %378 = vector.shape_cast %377 : vector<1x4x1x8xf32> to vector<4x8xf32>
    %c0_485 = arith.constant 0 : index
    %c0_486 = arith.constant 0 : index
    %c12_487 = arith.constant 12 : index
    %c0_488 = arith.constant 0 : index
    %379 = vector.load %arg3[%c0_485, %c0_486, %c12_487, %c0_488] : memref<1x4x16x9xf32, #tpu.memory_space<vmem>>, vector<1x4x1x8xf32>
    %380 = vector.shape_cast %379 : vector<1x4x1x8xf32> to vector<4x8xf32>
    %c2_489 = arith.constant 2 : index
    %c0_490 = arith.constant 0 : index
    %c0_491 = arith.constant 0 : index
    %c0_492 = arith.constant 0 : index
    %381 = vector.load %arg6[%c2_489, %c0_490, %c0_491, %c0_492] : memref<3x3x4x4xf32, #tpu.memory_space<vmem>>, vector<1x1x4x4xf32>
    %382 = vector.shape_cast %381 : vector<1x1x4x4xf32> to vector<4x4xf32>
    %cst_493 = arith.constant dense<0.000000e+00> : vector<4x8xf32>
    %383 = tpu.matmul %382, %376, %cst_493 {dimension_numbers = #tpu.dot_dimension_numbers<[1], [0], [0], [1], [0, 0, 1, 1], [], []>} : vector<4x4xf32>, vector<4x8xf32>, vector<4x8xf32> -> vector<4x8xf32>
    %384 = arith.addf %374, %383 : vector<4x8xf32>
    %c2_494 = arith.constant 2 : index
    %c1_495 = arith.constant 1 : index
    %c0_496 = arith.constant 0 : index
    %c0_497 = arith.constant 0 : index
    %385 = vector.load %arg6[%c2_494, %c1_495, %c0_496, %c0_497] : memref<3x3x4x4xf32, #tpu.memory_space<vmem>>, vector<1x1x4x4xf32>
    %386 = vector.shape_cast %385 : vector<1x1x4x4xf32> to vector<4x4xf32>
    %cst_498 = arith.constant dense<0.000000e+00> : vector<4x8xf32>
    %387 = tpu.matmul %386, %380, %cst_498 {dimension_numbers = #tpu.dot_dimension_numbers<[1], [0], [0], [1], [0, 0, 1, 1], [], []>} : vector<4x4xf32>, vector<4x8xf32>, vector<4x8xf32> -> vector<4x8xf32>
    %388 = arith.addf %384, %387 : vector<4x8xf32>
    %c2_499 = arith.constant 2 : index
    %c2_500 = arith.constant 2 : index
    %c0_501 = arith.constant 0 : index
    %c0_502 = arith.constant 0 : index
    %389 = vector.load %arg6[%c2_499, %c2_500, %c0_501, %c0_502] : memref<3x3x4x4xf32, #tpu.memory_space<vmem>>, vector<1x1x4x4xf32>
    %390 = vector.shape_cast %389 : vector<1x1x4x4xf32> to vector<4x4xf32>
    %cst_503 = arith.constant dense<0.000000e+00> : vector<4x8xf32>
    %391 = tpu.matmul %390, %378, %cst_503 {dimension_numbers = #tpu.dot_dimension_numbers<[1], [0], [0], [1], [0, 0, 1, 1], [], []>} : vector<4x4xf32>, vector<4x8xf32>, vector<4x8xf32> -> vector<4x8xf32>
    %392 = arith.addf %388, %391 : vector<4x8xf32>
    %393 = vector.broadcast %0 : vector<4x1xf32> to vector<4x8xf32>
    %394 = arith.addf %392, %393 : vector<4x8xf32>
    %c0_504 = arith.constant 0 : index
    %c0_505 = arith.constant 0 : index
    %c40 = arith.constant 40 : index
    %395 = vector.load %arg8[%c0_504, %c0_505, %c40] : memref<1x4x64xf32, #tpu.memory_space<vmem>>, vector<1x4x8xf32>
    %396 = vector.shape_cast %395 : vector<1x4x8xf32> to vector<4x8xf32>
    %397 = vector.shape_cast %394 : vector<4x8xf32> to vector<1x4x8xf32>
    tpu.vector_store %arg8[%c0_504, %c0_505, %c40], %397 {strides = array<i32>} : memref<1x4x64xf32, #tpu.memory_space<vmem>>, vector<1x4x8xf32>,
    %cst_506 = arith.constant dense<0.000000e+00> : vector<4xf32>
    %398 = vector.multi_reduction <add>, %394, %cst_506 [1] : vector<4x8xf32> to vector<4xf32>
    %399 = vector.shape_cast %398 : vector<4xf32> to vector<4x1xf32>
    %400 = arith.addf %333, %399 : vector<4x1xf32>
    %401 = arith.mulf %394, %394 : vector<4x8xf32>
    %cst_507 = arith.constant dense<0.000000e+00> : vector<4xf32>
    %402 = vector.multi_reduction <add>, %401, %cst_507 [1] : vector<4x8xf32> to vector<4xf32>
    %403 = vector.shape_cast %402 : vector<4xf32> to vector<4x1xf32>
    %404 = arith.addf %337, %403 : vector<4x1xf32>
    %cst_508 = arith.constant 0.000000e+00 : f32
    %405 = vector.broadcast %cst_508 : f32 to vector<4x8xf32>
    %c0_509 = arith.constant 0 : index
    %c0_510 = arith.constant 0 : index
    %c12_511 = arith.constant 12 : index
    %c0_512 = arith.constant 0 : index
    %406 = vector.load %arg2[%c0_509, %c0_510, %c12_511, %c0_512] : memref<1x4x16x9xf32, #tpu.memory_space<vmem>>, vector<1x4x1x8xf32>
    %407 = vector.shape_cast %406 : vector<1x4x1x8xf32> to vector<4x8xf32>
    %c0_513 = arith.constant 0 : index
    %c0_514 = arith.constant 0 : index
    %c12_515 = arith.constant 12 : index
    %c1_516 = arith.constant 1 : index
    %408 = vector.load %arg2[%c0_513, %c0_514, %c12_515, %c1_516] : memref<1x4x16x9xf32, #tpu.memory_space<vmem>>, vector<1x4x1x8xf32>
    %409 = vector.shape_cast %408 : vector<1x4x1x8xf32> to vector<4x8xf32>
    %c0_517 = arith.constant 0 : index
    %c0_518 = arith.constant 0 : index
    %c12_519 = arith.constant 12 : index
    %c0_520 = arith.constant 0 : index
    %410 = vector.load %arg3[%c0_517, %c0_518, %c12_519, %c0_520] : memref<1x4x16x9xf32, #tpu.memory_space<vmem>>, vector<1x4x1x8xf32>
    %411 = vector.shape_cast %410 : vector<1x4x1x8xf32> to vector<4x8xf32>
    %c0_521 = arith.constant 0 : index
    %c0_522 = arith.constant 0 : index
    %c0_523 = arith.constant 0 : index
    %c0_524 = arith.constant 0 : index
    %412 = vector.load %arg6[%c0_521, %c0_522, %c0_523, %c0_524] : memref<3x3x4x4xf32, #tpu.memory_space<vmem>>, vector<1x1x4x4xf32>
    %413 = vector.shape_cast %412 : vector<1x1x4x4xf32> to vector<4x4xf32>
    %cst_525 = arith.constant dense<0.000000e+00> : vector<4x8xf32>
    %414 = tpu.matmul %413, %407, %cst_525 {dimension_numbers = #tpu.dot_dimension_numbers<[1], [0], [0], [1], [0, 0, 1, 1], [], []>} : vector<4x4xf32>, vector<4x8xf32>, vector<4x8xf32> -> vector<4x8xf32>
    %415 = arith.addf %405, %414 : vector<4x8xf32>
    %c0_526 = arith.constant 0 : index
    %c1_527 = arith.constant 1 : index
    %c0_528 = arith.constant 0 : index
    %c0_529 = arith.constant 0 : index
    %416 = vector.load %arg6[%c0_526, %c1_527, %c0_528, %c0_529] : memref<3x3x4x4xf32, #tpu.memory_space<vmem>>, vector<1x1x4x4xf32>
    %417 = vector.shape_cast %416 : vector<1x1x4x4xf32> to vector<4x4xf32>
    %cst_530 = arith.constant dense<0.000000e+00> : vector<4x8xf32>
    %418 = tpu.matmul %417, %411, %cst_530 {dimension_numbers = #tpu.dot_dimension_numbers<[1], [0], [0], [1], [0, 0, 1, 1], [], []>} : vector<4x4xf32>, vector<4x8xf32>, vector<4x8xf32> -> vector<4x8xf32>
    %419 = arith.addf %415, %418 : vector<4x8xf32>
    %c0_531 = arith.constant 0 : index
    %c2_532 = arith.constant 2 : index
    %c0_533 = arith.constant 0 : index
    %c0_534 = arith.constant 0 : index
    %420 = vector.load %arg6[%c0_531, %c2_532, %c0_533, %c0_534] : memref<3x3x4x4xf32, #tpu.memory_space<vmem>>, vector<1x1x4x4xf32>
    %421 = vector.shape_cast %420 : vector<1x1x4x4xf32> to vector<4x4xf32>
    %cst_535 = arith.constant dense<0.000000e+00> : vector<4x8xf32>
    %422 = tpu.matmul %421, %409, %cst_535 {dimension_numbers = #tpu.dot_dimension_numbers<[1], [0], [0], [1], [0, 0, 1, 1], [], []>} : vector<4x4xf32>, vector<4x8xf32>, vector<4x8xf32> -> vector<4x8xf32>
    %423 = arith.addf %419, %422 : vector<4x8xf32>
    %c0_536 = arith.constant 0 : index
    %c0_537 = arith.constant 0 : index
    %c13 = arith.constant 13 : index
    %c0_538 = arith.constant 0 : index
    %424 = vector.load %arg2[%c0_536, %c0_537, %c13, %c0_538] : memref<1x4x16x9xf32, #tpu.memory_space<vmem>>, vector<1x4x1x8xf32>
    %425 = vector.shape_cast %424 : vector<1x4x1x8xf32> to vector<4x8xf32>
    %c0_539 = arith.constant 0 : index
    %c0_540 = arith.constant 0 : index
    %c13_541 = arith.constant 13 : index
    %c1_542 = arith.constant 1 : index
    %426 = vector.load %arg2[%c0_539, %c0_540, %c13_541, %c1_542] : memref<1x4x16x9xf32, #tpu.memory_space<vmem>>, vector<1x4x1x8xf32>
    %427 = vector.shape_cast %426 : vector<1x4x1x8xf32> to vector<4x8xf32>
    %c0_543 = arith.constant 0 : index
    %c0_544 = arith.constant 0 : index
    %c13_545 = arith.constant 13 : index
    %c0_546 = arith.constant 0 : index
    %428 = vector.load %arg3[%c0_543, %c0_544, %c13_545, %c0_546] : memref<1x4x16x9xf32, #tpu.memory_space<vmem>>, vector<1x4x1x8xf32>
    %429 = vector.shape_cast %428 : vector<1x4x1x8xf32> to vector<4x8xf32>
    %c1_547 = arith.constant 1 : index
    %c0_548 = arith.constant 0 : index
    %c0_549 = arith.constant 0 : index
    %c0_550 = arith.constant 0 : index
    %430 = vector.load %arg6[%c1_547, %c0_548, %c0_549, %c0_550] : memref<3x3x4x4xf32, #tpu.memory_space<vmem>>, vector<1x1x4x4xf32>
    %431 = vector.shape_cast %430 : vector<1x1x4x4xf32> to vector<4x4xf32>
    %cst_551 = arith.constant dense<0.000000e+00> : vector<4x8xf32>
    %432 = tpu.matmul %431, %425, %cst_551 {dimension_numbers = #tpu.dot_dimension_numbers<[1], [0], [0], [1], [0, 0, 1, 1], [], []>} : vector<4x4xf32>, vector<4x8xf32>, vector<4x8xf32> -> vector<4x8xf32>
    %433 = arith.addf %423, %432 : vector<4x8xf32>
    %c1_552 = arith.constant 1 : index
    %c1_553 = arith.constant 1 : index
    %c0_554 = arith.constant 0 : index
    %c0_555 = arith.constant 0 : index
    %434 = vector.load %arg6[%c1_552, %c1_553, %c0_554, %c0_555] : memref<3x3x4x4xf32, #tpu.memory_space<vmem>>, vector<1x1x4x4xf32>
    %435 = vector.shape_cast %434 : vector<1x1x4x4xf32> to vector<4x4xf32>
    %cst_556 = arith.constant dense<0.000000e+00> : vector<4x8xf32>
    %436 = tpu.matmul %435, %429, %cst_556 {dimension_numbers = #tpu.dot_dimension_numbers<[1], [0], [0], [1], [0, 0, 1, 1], [], []>} : vector<4x4xf32>, vector<4x8xf32>, vector<4x8xf32> -> vector<4x8xf32>
    %437 = arith.addf %433, %436 : vector<4x8xf32>
    %c1_557 = arith.constant 1 : index
    %c2_558 = arith.constant 2 : index
    %c0_559 = arith.constant 0 : index
    %c0_560 = arith.constant 0 : index
    %438 = vector.load %arg6[%c1_557, %c2_558, %c0_559, %c0_560] : memref<3x3x4x4xf32, #tpu.memory_space<vmem>>, vector<1x1x4x4xf32>
    %439 = vector.shape_cast %438 : vector<1x1x4x4xf32> to vector<4x4xf32>
    %cst_561 = arith.constant dense<0.000000e+00> : vector<4x8xf32>
    %440 = tpu.matmul %439, %427, %cst_561 {dimension_numbers = #tpu.dot_dimension_numbers<[1], [0], [0], [1], [0, 0, 1, 1], [], []>} : vector<4x4xf32>, vector<4x8xf32>, vector<4x8xf32> -> vector<4x8xf32>
    %441 = arith.addf %437, %440 : vector<4x8xf32>
    %c0_562 = arith.constant 0 : index
    %c0_563 = arith.constant 0 : index
    %c14 = arith.constant 14 : index
    %c0_564 = arith.constant 0 : index
    %442 = vector.load %arg2[%c0_562, %c0_563, %c14, %c0_564] : memref<1x4x16x9xf32, #tpu.memory_space<vmem>>, vector<1x4x1x8xf32>
    %443 = vector.shape_cast %442 : vector<1x4x1x8xf32> to vector<4x8xf32>
    %c0_565 = arith.constant 0 : index
    %c0_566 = arith.constant 0 : index
    %c14_567 = arith.constant 14 : index
    %c1_568 = arith.constant 1 : index
    %444 = vector.load %arg2[%c0_565, %c0_566, %c14_567, %c1_568] : memref<1x4x16x9xf32, #tpu.memory_space<vmem>>, vector<1x4x1x8xf32>
    %445 = vector.shape_cast %444 : vector<1x4x1x8xf32> to vector<4x8xf32>
    %c0_569 = arith.constant 0 : index
    %c0_570 = arith.constant 0 : index
    %c14_571 = arith.constant 14 : index
    %c0_572 = arith.constant 0 : index
    %446 = vector.load %arg3[%c0_569, %c0_570, %c14_571, %c0_572] : memref<1x4x16x9xf32, #tpu.memory_space<vmem>>, vector<1x4x1x8xf32>
    %447 = vector.shape_cast %446 : vector<1x4x1x8xf32> to vector<4x8xf32>
    %c2_573 = arith.constant 2 : index
    %c0_574 = arith.constant 0 : index
    %c0_575 = arith.constant 0 : index
    %c0_576 = arith.constant 0 : index
    %448 = vector.load %arg6[%c2_573, %c0_574, %c0_575, %c0_576] : memref<3x3x4x4xf32, #tpu.memory_space<vmem>>, vector<1x1x4x4xf32>
    %449 = vector.shape_cast %448 : vector<1x1x4x4xf32> to vector<4x4xf32>
    %cst_577 = arith.constant dense<0.000000e+00> : vector<4x8xf32>
    %450 = tpu.matmul %449, %443, %cst_577 {dimension_numbers = #tpu.dot_dimension_numbers<[1], [0], [0], [1], [0, 0, 1, 1], [], []>} : vector<4x4xf32>, vector<4x8xf32>, vector<4x8xf32> -> vector<4x8xf32>
    %451 = arith.addf %441, %450 : vector<4x8xf32>
    %c2_578 = arith.constant 2 : index
    %c1_579 = arith.constant 1 : index
    %c0_580 = arith.constant 0 : index
    %c0_581 = arith.constant 0 : index
    %452 = vector.load %arg6[%c2_578, %c1_579, %c0_580, %c0_581] : memref<3x3x4x4xf32, #tpu.memory_space<vmem>>, vector<1x1x4x4xf32>
    %453 = vector.shape_cast %452 : vector<1x1x4x4xf32> to vector<4x4xf32>
    %cst_582 = arith.constant dense<0.000000e+00> : vector<4x8xf32>
    %454 = tpu.matmul %453, %447, %cst_582 {dimension_numbers = #tpu.dot_dimension_numbers<[1], [0], [0], [1], [0, 0, 1, 1], [], []>} : vector<4x4xf32>, vector<4x8xf32>, vector<4x8xf32> -> vector<4x8xf32>
    %455 = arith.addf %451, %454 : vector<4x8xf32>
    %c2_583 = arith.constant 2 : index
    %c2_584 = arith.constant 2 : index
    %c0_585 = arith.constant 0 : index
    %c0_586 = arith.constant 0 : index
    %456 = vector.load %arg6[%c2_583, %c2_584, %c0_585, %c0_586] : memref<3x3x4x4xf32, #tpu.memory_space<vmem>>, vector<1x1x4x4xf32>
    %457 = vector.shape_cast %456 : vector<1x1x4x4xf32> to vector<4x4xf32>
    %cst_587 = arith.constant dense<0.000000e+00> : vector<4x8xf32>
    %458 = tpu.matmul %457, %445, %cst_587 {dimension_numbers = #tpu.dot_dimension_numbers<[1], [0], [0], [1], [0, 0, 1, 1], [], []>} : vector<4x4xf32>, vector<4x8xf32>, vector<4x8xf32> -> vector<4x8xf32>
    %459 = arith.addf %455, %458 : vector<4x8xf32>
    %460 = vector.broadcast %0 : vector<4x1xf32> to vector<4x8xf32>
    %461 = arith.addf %459, %460 : vector<4x8xf32>
    %c0_588 = arith.constant 0 : index
    %c0_589 = arith.constant 0 : index
    %c48 = arith.constant 48 : index
    %462 = vector.load %arg8[%c0_588, %c0_589, %c48] : memref<1x4x64xf32, #tpu.memory_space<vmem>>, vector<1x4x8xf32>
    %463 = vector.shape_cast %462 : vector<1x4x8xf32> to vector<4x8xf32>
    %464 = vector.shape_cast %461 : vector<4x8xf32> to vector<1x4x8xf32>
    tpu.vector_store %arg8[%c0_588, %c0_589, %c48], %464 {strides = array<i32>} : memref<1x4x64xf32, #tpu.memory_space<vmem>>, vector<1x4x8xf32>,
    %cst_590 = arith.constant dense<0.000000e+00> : vector<4xf32>
    %465 = vector.multi_reduction <add>, %461, %cst_590 [1] : vector<4x8xf32> to vector<4xf32>
    %466 = vector.shape_cast %465 : vector<4xf32> to vector<4x1xf32>
    %467 = arith.addf %400, %466 : vector<4x1xf32>
    %468 = arith.mulf %461, %461 : vector<4x8xf32>
    %cst_591 = arith.constant dense<0.000000e+00> : vector<4xf32>
    %469 = vector.multi_reduction <add>, %468, %cst_591 [1] : vector<4x8xf32> to vector<4xf32>
    %470 = vector.shape_cast %469 : vector<4xf32> to vector<4x1xf32>
    %471 = arith.addf %404, %470 : vector<4x1xf32>
    %cst_592 = arith.constant 0.000000e+00 : f32
    %472 = vector.broadcast %cst_592 : f32 to vector<4x8xf32>
    %c0_593 = arith.constant 0 : index
    %c0_594 = arith.constant 0 : index
    %c14_595 = arith.constant 14 : index
    %c0_596 = arith.constant 0 : index
    %473 = vector.load %arg2[%c0_593, %c0_594, %c14_595, %c0_596] : memref<1x4x16x9xf32, #tpu.memory_space<vmem>>, vector<1x4x1x8xf32>
    %474 = vector.shape_cast %473 : vector<1x4x1x8xf32> to vector<4x8xf32>
    %c0_597 = arith.constant 0 : index
    %c0_598 = arith.constant 0 : index
    %c14_599 = arith.constant 14 : index
    %c1_600 = arith.constant 1 : index
    %475 = vector.load %arg2[%c0_597, %c0_598, %c14_599, %c1_600] : memref<1x4x16x9xf32, #tpu.memory_space<vmem>>, vector<1x4x1x8xf32>
    %476 = vector.shape_cast %475 : vector<1x4x1x8xf32> to vector<4x8xf32>
    %c0_601 = arith.constant 0 : index
    %c0_602 = arith.constant 0 : index
    %c14_603 = arith.constant 14 : index
    %c0_604 = arith.constant 0 : index
    %477 = vector.load %arg3[%c0_601, %c0_602, %c14_603, %c0_604] : memref<1x4x16x9xf32, #tpu.memory_space<vmem>>, vector<1x4x1x8xf32>
    %478 = vector.shape_cast %477 : vector<1x4x1x8xf32> to vector<4x8xf32>
    %c0_605 = arith.constant 0 : index
    %c0_606 = arith.constant 0 : index
    %c0_607 = arith.constant 0 : index
    %c0_608 = arith.constant 0 : index
    %479 = vector.load %arg6[%c0_605, %c0_606, %c0_607, %c0_608] : memref<3x3x4x4xf32, #tpu.memory_space<vmem>>, vector<1x1x4x4xf32>
    %480 = vector.shape_cast %479 : vector<1x1x4x4xf32> to vector<4x4xf32>
    %cst_609 = arith.constant dense<0.000000e+00> : vector<4x8xf32>
    %481 = tpu.matmul %480, %474, %cst_609 {dimension_numbers = #tpu.dot_dimension_numbers<[1], [0], [0], [1], [0, 0, 1, 1], [], []>} : vector<4x4xf32>, vector<4x8xf32>, vector<4x8xf32> -> vector<4x8xf32>
    %482 = arith.addf %472, %481 : vector<4x8xf32>
    %c0_610 = arith.constant 0 : index
    %c1_611 = arith.constant 1 : index
    %c0_612 = arith.constant 0 : index
    %c0_613 = arith.constant 0 : index
    %483 = vector.load %arg6[%c0_610, %c1_611, %c0_612, %c0_613] : memref<3x3x4x4xf32, #tpu.memory_space<vmem>>, vector<1x1x4x4xf32>
    %484 = vector.shape_cast %483 : vector<1x1x4x4xf32> to vector<4x4xf32>
    %cst_614 = arith.constant dense<0.000000e+00> : vector<4x8xf32>
    %485 = tpu.matmul %484, %478, %cst_614 {dimension_numbers = #tpu.dot_dimension_numbers<[1], [0], [0], [1], [0, 0, 1, 1], [], []>} : vector<4x4xf32>, vector<4x8xf32>, vector<4x8xf32> -> vector<4x8xf32>
    %486 = arith.addf %482, %485 : vector<4x8xf32>
    %c0_615 = arith.constant 0 : index
    %c2_616 = arith.constant 2 : index
    %c0_617 = arith.constant 0 : index
    %c0_618 = arith.constant 0 : index
    %487 = vector.load %arg6[%c0_615, %c2_616, %c0_617, %c0_618] : memref<3x3x4x4xf32, #tpu.memory_space<vmem>>, vector<1x1x4x4xf32>
    %488 = vector.shape_cast %487 : vector<1x1x4x4xf32> to vector<4x4xf32>
    %cst_619 = arith.constant dense<0.000000e+00> : vector<4x8xf32>
    %489 = tpu.matmul %488, %476, %cst_619 {dimension_numbers = #tpu.dot_dimension_numbers<[1], [0], [0], [1], [0, 0, 1, 1], [], []>} : vector<4x4xf32>, vector<4x8xf32>, vector<4x8xf32> -> vector<4x8xf32>
    %490 = arith.addf %486, %489 : vector<4x8xf32>
    %c0_620 = arith.constant 0 : index
    %c0_621 = arith.constant 0 : index
    %c15 = arith.constant 15 : index
    %c0_622 = arith.constant 0 : index
    %491 = vector.load %arg2[%c0_620, %c0_621, %c15, %c0_622] : memref<1x4x16x9xf32, #tpu.memory_space<vmem>>, vector<1x4x1x8xf32>
    %492 = vector.shape_cast %491 : vector<1x4x1x8xf32> to vector<4x8xf32>
    %c0_623 = arith.constant 0 : index
    %c0_624 = arith.constant 0 : index
    %c15_625 = arith.constant 15 : index
    %c1_626 = arith.constant 1 : index
    %493 = vector.load %arg2[%c0_623, %c0_624, %c15_625, %c1_626] : memref<1x4x16x9xf32, #tpu.memory_space<vmem>>, vector<1x4x1x8xf32>
    %494 = vector.shape_cast %493 : vector<1x4x1x8xf32> to vector<4x8xf32>
    %c0_627 = arith.constant 0 : index
    %c0_628 = arith.constant 0 : index
    %c15_629 = arith.constant 15 : index
    %c0_630 = arith.constant 0 : index
    %495 = vector.load %arg3[%c0_627, %c0_628, %c15_629, %c0_630] : memref<1x4x16x9xf32, #tpu.memory_space<vmem>>, vector<1x4x1x8xf32>
    %496 = vector.shape_cast %495 : vector<1x4x1x8xf32> to vector<4x8xf32>
    %c1_631 = arith.constant 1 : index
    %c0_632 = arith.constant 0 : index
    %c0_633 = arith.constant 0 : index
    %c0_634 = arith.constant 0 : index
    %497 = vector.load %arg6[%c1_631, %c0_632, %c0_633, %c0_634] : memref<3x3x4x4xf32, #tpu.memory_space<vmem>>, vector<1x1x4x4xf32>
    %498 = vector.shape_cast %497 : vector<1x1x4x4xf32> to vector<4x4xf32>
    %cst_635 = arith.constant dense<0.000000e+00> : vector<4x8xf32>
    %499 = tpu.matmul %498, %492, %cst_635 {dimension_numbers = #tpu.dot_dimension_numbers<[1], [0], [0], [1], [0, 0, 1, 1], [], []>} : vector<4x4xf32>, vector<4x8xf32>, vector<4x8xf32> -> vector<4x8xf32>
    %500 = arith.addf %490, %499 : vector<4x8xf32>
    %c1_636 = arith.constant 1 : index
    %c1_637 = arith.constant 1 : index
    %c0_638 = arith.constant 0 : index
    %c0_639 = arith.constant 0 : index
    %501 = vector.load %arg6[%c1_636, %c1_637, %c0_638, %c0_639] : memref<3x3x4x4xf32, #tpu.memory_space<vmem>>, vector<1x1x4x4xf32>
    %502 = vector.shape_cast %501 : vector<1x1x4x4xf32> to vector<4x4xf32>
    %cst_640 = arith.constant dense<0.000000e+00> : vector<4x8xf32>
    %503 = tpu.matmul %502, %496, %cst_640 {dimension_numbers = #tpu.dot_dimension_numbers<[1], [0], [0], [1], [0, 0, 1, 1], [], []>} : vector<4x4xf32>, vector<4x8xf32>, vector<4x8xf32> -> vector<4x8xf32>
    %504 = arith.addf %500, %503 : vector<4x8xf32>
    %c1_641 = arith.constant 1 : index
    %c2_642 = arith.constant 2 : index
    %c0_643 = arith.constant 0 : index
    %c0_644 = arith.constant 0 : index
    %505 = vector.load %arg6[%c1_641, %c2_642, %c0_643, %c0_644] : memref<3x3x4x4xf32, #tpu.memory_space<vmem>>, vector<1x1x4x4xf32>
    %506 = vector.shape_cast %505 : vector<1x1x4x4xf32> to vector<4x4xf32>
    %cst_645 = arith.constant dense<0.000000e+00> : vector<4x8xf32>
    %507 = tpu.matmul %506, %494, %cst_645 {dimension_numbers = #tpu.dot_dimension_numbers<[1], [0], [0], [1], [0, 0, 1, 1], [], []>} : vector<4x4xf32>, vector<4x8xf32>, vector<4x8xf32> -> vector<4x8xf32>
    %508 = arith.addf %504, %507 : vector<4x8xf32>
    %c0_646 = arith.constant 0 : index
    %c0_647 = arith.constant 0 : index
    %c0_648 = arith.constant 0 : index
    %c0_649 = arith.constant 0 : index
    %509 = vector.load %arg4[%c0_646, %c0_647, %c0_648, %c0_649] : memref<1x1x4x9xf32, #tpu.memory_space<vmem>>, vector<1x1x4x8xf32>
    %510 = vector.shape_cast %509 : vector<1x1x4x8xf32> to vector<4x8xf32>
    %c0_650 = arith.constant 0 : index
    %c0_651 = arith.constant 0 : index
    %c0_652 = arith.constant 0 : index
    %c1_653 = arith.constant 1 : index
    %511 = vector.load %arg4[%c0_650, %c0_651, %c0_652, %c1_653] : memref<1x1x4x9xf32, #tpu.memory_space<vmem>>, vector<1x1x4x8xf32>
    %512 = vector.shape_cast %511 : vector<1x1x4x8xf32> to vector<4x8xf32>
    %c0_654 = arith.constant 0 : index
    %c0_655 = arith.constant 0 : index
    %c0_656 = arith.constant 0 : index
    %c0_657 = arith.constant 0 : index
    %513 = vector.load %arg5[%c0_654, %c0_655, %c0_656, %c0_657] : memref<1x1x4x9xf32, #tpu.memory_space<vmem>>, vector<1x1x4x8xf32>
    %514 = vector.shape_cast %513 : vector<1x1x4x8xf32> to vector<4x8xf32>
    %c2_658 = arith.constant 2 : index
    %c0_659 = arith.constant 0 : index
    %c0_660 = arith.constant 0 : index
    %c0_661 = arith.constant 0 : index
    %515 = vector.load %arg6[%c2_658, %c0_659, %c0_660, %c0_661] : memref<3x3x4x4xf32, #tpu.memory_space<vmem>>, vector<1x1x4x4xf32>
    %516 = vector.shape_cast %515 : vector<1x1x4x4xf32> to vector<4x4xf32>
    %cst_662 = arith.constant dense<0.000000e+00> : vector<4x8xf32>
    %517 = tpu.matmul %516, %510, %cst_662 {dimension_numbers = #tpu.dot_dimension_numbers<[1], [0], [0], [1], [0, 0, 1, 1], [], []>} : vector<4x4xf32>, vector<4x8xf32>, vector<4x8xf32> -> vector<4x8xf32>
    %518 = arith.addf %508, %517 : vector<4x8xf32>
    %c2_663 = arith.constant 2 : index
    %c1_664 = arith.constant 1 : index
    %c0_665 = arith.constant 0 : index
    %c0_666 = arith.constant 0 : index
    %519 = vector.load %arg6[%c2_663, %c1_664, %c0_665, %c0_666] : memref<3x3x4x4xf32, #tpu.memory_space<vmem>>, vector<1x1x4x4xf32>
    %520 = vector.shape_cast %519 : vector<1x1x4x4xf32> to vector<4x4xf32>
    %cst_667 = arith.constant dense<0.000000e+00> : vector<4x8xf32>
    %521 = tpu.matmul %520, %514, %cst_667 {dimension_numbers = #tpu.dot_dimension_numbers<[1], [0], [0], [1], [0, 0, 1, 1], [], []>} : vector<4x4xf32>, vector<4x8xf32>, vector<4x8xf32> -> vector<4x8xf32>
    %522 = arith.addf %518, %521 : vector<4x8xf32>
    %c2_668 = arith.constant 2 : index
    %c2_669 = arith.constant 2 : index
    %c0_670 = arith.constant 0 : index
    %c0_671 = arith.constant 0 : index
    %523 = vector.load %arg6[%c2_668, %c2_669, %c0_670, %c0_671] : memref<3x3x4x4xf32, #tpu.memory_space<vmem>>, vector<1x1x4x4xf32>
    %524 = vector.shape_cast %523 : vector<1x1x4x4xf32> to vector<4x4xf32>
    %cst_672 = arith.constant dense<0.000000e+00> : vector<4x8xf32>
    %525 = tpu.matmul %524, %512, %cst_672 {dimension_numbers = #tpu.dot_dimension_numbers<[1], [0], [0], [1], [0, 0, 1, 1], [], []>} : vector<4x4xf32>, vector<4x8xf32>, vector<4x8xf32> -> vector<4x8xf32>
    %526 = arith.addf %522, %525 : vector<4x8xf32>
    %527 = vector.broadcast %0 : vector<4x1xf32> to vector<4x8xf32>
    %528 = arith.addf %526, %527 : vector<4x8xf32>
    %c0_673 = arith.constant 0 : index
    %c0_674 = arith.constant 0 : index
    %c56 = arith.constant 56 : index
    %529 = vector.load %arg8[%c0_673, %c0_674, %c56] : memref<1x4x64xf32, #tpu.memory_space<vmem>>, vector<1x4x8xf32>
    %530 = vector.shape_cast %529 : vector<1x4x8xf32> to vector<4x8xf32>
    %531 = vector.shape_cast %528 : vector<4x8xf32> to vector<1x4x8xf32>
    tpu.vector_store %arg8[%c0_673, %c0_674, %c56], %531 {strides = array<i32>} : memref<1x4x64xf32, #tpu.memory_space<vmem>>, vector<1x4x8xf32>,
    %cst_675 = arith.constant dense<0.000000e+00> : vector<4xf32>
    %532 = vector.multi_reduction <add>, %528, %cst_675 [1] : vector<4x8xf32> to vector<4xf32>
    %533 = vector.shape_cast %532 : vector<4xf32> to vector<4x1xf32>
    %534 = arith.addf %467, %533 : vector<4x1xf32>
    %535 = arith.mulf %528, %528 : vector<4x8xf32>
    %cst_676 = arith.constant dense<0.000000e+00> : vector<4xf32>
    %536 = vector.multi_reduction <add>, %535, %cst_676 [1] : vector<4x8xf32> to vector<4xf32>
    %537 = vector.shape_cast %536 : vector<4xf32> to vector<4x1xf32>
    %538 = arith.addf %471, %537 : vector<4x1xf32>
    %c0_677 = arith.constant 0 : index
    %c0_678 = arith.constant 0 : index
    %c0_679 = arith.constant 0 : index
    %c0_680 = arith.constant 0 : index
    %539 = vector.load %arg9[%c0_677, %c0_678, %c0_679, %c0_680] : memref<1x1x4x2xf32, #tpu.memory_space<vmem>>, vector<1x1x4x1xf32>
    %540 = vector.shape_cast %539 : vector<1x1x4x1xf32> to vector<4x1xf32>
    %541 = vector.shape_cast %534 : vector<4x1xf32> to vector<1x1x4x1xf32>
    tpu.vector_store %arg9[%c0_677, %c0_678, %c0_679, %c0_680], %541 {strides = array<i32>} : memref<1x1x4x2xf32, #tpu.memory_space<vmem>>, vector<1x1x4x1xf32>,
    %c0_681 = arith.constant 0 : index
    %c0_682 = arith.constant 0 : index
    %c0_683 = arith.constant 0 : index
    %c1_684 = arith.constant 1 : index
    %542 = vector.load %arg9[%c0_681, %c0_682, %c0_683, %c1_684] : memref<1x1x4x2xf32, #tpu.memory_space<vmem>>, vector<1x1x4x1xf32>
    %543 = vector.shape_cast %542 : vector<1x1x4x1xf32> to vector<4x1xf32>
    %544 = vector.shape_cast %538 : vector<4x1xf32> to vector<1x1x4x1xf32>
    tpu.vector_store %arg9[%c0_681, %c0_682, %c0_683, %c1_684], %544 {strides = array<i32>} : memref<1x1x4x2xf32, #tpu.memory_space<vmem>>, vector<1x1x4x1xf32>,
    return
  }
  func.func @transform_0(%arg0: i32, %arg1: i32) -> (i32, i32, i32, i32) {
    %c0_i32 = arith.constant 0 : i32
    %c0_i32_0 = arith.constant 0 : i32
    %c0_i32_1 = arith.constant 0 : i32
    return %arg0, %c0_i32, %arg1, %c0_i32_0 : i32, i32, i32, i32
  }
  func.func @transform_1(%arg0: i32, %arg1: i32) -> (i32, i32, i32, i32) {
    %c0_i32 = arith.constant 0 : i32
    %c0_i32_0 = arith.constant 0 : i32
    %c0_i32_1 = arith.constant 0 : i32
    return %arg0, %c0_i32, %arg1, %c0_i32_0 : i32, i32, i32, i32
  }
  func.func @transform_2(%arg0: i32, %arg1: i32) -> (i32, i32, i32, i32) {
    %c0_i32 = arith.constant 0 : i32
    %c0_i32_0 = arith.constant 0 : i32
    %c0_i32_1 = arith.constant 0 : i32
    return %arg0, %arg1, %c0_i32, %c0_i32_0 : i32, i32, i32, i32
  }
  func.func @transform_3(%arg0: i32, %arg1: i32) -> (i32, i32, i32, i32) {
    %c0_i32 = arith.constant 0 : i32
    %c0_i32_0 = arith.constant 0 : i32
    %c0_i32_1 = arith.constant 0 : i32
    return %arg0, %arg1, %c0_i32, %c0_i32_0 : i32, i32, i32, i32
  }
  func.func @transform_4(%arg0: i32, %arg1: i32) -> (i32, i32, i32, i32) {
    %c0_i32 = arith.constant 0 : i32
    %c0_i32_0 = arith.constant 0 : i32
    %c0_i32_1 = arith.constant 0 : i32
    %c0_i32_2 = arith.constant 0 : i32
    %c0_i32_3 = arith.constant 0 : i32
    return %c0_i32, %c0_i32_0, %c0_i32_1, %c0_i32_2 : i32, i32, i32, i32
  }
  func.func @transform_5(%arg0: i32, %arg1: i32) -> (i32, i32) {
    %c0_i32 = arith.constant 0 : i32
    %c0_i32_0 = arith.constant 0 : i32
    %c0_i32_1 = arith.constant 0 : i32
    return %c0_i32, %c0_i32_0 : i32, i32
  }
  func.func @transform_6(%arg0: i32, %arg1: i32) -> (i32, i32, i32) {
    %c0_i32 = arith.constant 0 : i32
    %c0_i32_0 = arith.constant 0 : i32
    return %arg0, %c0_i32, %arg1 : i32, i32, i32
  }
  func.func @transform_7(%arg0: i32, %arg1: i32) -> (i32, i32, i32, i32) {
    %c0_i32 = arith.constant 0 : i32
    %c0_i32_0 = arith.constant 0 : i32
    %c0_i32_1 = arith.constant 0 : i32
    return %arg0, %arg1, %c0_i32, %c0_i32_0 : i32, i32, i32, i32
  }
}

</mosaic_0001>

<bundles_post_ra>
// kernel: downsample_forward.3
= control target key start
LH: loop header
LB: loop body
LE: loop exit
PB: predicated region body
PF: predicated region fallthrough
CT: control target
= control target key end

     0   :  { %s371_s12 = smov 0   ;;  %s373_s13 = smov 0   ;;  %s407_s0 = inlined_call_operand.vmem [shape: f32[2,4,64], index: 0, kind: input, shape index: {}, may-alias: {0,3}]   ;;  %s408_s1 = inlined_call_operand.vmem [shape: f32[4,1], index: 1, kind: input, shape index: {}]   ;;  %s409_s2 = inlined_call_operand.vmem [shape: f32[4,1], index: 2, kind: input, shape index: {}]   ;;  %s410_s3 = inlined_call_operand.vmem [shape: f32[2,4,64], index: 3, kind: output, shape index: {}, may-alias: {0,3}]  }
   0x1   :  { %s375_s14 = smov 0  }
   0x2 LB: > { %s25_s15 = sadd.s32 1, %s344_s13  ;;  %p295_p0 = scmp.ge.s32.totalorder %s348_s14, 1  ;;  %s348_s14 = sphi %s375_s14, %s13_s14   ;;  %s344_s13 = sphi %s373_s13, %s412_s13   ;;  %s340_s12 = sphi %s371_s12, %s411_s12  }
   0x3   : > { %p27_p1 = scmp.ge.s32.totalorder %s25_s15, 2  ;;  %p155_p2 = scmp.lt.s32.totalorder %s348_s14, 3 }
   0x5   : > { %s414_s15 = smov (%p27_p1, %s25_s15), 0  ;;  %p156_p3 = pnand %p295_p0, %p155_p2 }
   0x6   : > { %v198_v0 = vld [vmem:[%s408_s1] sm:$0xf] (!%p156_p3)  ;;  %v350_v1 = vmov (!%p156_p3), 0   ;;  %p183_p4 = scmp.lt.s32.totalorder (!%p156_p3), %s340_s12, 1  ;;  %vm215_vm0 = vcmask (!%p156_p3), 519168  }
   0x7   : > { %159 = sbr.rel (%p156_p3) target bundleno = 146 (0x92), region = 32  ;;  %325 = vset.pattern.permute.xlu0 (!%p156_p3), %v350_v1  ;;  %v205_v2 = vld [vmem:[%s409_s2] sm:$0xf] (!%p156_p3) }
   0x8   : > { %201 = vperm.xlu0 (!%p156_p3), %325, %v198_v0  }
   0xc   : > { %208 = vperm.xlu0 (!%p156_p3), %325, %v205_v2  }
   0xe   : > { %s416_s12 = smov (!%p183_p4, %s340_s12), 1 }
   0xf   : > { %s296_s20 = sshll.u32 %s416_s12, 2 }
  0x10   : > { %s189_s23 = scalar_lea.vmem %s407_s0, %s296_s20  ;;  %s196_s26 = scalar_lea.vmem %s410_s3, %s296_s20 }
  0x11   : > { %v197_v4 = vld [vmem:[%s189_s23] sm:$0xf] }
  0x87   : > { %v202_v3 = vpop.permute.xlu0 %201 }
  0x88   : > { %v204_v5 = vmul.f32 %v202_v3, %v197_v4 }
  0x8b   : > { %v209_v6 = vpop.permute.xlu0 %208 }
  0x8c   : > { %v211_v7 = vadd.f32 %v209_v6, %v204_v5 }
  0x8e   : > { %vm212_vm1 = vcmp.gt.f32.partialorder %v211_v7, 0.0  ;;  %v213_v8 = vmul.f32 0.01, %v211_v7 }
  0x90   : > { %v214_v9 = vsel %vm212_vm1, %v211_v7, %v213_v8 }
  0x91   : > { %216 = vst.msk [vmem:[%s196_s26] sm:$0xf] %vm215_vm0, %v214_v9 }
  0x92 PF: > { %s13_s14 = sadd.s32 1, %s348_s14   ;;  %s411_s12 = smov %s344_s13 }
  0x93   : > { %p10_p5 = scmp.ge.s32.totalorder %s13_s14, 4   ;;  %s412_s13 = smov %s414_s15 }
  0x95   :  { %12 = sbr.rel (!%p10_p5) target bundleno = 2 (0x2), region = 62 }

// kernel: downsample_forward.2
= control target key start
LH: loop header
LB: loop body
LE: loop exit
PB: predicated region body
PF: predicated region fallthrough
CT: control target
= control target key end

     0   :  { %s9518_s0 = inlined_call_operand.hbm [shape: f32[2,4,16,9], index: 0, kind: input, shape index: {}]   ;;  %s9519_s1 = inlined_call_operand.hbm [shape: f32[2,4,16,9], index: 1, kind: input, shape index: {}]   ;;  %s9520_s2 = inlined_call_operand.hbm [shape: f32[2,1,4,9], index: 2, kind: input, shape index: {}]   ;;  %s9521_s3 = inlined_call_operand.hbm [shape: f32[2,1,4,9], index: 3, kind: input, shape index: {}]   ;;  %s9522_s4 = inlined_call_operand.hbm [shape: f32[3,3,4,4], index: 4, kind: input, shape index: {}]   ;;  %s9523_s5 = inlined_call_operand.hbm [shape: f32[4,1], index: 5, kind: input, shape index: {}]   ;;  %s9524_s6 = inlined_call_operand.hbm [shape: f32[2,4,64], index: 6, kind: output, shape index: {0}]   ;;  %s9525_s7 = inlined_call_operand.hbm [shape: f32[2,1,4,2], index: 7, kind: output, shape index: {1}]  }
   0x1   :  { %9546 = sst [smem:[#allocation27_spill]] %s9518_s0 }
   0x2   :  { %9547 = sst [smem:[#allocation28_spill]] %s9519_s1 }
   0x3   :  { %9548 = sst [smem:[#allocation29_spill]] %s9522_s4 }
   0x4   :  { %9549 = sst [smem:[#allocation30_spill]] %s9523_s5 }
   0x5   :  { %9550 = sst [smem:[#allocation31_spill]] %s9524_s6 }
   0x6   :  { %9551 = sst [smem:[#allocation32_spill]] %s9525_s7 }
   0x7   :  { %13 = vsyncpa [#allocation3], 0 }
   0x8   :  { %15 = vsyncpa [#allocation3 + $0x1], 0 }
   0x9   :  { %16 = vsyncpa [#allocation6], 0 }
   0xa   :  { %18 = vsyncpa [#allocation6 + $0x1], 0 }
   0xb   :  { %19 = vsyncpa [#allocation9], 0 }
   0xc   :  { %21 = vsyncpa [#allocation9 + $0x1], 0 }
   0xd   :  { %22 = vsyncpa [#allocation12], 0 }
   0xe   :  { %23 = vsyncpa [#allocation4], 0 }
   0xf   :  { %25 = vsyncpa [#allocation4 + $0x1], 0 }
  0x10   :  { %26 = vsyncpa [#allocation15], 0 }
  0x11   :  { %28 = vsyncpa [#allocation15 + $0x1], 0  ;;  %s8260_s24 = smov 0   ;;  %s8262_s25 = smov 0  }
  0x12   :  { %s8264_s26 = smov 0   ;;  %s8266_s27 = smov 0  }
  0x13   :  { %s8268_s28 = smov 0   ;;  %s8270_s29 = smov 0  }
  0x14 LB: > { %9552 = sst [smem:[#allocation23_spill]] %s8175_s24  ;;  %s8291_s30 = sadd.s32 4294967295, %s8195_s29   ;;  %s8195_s29 = sphi %s8270_s29, %s34_s29   ;;  %s8191_s28 = sphi %s8268_s28, %s9602_s28   ;;  %s8187_s27 = sphi %s8266_s27, %s9601_s27   ;;  %s8183_s26 = sphi %s8264_s26, %s9600_s26   ;;  %s8179_s25 = sphi %s8262_s25, %s9599_s25   ;;  %s8175_s24 = sphi %s8260_s24, %s9598_s24  }
  0x15   : > { %s7089_s8 = sadd.s32 4294967294, %s8195_s29   ;;  %p62_p0 = scmp.ne.s32.totalorder %s8183_s26, %s8179_s25 }
  0x16   : > { %p63_p1 = scmp.eq.s32.totalorder %s8195_s29, 0  ;;  %p68_p2 = scmp.ne.s32.totalorder %s8179_s25, %s8175_s24 }
  0x17   : > { %p9527_p3 = scmp.eq.s32.totalorder %s8291_s30, 0  ;;  %p220_p4 = scmp.eq.s32.totalorder %s8291_s30, 1 }
  0x18   : > { %p8302_p5 = por %p63_p1, %p62_p0  ;;  %p226_p6 = scmp.eq.s32.totalorder %s7089_s8, 1 }
  0x19   : > { %p8308_p7 = por %p9527_p3, %p68_p2  ;;  %p8312_p8 = por %p220_p4, %p62_p0 }
  0x1a   : > { %p8316_p9 = por %p226_p6, %p68_p2  ;;  %p7090_p10 = scmp.ge.s32.totalorder %s8195_s29, 1 }
  0x1b   : > { %s9554_s11 = scalar_select %p8308_p7, 1, 0 }
  0x1c   : > { %s9555_s12 = scalar_select %p8312_p8, 1, 0 }
  0x1d   : > { %s9556_s13 = scalar_select %p8316_p9, 1, 0 }
  0x1e   : > { %p261_p11 = scmp.lt.s32.totalorder %s8195_s29, 3  ;;  %s8197_s15 = smov [#allocation10]  }
  0x1f   : > { %9557 = sst [smem:[#allocation24_spill]] %s9556_s13  ;;  %s273_s16 = sshll.u32 %s8197_s15, 4  ;;  %s8326_s16 = int_to_ptr.vmem [resolvable:$true] %s273_s16 }
  0x20   : > { %p8322_p12 = pnand %p7090_p10, %p261_p11  ;;  %s46_s18 = sadd.s32 1, %s8191_s28 }
  0x21   : > { %s8340_s19 = sand.u32 1, %s8183_s26   ;;  %p8342_p4 = scmp.ge.s32.totalorder %s46_s18, 2 }
  0x22   : > { %s9558_s14 = scalar_select %p8322_p12, 1, 0 }
  0x23   : > { %p7789_p13 = pneg %p8322_p12  ;;  %s9561_s4 = sld [smem:[#allocation29_spill]] }
  0x25   : > { %p8334_p2 = pnand %p7789_p13, %p9527_p3 }
  0x27   : > { %s9559_s17 = scalar_select %p8334_p2, 1, 0 }
  0x28   : > { %p9537_p10 = pneg %p8334_p2 }
  0x29   : > { %s7889_s23 = scalar_lea.hbm %s9561_s4, 576 }
  0x2a   : > { %p7890_p6 = scmp.ne.s32.totalorder %s9561_s4, %s7889_s23  ;;  %p7896_p0 = scmp.lt.u32.totalorder %s7889_s23, %s9561_s4 }
  0x2c   : > { %p7892_p11 = pnand %p9537_p10, %p7890_p6 }
  0x2e   : > { %p7893_p13 = pneg %p7892_p11 }
  0x30   : > { %p7898_p3 = pnand %p7896_p0, %p7893_p13 }
  0x32   : > { %7901 = shalt.err (!%p7898_p3)
}
  0x33   : > { %s7902_s21 = scalar_lea.vmem %s8326_s16, 576  ;;  %p7910_p7 = scmp.lt.s32.totalorder %s8326_s16, %s8326_s16 }
  0x34   : > { %p7903_p1 = scmp.ne.s32.totalorder %s8326_s16, %s7902_s21  ;;  %p7911_p6 = scmp.lt.s32.totalorder %s7902_s21, %s7902_s21 }
  0x36   : > { %p7905_p9 = pnand %p7903_p1, %p9537_p10  ;;  %p7912_p11 = por %p7911_p6, %p7910_p7 }
  0x38   : > { %p7906_p8 = pneg %p7905_p9 }
  0x3a   : > { %p7913_p12 = pnand %p7912_p11, %p7906_p8 }
  0x3c   : > { %7916 = shalt.err (!%p7913_p12)
}
  0x3d   : > { %s8198_s9 = smov 64   ;;  %s8199_s13 = smov 4  }
  0x3e   : > { %7792 = dma.hbm_to_vmem [thread:$0]  (!%p8334_p2), %s9561_s4, 576, %s8326_s16, [#allocation9], %s8198_s9, %s8198_s9, %s8199_s13  }
  0x3f   : > { %s9604_s18 = smov (%p8342_p4, %s46_s18), 0  ;;  %s9534_s8 = sshll.u32 %s8340_s19, 6 }
  0x40   : > { %9562 = sst [smem:[#allocation25_spill]] %s9604_s18  ;;  %s9535_s15 = sshll.u32 %s8191_s28, 10 }
  0x41   : > { %s50_s21 = ssub.s32 %s8191_s28, %s9604_s18  ;;  %p9563_p3 = scmp.lt.s32.totalorder %s8195_s29, 2 }
  0x42   : > { %p53_p8 = scmp.eq.s32.totalorder %s50_s21, 0  ;;  %s9565_s7 = sadd.s32 1, %s8183_s26 }
  0x43   : > { %p8385_p7 = pnand %p9563_p3, %p8302_p5  ;;  %s9536_s22 = sand.u32 1, %s8195_s29  }
  0x44   : > { %s8392_s6 = scalar_select %p53_p8, %s8183_s26, %s9565_s7  }
  0x45   : > { %s9564_s24 = scalar_select %p8385_p7, 1, 0 }
  0x46   : > { %9566 = sst [smem:[#allocation26_spill]] %s8392_s6  ;;  %s9567_s1 = sld [smem:[#allocation28_spill]] }
  0x47   : > { %s325_s10 = scalar_lea.vmem [#allocation5], %s9534_s8  ;;  %s8200_s23 = smov [#allocation11]  }
  0x48   : > { %s334_s13 = sshll.u32 %s325_s10, 4  ;;  %s8406_s21 = sshll.u32 %s8200_s23, 4  ;;  %s8404_s13 = int_to_ptr.vmem [resolvable:$true] %s334_s13  ;;  %s288_s21 = int_to_ptr.vmem [resolvable:$true] %s8406_s21 }
  0x49   : > { %s8410_s7 = scalar_lea.sflag [#allocation6], %s9536_s22  ;;  %p8416_p9 = pneg %p8385_p7 }
  0x4b   : > { %s9568_s16 = scalar_select %p8416_p9, 1, 0 }
  0x4c   : > { %s8400_s9 = scalar_lea.hbm %s9567_s1, %s9535_s15  ;;  %s7922_s8 = scalar_lea.hbm %s9567_s1, 2048 }
  0x4d   : > { %s7917_s4 = scalar_lea.hbm %s8400_s9, 1024  ;;  %p7923_p1 = scmp.lt.u32.totalorder %s8400_s9, %s9567_s1 }
  0x4e   : > { %p7918_p5 = scmp.ne.s32.totalorder %s8400_s9, %s7917_s4  ;;  %p7924_p4 = scmp.lt.u32.totalorder %s7922_s8, %s7917_s4 }
  0x4f   : > { %p7926_p6 = scmp.lt.u32.totalorder %s7917_s4, %s8400_s9 }
  0x50   : > { %p7920_p12 = pnand %p8416_p9, %p7918_p5  ;;  %p7925_p13 = por %p7924_p4, %p7923_p1 }
  0x52   : > { %p7921_p0 = pneg %p7920_p12  ;;  %p7927_p11 = por %p7926_p6, %p7925_p13 }
  0x54   : > { %p7928_p3 = pnand %p7927_p11, %p7921_p0 }
  0x56   : > { %7931 = shalt.err (!%p7928_p3)
}
  0x57   : > { %s7932_s22 = scalar_lea.vmem %s8404_s13, 1024  ;;  %s8201_s20 = smov [#allocation5]  }
  0x58   : > { %p7933_p8 = scmp.ne.s32.totalorder %s8404_s13, %s7932_s22  ;;  %s7937_s10 = sshll.u32 %s8201_s20, 4  ;;  %s7938_s10 = int_to_ptr.vmem [resolvable:$false] %s7937_s10 }
  0x59   : > { %s7939_s15 = scalar_lea.vmem %s7938_s10, 2048  ;;  %p7940_p10 = scmp.lt.s32.totalorder %s8404_s13, %s7938_s10 }
  0x5a   : > { %p7935_p5 = pnand %p7933_p8, %p8416_p9  ;;  %p7941_p2 = scmp.lt.s32.totalorder %s7939_s15, %s7932_s22 }
  0x5c   : > { %p7936_p12 = pneg %p7935_p5  ;;  %p7942_p1 = por %p7941_p2, %p7940_p10 }
  0x5e   : > { %p7943_p4 = pnand %p7942_p1, %p7936_p12 }
  0x60   : > { %7946 = shalt.err (!%p7943_p4)
}
  0x61   : > { %s9545_s4 = smov 128   ;;  %s8203_s8 = smov 8  }
  0x62   : > { %7802 = dma.hbm_to_vmem [thread:$0]  (!%p8385_p7), %s8400_s9, 1024, %s8404_s13, %s8410_s7, %s9545_s4, %s9545_s4, %s8203_s8  }
  0x63   : > { %s9569_s5 = sld [smem:[#allocation30_spill]]  ;;  %p9570_p10 = scmp.ne.s32.totalorder %s9559_s17, 0 }
  0x65   : > { %p9571_p0 = pneg %p9570_p10 }
  0x69   : > { %s7947_s22 = scalar_lea.hbm %s9569_s5, 64 }
  0x6a   : > { %p7948_p2 = scmp.ne.s32.totalorder %s9569_s5, %s7947_s22  ;;  %p7954_p11 = scmp.lt.u32.totalorder %s7947_s22, %s9569_s5 }
  0x6c   : > { %p7950_p13 = pnand %p7948_p2, %p9571_p0 }
  0x6e   : > { %p7951_p6 = pneg %p7950_p13 }
  0x70   : > { %p7956_p3 = pnand %p7954_p11, %p7951_p6 }
  0x72   : > { %7959 = shalt.err (!%p7956_p3)
}
  0x73   : > { %s7960_s9 = scalar_lea.vmem %s288_s21, 64  ;;  %p9572_p5 = pmov %p9571_p0 }
  0x74   : > { %p7961_p8 = scmp.ne.s32.totalorder %s288_s21, %s7960_s9  ;;  %p7968_p4 = scmp.lt.s32.totalorder %s288_s21, %s288_s21 }
  0x75   : > { %p7969_p7 = scmp.lt.s32.totalorder %s7960_s9, %s7960_s9 }
  0x76   : > { %p7963_p12 = pnand %p7961_p8, %p9572_p5 }
  0x77   : > { %p7970_p9 = por %p7969_p7, %p7968_p4 }
  0x78   : > { %p7964_p1 = pneg %p7963_p12 }
  0x7a   : > { %p7971_p0 = pnand %p7970_p9, %p7964_p1 }
  0x7c   : > { %7974 = shalt.err (!%p7971_p0)
}
  0x7d   : > { %7795 = dma.hbm_to_vmem [thread:$0]  (!%p9570_p10), %s9569_s5, 64, %s288_s21, [#allocation12]  }
  0x7e   : > { %s9573_s1 = sshll.u32 %s8191_s28, 10  ;;  %s9574_s0 = sld [smem:[#allocation27_spill]] }
  0x7f   : > { %s9575_s10 = sshll.u32 %s8340_s19, 6  ;;  %s7100_s9 = sshll.u32 %s8340_s19, 2 }
  0x80   : > { %s302_s17 = scalar_lea.vmem [#allocation2], %s9575_s10  ;;  %s299_s13 = scalar_lea.sflag [#allocation3], %s8340_s19 }
  0x81   : > { %s311_s15 = sshll.u32 %s302_s17, 4  ;;  %p9576_p9 = scmp.ne.s32.totalorder %s9568_s16, 0  ;;  %s8474_s15 = int_to_ptr.vmem [resolvable:$true] %s311_s15 }
  0x84   : > { %s8469_s22 = scalar_lea.hbm %s9574_s0, %s9573_s1  ;;  %s7980_s1 = scalar_lea.hbm %s9574_s0, 2048 }
  0x85   : > { %s7975_s23 = scalar_lea.hbm %s8469_s22, 1024  ;;  %p7981_p13 = scmp.lt.u32.totalorder %s8469_s22, %s9574_s0 }
  0x86   : > { %p7976_p7 = scmp.ne.s32.totalorder %s8469_s22, %s7975_s23  ;;  %p7982_p6 = scmp.lt.u32.totalorder %s7980_s1, %s7975_s23 }
  0x87   : > { %p7984_p3 = scmp.lt.u32.totalorder %s7975_s23, %s8469_s22 }
  0x88   : > { %p7978_p2 = pnand %p7976_p7, %p9576_p9  ;;  %p7983_p11 = por %p7982_p6, %p7981_p13 }
  0x8a   : > { %p7979_p10 = pneg %p7978_p2  ;;  %p7985_p8 = por %p7984_p3, %p7983_p11 }
  0x8c   : > { %p7986_p5 = pnand %p7985_p8, %p7979_p10 }
  0x8e   : > { %7989 = shalt.err (!%p7986_p5)
}
  0x8f   : > { %s7990_s10 = scalar_lea.vmem %s8474_s15, 1024  ;;  %s8204_s17 = smov [#allocation2]  }
  0x90   : > { %p7991_p12 = scmp.ne.s32.totalorder %s8474_s15, %s7990_s10  ;;  %s7995_s21 = sshll.u32 %s8204_s17, 4  ;;  %s7996_s21 = int_to_ptr.vmem [resolvable:$false] %s7995_s21 }
  0x91   : > { %s7997_s4 = scalar_lea.vmem %s7996_s21, 2048  ;;  %p7998_p0 = scmp.lt.s32.totalorder %s8474_s15, %s7996_s21 }
  0x92   : > { %p7993_p1 = pnand %p7991_p12, %p9576_p9  ;;  %p7999_p7 = scmp.lt.s32.totalorder %s7997_s4, %s7990_s10 }
  0x94   : > { %p7994_p4 = pneg %p7993_p1  ;;  %p8000_p2 = por %p7999_p7, %p7998_p0 }
  0x96   : > { %p8001_p13 = pnand %p8000_p2, %p7994_p4 }
  0x98   : > { %8004 = shalt.err (!%p8001_p13)
}
  0x99   : > { %p9577_p10 = scmp.ne.s32.totalorder %s9564_s24, 0  ;;  %s9578_s23 = smov 128  }
  0x9a   : > { %s7101_s18 = sshll.u32 %s8191_s28, 6  ;;  %s348_s1 = scalar_lea.vmem [#allocation7], %s7100_s9 }
  0x9b   : > { %7799 = dma.hbm_to_vmem [thread:$0]  (!%p9577_p10), %s8469_s22, 1024, %s8474_s15, %s299_s13, %s9578_s23, %s9578_s23, %s8203_s8  }
  0x9c   : > { %s356_s20 = sshll.u32 %s348_s1, 4  ;;  %s354_s21 = scalar_lea.hbm %s9520_s2, %s7101_s18  ;;  %s357_s20 = int_to_ptr.vmem [resolvable:$true] %s356_s20 }
  0x9d   : > { %s8005_s4 = scalar_lea.hbm %s354_s21, 64  ;;  %s8010_s6 = scalar_lea.hbm %s9520_s2, 128 }
  0x9e   : > { %p8006_p6 = scmp.ne.s32.totalorder %s354_s21, %s8005_s4  ;;  %p8011_p8 = scmp.lt.u32.totalorder %s354_s21, %s9520_s2 }
  0x9f   : > { %p8012_p5 = scmp.lt.u32.totalorder %s8010_s6, %s8005_s4  ;;  %p8014_p1 = scmp.lt.u32.totalorder %s8005_s4, %s354_s21 }
  0xa0   : > { %p8008_p11 = pnand %p8006_p6, %p9576_p9 }
  0xa1   : > { %p8013_p12 = por %p8012_p5, %p8011_p8 }
  0xa2   : > { %p8009_p3 = pneg %p8008_p11 }
  0xa3   : > { %p8015_p4 = por %p8014_p1, %p8013_p12 }
  0xa5   : > { %p8016_p0 = pnand %p8015_p4, %p8009_p3 }
  0xa7   : > { %8019 = shalt.err (!%p8016_p0)
}
  0xa8   : > { %s8020_s15 = scalar_lea.vmem %s357_s20, 64  ;;  %s8205_s13 = smov [#allocation7]  }
  0xa9   : > { %p8021_p7 = scmp.ne.s32.totalorder %s357_s20, %s8020_s15  ;;  %s8025_s23 = sshll.u32 %s8205_s13, 4  ;;  %s8026_s23 = int_to_ptr.vmem [resolvable:$false] %s8025_s23 }
  0xaa   : > { %s8027_s0 = scalar_lea.vmem %s8026_s23, 128  ;;  %p8028_p6 = scmp.lt.s32.totalorder %s357_s20, %s8026_s23 }
  0xab   : > { %p8023_p2 = pnand %p8021_p7, %p9576_p9  ;;  %p8029_p11 = scmp.lt.s32.totalorder %s8027_s0, %s8020_s15 }
  0xad   : > { %p8024_p13 = pneg %p8023_p2  ;;  %p8030_p10 = por %p8029_p11, %p8028_p6 }
  0xaf   : > { %p8031_p5 = pnand %p8030_p10, %p8024_p13 }
  0xb1   : > { %8034 = shalt.err (!%p8031_p5)
}
  0xb2   : > { %p9579_p8 = scmp.ne.s32.totalorder %s9564_s24, 0  ;;  %s8529_s1 = scalar_lea.hbm %s9521_s3, %s7101_s18 }
  0xb3   : > { %s367_s10 = scalar_lea.vmem [#allocation8], %s7100_s9  ;;  %s9580_s4 = sand.u32 1, %s8195_s29  }
  0xb4   : > { %7805 = dma.hbm_to_vmem [thread:$0]  (!%p9579_p8), %s354_s21, 64, %s357_s20, %s8410_s7  }
  0xb5   : > { %s375_s17 = sshll.u32 %s367_s10, 4  ;;  %s364_s8 = scalar_lea.sflag [#allocation9], %s9580_s4  ;;  %s376_s17 = int_to_ptr.vmem [resolvable:$true] %s375_s17 }
  0xb6   : > { %s8035_s22 = scalar_lea.hbm %s8529_s1, 64  ;;  %s8040_s18 = scalar_lea.hbm %s9521_s3, 128 }
  0xb7   : > { %p8036_p10 = scmp.ne.s32.totalorder %s8529_s1, %s8035_s22  ;;  %p8041_p1 = scmp.lt.u32.totalorder %s8529_s1, %s9521_s3 }
  0xb8   : > { %p8042_p4 = scmp.lt.u32.totalorder %s8040_s18, %s8035_s22  ;;  %p8044_p7 = scmp.lt.u32.totalorder %s8035_s22, %s8529_s1 }
  0xb9   : > { %p8038_p3 = pnand %p8036_p10, %p9576_p9 }
  0xba   : > { %p8043_p0 = por %p8042_p4, %p8041_p1 }
  0xbb   : > { %p8039_p12 = pneg %p8038_p3 }
  0xbc   : > { %p8045_p2 = por %p8044_p7, %p8043_p0 }
  0xbe   : > { %p8046_p13 = pnand %p8045_p2, %p8039_p12 }
  0xc0   : > { %8049 = shalt.err (!%p8046_p13)
}
  0xc1   : > { %s8050_s9 = scalar_lea.vmem %s376_s17, 64  ;;  %s8206_s15 = smov [#allocation8]  }
  0xc2   : > { %p8051_p6 = scmp.ne.s32.totalorder %s376_s17, %s8050_s9  ;;  %s8055_s13 = sshll.u32 %s8206_s15, 4  ;;  %s8056_s13 = int_to_ptr.vmem [resolvable:$false] %s8055_s13 }
  0xc3   : > { %s8057_s23 = scalar_lea.vmem %s8056_s13, 128  ;;  %p8058_p10 = scmp.lt.s32.totalorder %s376_s17, %s8056_s13 }
  0xc4   : > { %p8053_p11 = pnand %p8051_p6, %p9576_p9  ;;  %p8059_p3 = scmp.lt.s32.totalorder %s8057_s23, %s8050_s9 }
  0xc6   : > { %p8054_p5 = pneg %p8053_p11  ;;  %p8060_p8 = por %p8059_p3, %p8058_p10 }
  0xc8   : > { %p8061_p1 = pnand %p8060_p8, %p8054_p5 }
  0xca   : > { %8064 = shalt.err (!%p8061_p1)
}
  0xcb   : > { %p9581_p4 = scmp.ne.s32.totalorder %s9564_s24, 0  ;;  %p9582_p12 = scmp.ne.s32.totalorder %s9558_s14, 0 }
  0xcc   : > { %s8555_s16 = sand.u32 (!%p9582_p12), 1, %s8179_s25   ;;  %p9583_p9 = scmp.ne.s32.totalorder (!%p9582_p12), %s9554_s11, 0 }
  0xcd   : > { %7808 = dma.hbm_to_vmem [thread:$0]  (!%p9581_p4), %s8529_s1, 64, %s376_s17, %s364_s8  }
  0xce   : > { %384 = sbr.rel (%p9582_p12) target bundleno = 903 (0x387), region = 44  ;;  %s7105_s0 = sshll.u32 (!%p9582_p12), %s8555_s16, 6 }
  0xcf   : > { %s387_s5 = scalar_lea.sflag (!%p9582_p12), [#allocation3], %s8555_s16  ;;  %s8559_s6 = scalar_lea.vmem (!%p9582_p12), [#allocation2], %s7105_s0 }
  0xd5   : > { %8146 = dma.done.wait (%p9583_p9), %s387_s5, 1024  }
  0xd6   : > { %8148 = vsyncadd (%p9583_p9), %s387_s5, 4294966272  ;;  %s395_s24 = sand.u32 1, %s8291_s30   ;;  %s8566_s1 = scalar_lea.vmem [#allocation5], %s7105_s0 }
  0xd7   : > { %s396_s14 = scalar_lea.sflag [#allocation6], %s395_s24 }
  0xd8   : > { %8150 = dma.done.wait (%p9583_p9), %s396_s14, 1088  }
  0xd9   : > { %8152 = vsyncadd (%p9583_p9), %s396_s14, 4294966208  ;;  %s8573_s10 = sshll.u32 %s8555_s16, 2  ;;  %s414_s4 = scalar_lea.sflag [#allocation9], %s395_s24 }
  0xda   : > { %s408_s17 = scalar_lea.vmem [#allocation7], %s8573_s10  ;;  %s417_s8 = scalar_lea.vmem [#allocation8], %s8573_s10 }
  0xdb   : > { %8154 = dma.done.wait (%p9583_p9), %s414_s4, 64  }
  0xdc   : > { %8156 = vsyncadd (%p9583_p9), %s414_s4, 4294967232  ;;  %p9584_p8 = scmp.eq.s32.totalorder %s8291_s30, 0 }
  0xde   : > { %8158 = dma.done.wait (%p9584_p8), [#allocation9], 576   ;;  %p9585_p0 = pmov %p9584_p8 }
  0xe0   : > { %8160 = vsyncadd (%p9585_p0), [#allocation9], 4294966720  ;;  %p9586_p7 = pmov %p9585_p0 }
  0xe1   : > { %p9587_p2 = pmov %p9585_p0 }
  0xe2   : > { %8162 = dma.done.wait (%p9586_p7), [#allocation12], 64  }
  0xe3   : > { %8164 = vsyncadd (%p9587_p2), [#allocation12], 4294967232  ;;  %v8207_v0 = vmov 0.0   ;;  %vm8208_vm0 = vmmov 0   ;;  %vm495_vm1 = vcmask 1041409   ;;  %vm498_vm2 = vcmask 1042434  }
  0xe4   : > { %7409 = vmatprep.subr.mxu0 %v8207_v0  ;;  %7411 = vmatprep.mubr.msk.f32.mxu0 %vm8208_vm0, %v8207_v0  ;;  %vm501_vm3 = vcmask 1043459   ;;  %v479_v1 = vld [vmem:[%s8559_s6] sm:$0x1]  ;;  %v480_v2 = vld [vmem:[%s8559_s6 + $0x10] sm:$0x1]  ;;  %vm507_vm4 = vcmask 1043456  }
  0xe5   : > { %7414 = vmatprep.subr.mxu1 %v8207_v0  ;;  %7416 = vmatprep.mubr.msk.f32.mxu1 %vm8208_vm0, %v8207_v0  ;;  %v481_v3 = vld [vmem:[%s8559_s6 + $0x20] sm:$0x1]  ;;  %v482_v4 = vld [vmem:[%s8559_s6 + $0x30] sm:$0x1]  ;;  %v584_v5 = vrot.slane %v480_v2, 7  ;;  %s8209_s30 = smov 127  }
  0xe6   : > { %v586_v6 = vrot.slane %v481_v3, 6  ;;  %v745_v7 = vld [vmem:[%s8559_s6 + $0x1] sm:$0x1]  ;;  %v588_v8 = vrot.slane %v482_v4, 5  ;;  %v746_v9 = vld [vmem:[%s8559_s6 + $0x11] sm:$0x1] }
  0xe7   : > { %v747_v10 = vld [vmem:[%s8559_s6 + $0x21] sm:$0x1]  ;;  %v585_v11 = vsel %vm495_vm1, %v584_v5, %v479_v1  ;;  %v748_v12 = vld [vmem:[%s8559_s6 + $0x31] sm:$0x1]  ;;  %v759_v13 = vrot.slane %v746_v9, 7  ;;  %vm503_vm5 = vcmask 31744  }
  0xe8   : > { %v761_v14 = vrot.slane %v747_v10, 6  ;;  %v1009_v15 = vld [vmem:[%s8559_s6 + $0x2] sm:$0x1]  ;;  %v587_v16 = vsel %vm498_vm2, %v586_v6, %v585_v11  ;;  %v763_v17 = vrot.slane %v748_v12, 5  ;;  %v1010_v18 = vld [vmem:[%s8559_s6 + $0x12] sm:$0x1] }
  0xe9   : > { %v1011_v19 = vld [vmem:[%s8559_s6 + $0x22] sm:$0x1]  ;;  %v589_v20 = vsel %vm501_vm3, %v588_v8, %v587_v16  ;;  %v760_v21 = vsel %vm495_vm1, %v759_v13, %v745_v7  ;;  %v1012_v22 = vld [vmem:[%s8559_s6 + $0x32] sm:$0x1]  ;;  %v1023_v23 = vrot.slane %v1010_v18, 7  ;;  %vm1279_vm6 = vcmask 60416  }
  0xea   : > { %v1025_v24 = vrot.slane %v1011_v19, 6  ;;  %v1290_v25 = vld [vmem:[%s8559_s6 + $0x2] sm:$0x1]  ;;  %667 = vrot.lane.b32.xlu0 %v589_v20, %s8209_s30  ;;  %v762_v26 = vsel %vm498_vm2, %v761_v14, %v760_v21  ;;  %v1027_v27 = vrot.slane %v1012_v22, 5  ;;  %v1291_v28 = vld [vmem:[%s8559_s6 + $0x12] sm:$0x1]  ;;  %7415 = vmatpush3.msk.msra.mxu1 %vm507_vm4, %v589_v20 }
  0xeb   : > { %v1292_v29 = vld [vmem:[%s8559_s6 + $0x22] sm:$0x1]  ;;  %v8618_v30 = vsel %vm501_vm3, %v763_v17, %v762_v26  ;;  %v1024_v31 = vsel %vm495_vm1, %v1023_v23, %v1009_v15  ;;  %v1293_v32 = vld [vmem:[%s8559_s6 + $0x32] sm:$0x1]  ;;  %v1389_v33 = vrot.slane %v1291_v28, 7  ;;  %7424 = vmatprep.subr.mxu1 %v8207_v0  ;;  %s9394_s11 = scalar_lea.vmem [#allocation13], %s8573_s10 }
  0xec   : > { %v1391_v34 = vrot.slane %v1292_v29, 6  ;;  %v1549_v35 = vld [vmem:[%s8559_s6 + $0x3] sm:$0x1]  ;;  %v1026_v36 = vsel %vm498_vm2, %v1025_v24, %v1024_v31  ;;  %v1393_v37 = vrot.slane %v1293_v32, 5  ;;  %v1550_v38 = vld [vmem:[%s8559_s6 + $0x13] sm:$0x1] }
  0xed   : > { %v1551_v39 = vld [vmem:[%s8559_s6 + $0x23] sm:$0x1]  ;;  %v8628_v40 = vsel %vm501_vm3, %v1027_v27, %v1026_v36  ;;  %v1390_v41 = vsel %vm495_vm1, %v1389_v33, %v1290_v25  ;;  %v1552_v42 = vld [vmem:[%s8559_s6 + $0x33] sm:$0x1]  ;;  %v1562_v43 = vrot.slane %v1550_v38, 7  ;;  %s8211_s22 = smov 8  }
  0xee   : > { %v1564_v44 = vrot.slane %v1551_v39, 6  ;;  %v1810_v45 = vld [vmem:[%s8559_s6 + $0x4] sm:$0x1]  ;;  %931 = vrot.lane.b32.xlu0 %v8618_v30, %s8209_s30  ;;  %1195 = vrot.lane.b32.xlu1 %v8628_v40, %s8209_s30  ;;  %v1392_v46 = vsel %vm498_vm2, %v1391_v34, %v1390_v41  ;;  %v1566_v47 = vrot.slane %v1552_v42, 5  ;;  %v1811_v48 = vld [vmem:[%s8559_s6 + $0x14] sm:$0x1] }
  0xef   : > { %v1812_v49 = vld [vmem:[%s8559_s6 + $0x24] sm:$0x1]  ;;  %v8641_v50 = vsel %vm501_vm3, %v1393_v37, %v1392_v46  ;;  %v1563_v51 = vsel %vm495_vm1, %v1562_v43, %v1549_v35  ;;  %v1813_v52 = vld [vmem:[%s8559_s6 + $0x34] sm:$0x1]  ;;  %v1823_v53 = vrot.slane %v1811_v48, 7  ;;  %s8212_s7 = smov 16  }
  0xf0   : > { %v1825_v54 = vrot.slane %v1812_v49, 6  ;;  %v2087_v55 = vld [vmem:[%s8559_s6 + $0x4] sm:$0x1]  ;;  %v1565_v56 = vsel %vm498_vm2, %v1564_v44, %v1563_v51  ;;  %v1827_v57 = vrot.slane %v1813_v52, 5  ;;  %v2088_v58 = vld [vmem:[%s8559_s6 + $0x14] sm:$0x1] }
  0xf1   : > { %v2089_v59 = vld [vmem:[%s8559_s6 + $0x24] sm:$0x1]  ;;  %v8650_v60 = vsel %vm501_vm3, %v1566_v47, %v1565_v56  ;;  %v1824_v61 = vsel %vm495_vm1, %v1823_v53, %v1810_v45  ;;  %v2090_v62 = vld [vmem:[%s8559_s6 + $0x34] sm:$0x1]  ;;  %v2186_v63 = vrot.slane %v2088_v58, 7  ;;  %s8213_s20 = smov 24  }
  0xf2   : > { %v2188_v1 = vrot.slane %v2089_v59, 6  ;;  %v2346_v2 = vld [vmem:[%s8559_s6 + $0x5] sm:$0x1]  ;;  %1471 = vrot.lane.b32.xlu1 %v8641_v50, %s8209_s30  ;;  %1732 = vrot.lane.b32.xlu0 %v8650_v60, %s8209_s30  ;;  %v1826_v3 = vsel %vm498_vm2, %v1825_v54, %v1824_v61  ;;  %v2190_v4 = vrot.slane %v2090_v62, 5  ;;  %v2347_v5 = vld [vmem:[%s8559_s6 + $0x15] sm:$0x1] }
  0xf3   : > { %v2348_v6 = vld [vmem:[%s8559_s6 + $0x25] sm:$0x1]  ;;  %v8663_v7 = vsel %vm501_vm3, %v1827_v57, %v1826_v3  ;;  %v2187_v8 = vsel %vm495_vm1, %v2186_v63, %v2087_v55  ;;  %v2349_v9 = vld [vmem:[%s8559_s6 + $0x35] sm:$0x1]  ;;  %v2359_v10 = vrot.slane %v2347_v5, 7  ;;  %s8214_s18 = smov 32  }
  0xf4   : > { %v2361_v11 = vrot.slane %v2348_v6, 6  ;;  %v2607_v12 = vld [vmem:[%s8559_s6 + $0x6] sm:$0x1]  ;;  %v2189_v13 = vsel %vm498_vm2, %v2188_v1, %v2187_v8  ;;  %v2363_v14 = vrot.slane %v2349_v9, 5  ;;  %v2608_v15 = vld [vmem:[%s8559_s6 + $0x16] sm:$0x1] }
  0xf5   : > { %v2609_v16 = vld [vmem:[%s8559_s6 + $0x26] sm:$0x1]  ;;  %v8672_v17 = vsel %vm501_vm3, %v2190_v4, %v2189_v13  ;;  %v2360_v18 = vsel %vm495_vm1, %v2359_v10, %v2346_v2  ;;  %v2610_v19 = vld [vmem:[%s8559_s6 + $0x36] sm:$0x1]  ;;  %v2620_v20 = vrot.slane %v2608_v15, 7  ;;  %s8215_s21 = smov 40  }
  0xf6   : > { %v2622_v21 = vrot.slane %v2609_v16, 6  ;;  %v2884_v22 = vld [vmem:[%s8559_s6 + $0x6] sm:$0x1]  ;;  %1993 = vrot.lane.b32.xlu1 %v8663_v7, %s8209_s30  ;;  %2268 = vrot.lane.b32.xlu0 %v8672_v17, %s8209_s30  ;;  %v2362_v23 = vsel %vm498_vm2, %v2361_v11, %v2360_v18  ;;  %v2624_v24 = vrot.slane %v2610_v19, 5  ;;  %v2885_v25 = vld [vmem:[%s8559_s6 + $0x16] sm:$0x1] }
  0xf7   : > { %v2886_v26 = vld [vmem:[%s8559_s6 + $0x26] sm:$0x1]  ;;  %v8685_v27 = vsel %vm501_vm3, %v2363_v14, %v2362_v23  ;;  %v2621_v28 = vsel %vm495_vm1, %v2620_v20, %v2607_v12  ;;  %v2887_v29 = vld [vmem:[%s8559_s6 + $0x36] sm:$0x1]  ;;  %v2983_v31 = vrot.slane %v2885_v25, 7  ;;  %vm2076_vm7 = vcmask 126016  }
  0xf8   : > { %v2985_v32 = vrot.slane %v2886_v26, 6  ;;  %v3143_v33 = vld [vmem:[%s8559_s6 + $0x7] sm:$0x1]  ;;  %v2623_v34 = vsel %vm498_vm2, %v2622_v21, %v2621_v28  ;;  %v2987_v35 = vrot.slane %v2887_v29, 5  ;;  %v3144_v36 = vld [vmem:[%s8559_s6 + $0x17] sm:$0x1] }
  0xf9   : > { %v3145_v37 = vld [vmem:[%s8559_s6 + $0x27] sm:$0x1]  ;;  %v8694_v38 = vsel %vm501_vm3, %v2624_v24, %v2623_v34  ;;  %v2984_v39 = vsel %vm495_vm1, %v2983_v31, %v2884_v22  ;;  %v3146_v41 = vld [vmem:[%s8559_s6 + $0x37] sm:$0x1]  ;;  %v3156_v42 = vrot.slane %v3144_v36, 7  ;;  %s8216_s19 = smov 56  }
  0xfa   : > { %v3158_v43 = vrot.slane %v3145_v37, 6  ;;  %v3404_v44 = vld [vmem:[%s8559_s6 + $0x8] sm:$0x1]  ;;  %2529 = vrot.lane.b32.xlu1 %v8685_v27, %s8209_s30  ;;  %2790 = vrot.lane.b32.xlu0 %v8694_v38, %s8209_s30  ;;  %v2986_v45 = vsel %vm498_vm2, %v2985_v32, %v2984_v39  ;;  %v3160_v46 = vrot.slane %v3146_v41, 5  ;;  %v3405_v47 = vld [vmem:[%s8559_s6 + $0x18] sm:$0x1] }
  0xfb   : > { %v3406_v48 = vld [vmem:[%s8559_s6 + $0x28] sm:$0x1]  ;;  %v8707_v49 = vsel %vm501_vm3, %v2987_v35, %v2986_v45  ;;  %v3157_v51 = vsel %vm495_vm1, %v3156_v42, %v3143_v33  ;;  %v3407_v52 = vld [vmem:[%s8559_s6 + $0x38] sm:$0x1]  ;;  %v3417_v53 = vrot.slane %v3405_v47, 7  ;;  %s8217_s9 = smov 48  }
  0xfc   : > { %v3419_v54 = vrot.slane %v3406_v48, 6  ;;  %v3681_v55 = vld [vmem:[%s8559_s6 + $0x8] sm:$0x1]  ;;  %v3159_v56 = vsel %vm498_vm2, %v3158_v43, %v3157_v51  ;;  %v3421_v57 = vrot.slane %v3407_v52, 5  ;;  %v3682_v58 = vld [vmem:[%s8559_s6 + $0x18] sm:$0x1] }
  0xfd   : > { %v3683_v59 = vld [vmem:[%s8559_s6 + $0x28] sm:$0x1]  ;;  %v8716_v61 = vsel %vm501_vm3, %v3160_v46, %v3159_v56  ;;  %v3418_v62 = vsel %vm495_vm1, %v3417_v53, %v3404_v44  ;;  %v3684_v63 = vld [vmem:[%s8559_s6 + $0x38] sm:$0x1]  ;;  %v3780_v1 = vrot.slane %v3682_v58, 7  ;;  %vm2873_vm8 = vcmask 191616  }
  0xfe   : > { %v3782_v2 = vrot.slane %v3683_v59, 6  ;;  %v3940_v3 = vld [vmem:[%s8559_s6 + $0x9] sm:$0x1]  ;;  %3065 = vrot.lane.b32.xlu1 %v8707_v49, %s8209_s30  ;;  %3326 = vrot.lane.b32.xlu0 %v8716_v61, %s8209_s30  ;;  %v3420_v4 = vsel %vm498_vm2, %v3419_v54, %v3418_v62  ;;  %v3784_v5 = vrot.slane %v3684_v63, 5  ;;  %v3941_v6 = vld [vmem:[%s8559_s6 + $0x19] sm:$0x1] }
  0xff   : > { %v3942_v8 = vld [vmem:[%s8559_s6 + $0x29] sm:$0x1]  ;;  %v8729_v9 = vsel %vm501_vm3, %v3421_v57, %v3420_v4  ;;  %v3781_v10 = vsel %vm495_vm1, %v3780_v1, %v3681_v55  ;;  %v3943_v11 = vld [vmem:[%s8559_s6 + $0x39] sm:$0x1]  ;;  %v3953_v12 = vrot.slane %v3941_v6, 7  ;;  %vm3670_vm9 = vcmask 257216  }
 0x100   : > { %v3955_v13 = vrot.slane %v3942_v8, 6  ;;  %v4201_v14 = vld [vmem:[%s8559_s6 + $0xa] sm:$0x1]  ;;  %v3783_v15 = vsel %vm498_vm2, %v3782_v2, %v3781_v10  ;;  %v3957_v16 = vrot.slane %v3943_v11, 5  ;;  %v4202_v18 = vld [vmem:[%s8559_s6 + $0x1a] sm:$0x1] }
 0x101   : > { %v4203_v19 = vld [vmem:[%s8559_s6 + $0x2a] sm:$0x1]  ;;  %v8738_v20 = vsel %vm501_vm3, %v3784_v5, %v3783_v15  ;;  %v3954_v21 = vsel %vm495_vm1, %v3953_v12, %v3940_v3  ;;  %v4204_v22 = vld [vmem:[%s8559_s6 + $0x3a] sm:$0x1]  ;;  %v4214_v23 = vrot.slane %v4202_v18, 7  ;;  %vm4467_vm10 = vcmask 322816  }
 0x102   : > { %v4216_v24 = vrot.slane %v4203_v19, 6  ;;  %v4478_v25 = vld [vmem:[%s8559_s6 + $0xa] sm:$0x1]  ;;  %3587 = vrot.lane.b32.xlu1 %v8729_v9, %s8209_s30  ;;  %3862 = vrot.lane.b32.xlu0 %v8738_v20, %s8209_s30  ;;  %v3956_v26 = vsel %vm498_vm2, %v3955_v13, %v3954_v21  ;;  %v4218_v28 = vrot.slane %v4204_v22, 5  ;;  %v4479_v29 = vld [vmem:[%s8559_s6 + $0x1a] sm:$0x1] }
 0x103   : > { %v4480_v31 = vld [vmem:[%s8559_s6 + $0x2a] sm:$0x1]  ;;  %v8751_v32 = vsel %vm501_vm3, %v3957_v16, %v3956_v26  ;;  %v4215_v33 = vsel %vm495_vm1, %v4214_v23, %v4201_v14  ;;  %v4481_v34 = vld [vmem:[%s8559_s6 + $0x3a] sm:$0x1]  ;;  %v4577_v35 = vrot.slane %v4479_v29, 7  ;;  %vm5264_vm11 = vcmask 388416  }
 0x104   : > { %v4579_v36 = vrot.slane %v4480_v31, 6  ;;  %v4737_v37 = vld [vmem:[%s8559_s6 + $0xb] sm:$0x1]  ;;  %v4217_v39 = vsel %vm498_vm2, %v4216_v24, %v4215_v33  ;;  %v4581_v41 = vrot.slane %v4481_v34, 5  ;;  %v4738_v42 = vld [vmem:[%s8559_s6 + $0x1b] sm:$0x1] }
 0x105   : > { %v4739_v43 = vld [vmem:[%s8559_s6 + $0x2b] sm:$0x1]  ;;  %v8760_v44 = vsel %vm501_vm3, %v4218_v28, %v4217_v39  ;;  %v4578_v45 = vsel %vm495_vm1, %v4577_v35, %v4478_v25  ;;  %v4740_v46 = vld [vmem:[%s8559_s6 + $0x3b] sm:$0x1]  ;;  %v4750_v47 = vrot.slane %v4738_v42, 7  ;;  %s7259_s15 = sshll.u32 %s8187_s27, 6 }
 0x106   : > { %v4752_v48 = vrot.slane %v4739_v43, 6  ;;  %v4998_v51 = vld [vmem:[%s8559_s6 + $0xc] sm:$0x1]  ;;  %4123 = vrot.lane.b32.xlu1 %v8751_v32, %s8209_s30  ;;  %4384 = vrot.lane.b32.xlu0 %v8760_v44, %s8209_s30  ;;  %v4580_v52 = vsel %vm498_vm2, %v4579_v36, %v4578_v45  ;;  %v4754_v53 = vrot.slane %v4740_v46, 5  ;;  %v4999_v54 = vld [vmem:[%s8559_s6 + $0x1c] sm:$0x1] }
 0x107   : > { %v5000_v55 = vld [vmem:[%s8559_s6 + $0x2c] sm:$0x1]  ;;  %v8773_v56 = vsel %vm501_vm3, %v4581_v41, %v4580_v52  ;;  %v4751_v57 = vsel %vm495_vm1, %v4750_v47, %v4737_v37  ;;  %v5001_v58 = vld [vmem:[%s8559_s6 + $0x3c] sm:$0x1]  ;;  %v5011_v59 = vrot.slane %v4999_v54, 7  ;;  %s6869_s13 = sshll.u32 %s9394_s11, 4  ;;  %s9436_s13 = int_to_ptr.vmem [resolvable:$true] %s6869_s13 }
 0x108   : > { %v5013_v62 = vrot.slane %v5000_v55, 6  ;;  %v5275_v63 = vld [vmem:[%s8559_s6 + $0xc] sm:$0x1]  ;;  %v4753_v1 = vsel %vm498_vm2, %v4752_v48, %v4751_v57  ;;  %v5015_v2 = vrot.slane %v5001_v58, 5  ;;  %v5276_v3 = vld [vmem:[%s8559_s6 + $0x1c] sm:$0x1] }
 0x109   : > { %v5277_v4 = vld [vmem:[%s8559_s6 + $0x2c] sm:$0x1]  ;;  %v8782_v5 = vsel %vm501_vm3, %v4754_v53, %v4753_v1  ;;  %v5012_v6 = vsel %vm495_vm1, %v5011_v59, %v4998_v51  ;;  %v5278_v8 = vld [vmem:[%s8559_s6 + $0x3c] sm:$0x1]  ;;  %v5374_v10 = vrot.slane %v5276_v3, 7  ;;  %vm6061_vm12 = vcmask 454016  }
 0x10a   : > { %v5376_v11 = vrot.slane %v5277_v4, 6  ;;  %v483_v12 = vld [vmem:[%s8566_s1] sm:$0x1]  ;;  %4659 = vrot.lane.b32.xlu1 %v8773_v56, %s8209_s30  ;;  %4920 = vrot.lane.b32.xlu0 %v8782_v5, %s8209_s30  ;;  %v5014_v13 = vsel %vm498_vm2, %v5013_v62, %v5012_v6  ;;  %v5378_v14 = vrot.slane %v5278_v8, 5  ;;  %v484_v15 = vld [vmem:[%s8566_s1 + $0x10] sm:$0x1] }
 0x10b   : > { %v485_v16 = vld [vmem:[%s8566_s1 + $0x20] sm:$0x1]  ;;  %v8795_v18 = vsel %vm501_vm3, %v5015_v2, %v5014_v13  ;;  %v5375_v19 = vsel %vm495_vm1, %v5374_v10, %v5275_v63  ;;  %v486_v21 = vld [vmem:[%s8566_s1 + $0x30] sm:$0x1]  ;;  %v494_v22 = vrot.slane %v484_v15, 7  ;;  %vm6834_vm13 = vcmask 519616  }
 0x10c   : > { %v497_v23 = vrot.slane %v485_v16, 6  ;;  %v5377_v24 = vsel %vm498_vm2, %v5376_v11, %v5375_v19  ;;  %v500_v25 = vrot.slane %v486_v21, 5  ;;  %v5534_v26 = vld [vmem:[%s8559_s6 + $0xd] sm:$0x1]  ;;  %v5535_v28 = vld [vmem:[%s8559_s6 + $0x1d] sm:$0x1] }
 0x10d   : > { %v8803_v29 = vsel %vm501_vm3, %v5378_v14, %v5377_v24  ;;  %v496_v31 = vsel %vm495_vm1, %v494_v22, %v483_v12  ;;  %v5536_v33 = vld [vmem:[%s8559_s6 + $0x2d] sm:$0x1]  ;;  %v5537_v34 = vld [vmem:[%s8559_s6 + $0x3d] sm:$0x1]  ;;  %v5547_v35 = vrot.slane %v5535_v28, 7  ;;  %v8210_v28 = vmov 0  }
 0x10e   : > { %5181 = vrot.lane.b32.xlu1 %v8795_v18, %s8209_s30  ;;  %5456 = vrot.lane.b32.xlu0 %v8803_v29, %s8209_s30  ;;  %v499_v36 = vsel %vm498_vm2, %v497_v23, %v496_v31  ;;  %v489_v37 = vld [vmem:[#allocation10 + $0x4] sm:$0xf]  ;;  %v5549_v39 = vrot.slane %v5536_v33, 6  ;;  %v5551_v41 = vrot.slane %v5537_v34, 5  ;;  %v487_v42 = vld [vmem:[#allocation10] sm:$0xf] }
 0x10f   : > { %v502_v43 = vsel %vm501_vm3, %v500_v25, %v499_v36  ;;  %v5548_v45 = vsel %vm495_vm1, %v5547_v35, %v5534_v26  ;;  %7417 = vmatmul.mubr.msk.f32.vlgmr.msra.gmra.mrb[0].mxu1 %vm503_vm5, %v487_v42  ;;  %v754_v48 = vld [vmem:[#allocation10 + $0xc] sm:$0xf]  ;;  %v5795_v51 = vld [vmem:[%s8559_s6 + $0xe] sm:$0x1]  ;;  %v6331_v13 = vld [vmem:[%s8559_s6 + $0xf] sm:$0x1]  ;;  %7887 = vset.pattern.permute.xlu0 %v8210_v28 }
 0x110   : > { %7410 = vmatpush3.msk.msra.mxu0 %vm507_vm4, %v502_v43  ;;  %v5550_v46 = vsel %vm498_vm2, %v5549_v39, %v5548_v45  ;;  %7425 = vmatpush3.msk.msra.mxu1 %vm507_vm4, %v8618_v30  ;;  %v5796_v52 = vld [vmem:[%s8559_s6 + $0x1e] sm:$0x1]  ;;  %v5797_v30 = vld [vmem:[%s8559_s6 + $0x2e] sm:$0x1]  ;;  %v6332_v14 = vld [vmem:[%s8559_s6 + $0x1f] sm:$0x1] }
 0x111   : > { %7412 = vmatmul.mubr.msk.f32.vlgmr.msra.gmra.mrb[0].mxu0 %vm503_vm5, %v489_v37  ;;  %v8822_v47 = vsel %vm501_vm3, %v5551_v41, %v5550_v46  ;;  %7419 = vmatprep.subr.mxu0 %v8207_v0  ;;  %v5798_v53 = vld [vmem:[%s8559_s6 + $0x3e] sm:$0x1]  ;;  %v5808_v54 = vrot.slane %v5796_v52, 7  ;;  %v5810_v55 = vrot.slane %v5797_v30, 6  ;;  %v6072_v63 = vld [vmem:[%s8559_s6 + $0xe] sm:$0x1] }
 0x112   : > { %5717 = vrot.lane.b32.xlu1 %v8822_v47, %s8209_s30  ;;  %7421 = vmatprep.mubr.msk.f32.mxu0 %vm8208_vm0, %v8207_v0  ;;  %v5812_v57 = vrot.slane %v5798_v53, 5  ;;  %v6073_v1 = vld [vmem:[%s8559_s6 + $0x1e] sm:$0x1]  ;;  %v6074_v2 = vld [vmem:[%s8559_s6 + $0x2e] sm:$0x1]  ;;  %v6344_v19 = vrot.slane %v6332_v14, 7 }
 0x113   : > { %7426 = vmatprep.mubr.msk.f32.mxu1 %vm8208_vm0, %v8207_v0  ;;  %7434 = vmatprep.subr.mxu1 %v8207_v0  ;;  %v5809_v58 = vsel %vm495_vm1, %v5808_v54, %v5795_v51  ;;  %v6075_v3 = vld [vmem:[%s8559_s6 + $0x3e] sm:$0x1]  ;;  %v6171_v4 = vrot.slane %v6073_v1, 7  ;;  %v6173_v6 = vrot.slane %v6074_v2, 6  ;;  %v6333_v15 = vld [vmem:[%s8559_s6 + $0x2f] sm:$0x1] }
 0x114   : > { %7427 = vmatmul.mubr.msk.f32.vlgmr.msra.gmra.mrb[2].mxu1 %vm503_vm5, %v754_v48  ;;  %v5811_v59 = vsel %vm498_vm2, %v5810_v55, %v5809_v58  ;;  %v6175_v8 = vrot.slane %v6075_v3, 5  ;;  %v6334_v16 = vld [vmem:[%s8559_s6 + $0x3f] sm:$0x1]  ;;  %v6346_v21 = vrot.slane %v6333_v15, 6  ;;  %v6345_v23 = vsel %vm495_vm1, %v6344_v19, %v6331_v13  ;;  %v6592_v26 = vld [vmem:[%s408_s17] sm:$0xf] }
 0x115   : > { %7436 = vmatprep.mubr.msk.f32.mxu1 %vm8208_vm0, %v8207_v0  ;;  %v8842_v62 = vsel %vm501_vm3, %v5812_v57, %v5811_v59  ;;  %v6172_v10 = vsel %vm495_vm1, %v6171_v4, %v6072_v63  ;;  %v6348_v22 = vrot.slane %v6334_v16, 5  ;;  %v478_v31 = vld [vmem:[#allocation11] sm:$0xf]  ;;  %v750_v33 = vld [vmem:[%s8566_s1 + $0x11] sm:$0x1]  ;;  %s9428_s23 = scalar_lea.vmem [#allocation14], %s8573_s10 }
 0x116   : > { %5978 = vrot.lane.b32.xlu0 %v8842_v62, %s8209_s30  ;;  %v6174_v11 = vsel %vm498_vm2, %v6173_v6, %v6172_v10  ;;  %v6347_v24 = vsel %vm498_vm2, %v6346_v21, %v6345_v23  ;;  %v751_v34 = vld [vmem:[%s8566_s1 + $0x21] sm:$0x1]  ;;  %v847_v35 = vrot.slane %v750_v33, 7  ;;  %v752_v37 = vld [vmem:[%s8566_s1 + $0x31] sm:$0x1]  ;;  %s6883_s0 = sshll.u32 %s9428_s23, 4  ;;  %s9445_s0 = int_to_ptr.vmem [resolvable:$true] %s6883_s0 }
 0x117   : > { %v8853_v12 = vsel %vm501_vm3, %v6175_v8, %v6174_v11  ;;  %v8864_v25 = vsel %vm501_vm3, %v6348_v22, %v6347_v24  ;;  %v749_v36 = vld [vmem:[%s8566_s1 + $0x1] sm:$0x1]  ;;  %v849_v39 = vrot.slane %v751_v34, 6  ;;  %v1014_v41 = vld [vmem:[%s8566_s1 + $0x12] sm:$0x1]  ;;  %v851_v43 = vrot.slane %v752_v37, 5 }
 0x118   : > { %6253 = vrot.lane.b32.xlu1 %v8853_v12, %s8209_s30  ;;  %v848_v42 = vsel %vm495_vm1, %v847_v35, %v749_v36  ;;  %v1015_v45 = vld [vmem:[%s8566_s1 + $0x22] sm:$0x1]  ;;  %v1111_v46 = vrot.slane %v1014_v41, 7  ;;  %v1295_v52 = vld [vmem:[%s8566_s1 + $0x12] sm:$0x1]  ;;  %s9588_s24 = sld [smem:[#allocation31_spill]] }
 0x119   : > { %v850_v48 = vsel %vm498_vm2, %v849_v39, %v848_v42  ;;  %v1013_v51 = vld [vmem:[%s8566_s1 + $0x2] sm:$0x1]  ;;  %v666_v30 = vld [vmem:[#allocation10 + $0x8] sm:$0xf]  ;;  %v1016_v53 = vld [vmem:[%s8566_s1 + $0x32] sm:$0x1] }
 0x11a   : > { %6514 = vrot.lane.b32.xlu0 %v8864_v25, %s8209_s30  ;;  %v1113_v54 = vrot.slane %v1015_v45, 6  ;;  %v852_v57 = vsel %vm501_vm3, %v851_v43, %v850_v48  ;;  %v1112_v58 = vsel %vm495_vm1, %v1111_v46, %v1013_v51  ;;  %v1296_v59 = vld [vmem:[%s8566_s1 + $0x22] sm:$0x1]  ;;  %v1304_v63 = vrot.slane %v1295_v52, 7  ;;  %v930_v4 = vld [vmem:[#allocation10 + $0x14] sm:$0xf] }
 0x11b   : > { %v1294_v1 = vld [vmem:[%s8566_s1 + $0x2] sm:$0x1]  ;;  %v1115_v3 = vrot.slane %v1016_v53, 5  ;;  %v1297_v8 = vld [vmem:[%s8566_s1 + $0x32] sm:$0x1]  ;;  %v1306_v10 = vrot.slane %v1296_v59, 6 }
 0x11c   : > { %6751 = vrot.lane.b32.xlu1 %v6592_v26, %s8209_s30  ;;  %v842_v2 = vld [vmem:[#allocation10 + $0x10] sm:$0xf]  ;;  %v1114_v6 = vsel %vm498_vm2, %v1113_v54, %v1112_v58  ;;  %v1305_v13 = vsel %vm495_vm1, %v1304_v63, %v1294_v1  ;;  %v1554_v14 = vld [vmem:[%s8566_s1 + $0x13] sm:$0x1]  ;;  %v1308_v16 = vrot.slane %v1297_v8, 5  ;;  %vm6845_vm14 = vcmask 3072  }
 0x11d   : > { %v1116_v15 = vsel %vm501_vm3, %v1115_v3, %v1114_v6  ;;  %v1018_v19 = vld [vmem:[#allocation10 + $0x18] sm:$0xf]  ;;  %v1106_v21 = vld [vmem:[#allocation10 + $0x1c] sm:$0xf]  ;;  %v1307_v22 = vsel %vm498_vm2, %v1306_v10, %v1305_v13  ;;  %v1555_v24 = vld [vmem:[%s8566_s1 + $0x23] sm:$0x1] }
 0x11e   : > { %1275 = vperm.xlu0 %7887, %v478_v31   ;;  %v1649_v26 = vrot.slane %v1554_v14, 7  ;;  %v1194_v28 = vld [vmem:[#allocation10 + $0x20] sm:$0xf]  ;;  %v1309_v31 = vsel %vm501_vm3, %v1308_v16, %v1307_v22  ;;  %v1299_v33 = vld [vmem:[#allocation10 + $0x4] sm:$0xf]  ;;  %v1651_v35 = vrot.slane %v1555_v24, 6  ;;  %s9589_s14 = smov %s9588_s24 }
 0x11f   : > { %v1556_v34 = vld [vmem:[%s8566_s1 + $0x33] sm:$0x1]  ;;  %v1815_v36 = vld [vmem:[%s8566_s1 + $0x14] sm:$0x1]  ;;  %v1816_v43 = vld [vmem:[%s8566_s1 + $0x24] sm:$0x1] }
 0x120   : > { %v1298_v41 = vld [vmem:[#allocation10] sm:$0xf]  ;;  %v1653_v42 = vrot.slane %v1556_v34, 5  ;;  %v1910_v45 = vrot.slane %v1815_v36, 7  ;;  %v1470_v46 = vld [vmem:[#allocation10 + $0x8] sm:$0xf] }
 0x121   : > { %v1814_v51 = vld [vmem:[%s8566_s1 + $0x4] sm:$0x1]  ;;  %v2092_v52 = vld [vmem:[%s8566_s1 + $0x14] sm:$0x1]  ;;  %v1557_v58 = vld [vmem:[#allocation10 + $0xc] sm:$0xf] }
 0x122   : > { %v1911_v54 = vsel %vm495_vm1, %v1910_v45, %v1814_v51  ;;  %v1644_v59 = vld [vmem:[#allocation10 + $0x10] sm:$0xf]  ;;  %v2091_v63 = vld [vmem:[%s8566_s1 + $0x4] sm:$0x1]  ;;  %v2094_v3 = vld [vmem:[%s8566_s1 + $0x34] sm:$0x1] }
 0x123   : > { %v1731_v8 = vld [vmem:[#allocation10 + $0x14] sm:$0xf]  ;;  %v1818_v10 = vld [vmem:[#allocation10 + $0x18] sm:$0xf]  ;;  %v2105_v14 = vrot.slane %v2094_v3, 5  ;;  %vm6847_vm15 = vcmask 11272  }
 0x124   : > { %v1905_v22 = vld [vmem:[#allocation10 + $0x1c] sm:$0xf]  ;;  %v2095_v34 = vld [vmem:[#allocation10] sm:$0xf]  ;;  %v2267_v45 = vld [vmem:[#allocation10 + $0x8] sm:$0xf] }
 0x125   : > { %s8065_s30 = scalar_lea.vmem %s9436_s13, 64  ;;  %p9591_p6 = scmp.ne.s32.totalorder %s9555_s12, 0 }
 0x126   : > { %p8066_p13 = scmp.ne.s32.totalorder %s9436_s13, %s8065_s30 }
 0x128   : > { %p8067_p11 = pnand %p8066_p13, %p9591_p6 }
 0x12a   : > { %p8068_p5 = pneg %p8067_p11 }
 0x15c   : > { %v668_v55 = vpop.permute.xlu0 %667 }
 0x15d   : > { %7420 = vmatpush3.msk.msra.mxu0 %vm507_vm4, %v668_v55  ;;  %v2093_v55 = vld [vmem:[%s8566_s1 + $0x24] sm:$0x1] }
 0x15e   : > { %7422 = vmatmul.mubr.msk.f32.vlgmr.msra.gmra.mrb[2].mxu0 %vm503_vm5, %v666_v30  ;;  %7429 = vmatprep.subr.mxu0 %v8207_v0  ;;  %v1912_v30 = vrot.slane %v1816_v43, 6  ;;  %v2889_v43 = vld [vmem:[%s8566_s1 + $0x16] sm:$0x1] }
 0x15f   : > { %7430 = vmatpush3.msk.msra.mxu0 %vm507_vm4, %v852_v57  ;;  %7431 = vmatprep.mubr.msk.f32.mxu0 %vm8208_vm0, %v8207_v0  ;;  %v2101_v57 = vrot.slane %v2092_v52, 7 }
 0x160   : > { %v932_v11 = vpop.permute.xlu0 %931  ;;  %7439 = vmatprep.subr.mxu0 %v8207_v0  ;;  %v1196_v23 = vpop.permute.xlu1 %1195 }
 0x161   : > { %7435 = vmatpush3.msk.msra.mxu1 %vm507_vm4, %v932_v11  ;;  %v2102_v6 = vsel %vm495_vm1, %v2101_v57, %v2091_v63  ;;  %v2351_v11 = vld [vmem:[%s8566_s1 + $0x15] sm:$0x1] }
 0x162   : > { %7432 = vmatmul.mubr.msk.f32.vlgmr.msra.gmra.mrb[4].mxu0 %vm503_vm5, %v842_v2  ;;  %7437 = vmatmul.mubr.msk.f32.vlgmr.msra.gmra.mrb[4].mxu1 %vm503_vm5, %v930_v4  ;;  %v2103_v4 = vrot.slane %v2093_v55, 6  ;;  %v2441_v55 = vld [vmem:[#allocation10 + $0x10] sm:$0xf] }
 0x163   : > { %7440 = vmatpush3.msk.msra.mxu0 %vm507_vm4, %v8628_v40  ;;  %7441 = vmatprep.mubr.msk.f32.mxu0 %vm8208_vm0, %v8207_v0  ;;  %v1553_v40 = vld [vmem:[%s8566_s1 + $0x3] sm:$0x1] }
 0x164   : > { %7444 = vmatprep.subr.mxu1 %v8207_v0  ;;  %7446 = vmatprep.mubr.msk.f32.mxu1 %vm8208_vm0, %v8207_v0  ;;  %v1650_v37 = vsel %vm495_vm1, %v1649_v26, %v1553_v40  ;;  %v1472_v39 = vpop.permute.xlu1 %1471  ;;  %v1733_v1 = vpop.permute.xlu0 %1732  ;;  %v2353_v26 = vld [vmem:[%s8566_s1 + $0x35] sm:$0x1] }
 0x165   : > { %7445 = vmatpush3.msk.msra.mxu1 %vm507_vm4, %v1116_v15  ;;  %7449 = vmatprep.subr.mxu0 %v8207_v0  ;;  %v1652_v48 = vsel %vm498_vm2, %v1651_v35, %v1650_v37  ;;  %v2104_v15 = vsel %vm498_vm2, %v2103_v4, %v2102_v6  ;;  %v2450_v36 = vrot.slane %v2353_v26, 5  ;;  %v2613_v37 = vld [vmem:[%s8566_s1 + $0x26] sm:$0x1]  ;;  %v2615_v4 = vld [vmem:[#allocation10 + $0x18] sm:$0xf] }
 0x166   : > { %7442 = vmatmul.mubr.msk.f32.vlgmr.msra.gmra.mrb[6].mxu0 %vm503_vm5, %v1018_v19  ;;  %7447 = vmatmul.mubr.msk.f32.vlgmr.msra.gmra.mrb[6].mxu1 %vm503_vm5, %v1106_v21  ;;  %v1654_v53 = vsel %vm501_vm3, %v1653_v42, %v1652_v48  ;;  %v2352_v19 = vld [vmem:[%s8566_s1 + $0x25] sm:$0x1]  ;;  %v2446_v21 = vrot.slane %v2351_v11, 7  ;;  %v2106_v24 = vsel %vm501_vm3, %v2105_v14, %v2104_v15  ;;  %v2611_v42 = vld [vmem:[%s8566_s1 + $0x6] sm:$0x1]  ;;  %v2709_v48 = vrot.slane %v2613_v37, 6 }
 0x167   : > { %7450 = vmatpush3.msk.msra.mxu0 %vm507_vm4, %v1196_v23  ;;  %7451 = vmatprep.mubr.msk.f32.mxu0 %vm8208_vm0, %v8207_v0  ;;  %v2350_v23 = vld [vmem:[%s8566_s1 + $0x5] sm:$0x1]  ;;  %v2448_v40 = vrot.slane %v2352_v19, 6  ;;  %v2702_v6 = vld [vmem:[#allocation10 + $0x1c] sm:$0xf] }
 0x168   : > { %7454 = vmatprep.subr.mxu1 %v8207_v0  ;;  %7456 = vmatprep.mubr.msk.f32.mxu1 %vm8208_vm0, %v8207_v0  ;;  %v1994_v16 = vpop.permute.xlu1 %1993  ;;  %v2269_v35 = vpop.permute.xlu0 %2268  ;;  %v3149_v11 = vld [vmem:[%s8566_s1 + $0x27] sm:$0x1]  ;;  %v2789_v14 = vld [vmem:[#allocation10 + $0x20] sm:$0xf]  ;;  %v3150_v19 = vld [vmem:[%s8566_s1 + $0x37] sm:$0x1] }
 0x169   : > { %7455 = vmatpush3.msk.msra.mxu1 %vm507_vm4, %v1309_v31  ;;  %7459 = vmatprep.subr.mxu0 %v8207_v0  ;;  %v2447_v31 = vsel %vm495_vm1, %v2446_v21, %v2350_v23  ;;  %v3245_v21 = vrot.slane %v3149_v11, 6  ;;  %v3247_v26 = vrot.slane %v3150_v19, 5  ;;  %v3689_v11 = vld [vmem:[#allocation10] sm:$0xf]  ;;  %v4205_v19 = vld [vmem:[%s8566_s1 + $0xa] sm:$0x1] }
 0x16a   : > { %7452 = vmatmul.mubr.msk.f32.vlgmr.msra.gmra.mrb[8].mxu0 %vm503_vm5, %v1194_v28  ;;  %7457 = vmatmul.mubr.msk.f32.vlgmr.msra.gmra.mrb[8].mxu1 %vm503_vm5, %v1299_v33  ;;  %v2612_v28 = vld [vmem:[%s8566_s1 + $0x16] sm:$0x1] }
 0x16b   : > { %7460 = vmatpush3.msk.msra.mxu0 %vm507_vm4, %v8641_v50  ;;  %7461 = vmatprep.mubr.msk.f32.mxu0 %vm8208_vm0, %v8207_v0  ;;  %v1817_v50 = vld [vmem:[%s8566_s1 + $0x34] sm:$0x1] }
 0x16c   : > { %7464 = vmatprep.subr.mxu1 %v8207_v0  ;;  %7466 = vmatprep.mubr.msk.f32.mxu1 %vm8208_vm0, %v8207_v0  ;;  %v1914_v2 = vrot.slane %v1817_v50, 5  ;;  %v2096_v33 = vld [vmem:[#allocation10 + $0x4] sm:$0xf]  ;;  %v2890_v50 = vld [vmem:[%s8566_s1 + $0x26] sm:$0x1] }
 0x16d   : > { %7465 = vmatpush3.msk.msra.mxu1 %vm507_vm4, %v1472_v39  ;;  %7469 = vmatprep.subr.mxu0 %v8207_v0  ;;  %v2707_v39 = vrot.slane %v2612_v28, 7  ;;  %v2900_v63 = vrot.slane %v2890_v50, 6 }
 0x16e   : > { %7462 = vmatmul.mubr.msk.f32.vlgmr.msra.gmra.mrb[10].mxu0 %vm503_vm5, %v1298_v41  ;;  %7467 = vmatmul.mubr.msk.f32.vlgmr.msra.gmra.mrb[10].mxu1 %vm503_vm5, %v1470_v46  ;;  %v2449_v41 = vsel %vm498_vm2, %v2448_v40, %v2447_v31  ;;  %v2354_v46 = vld [vmem:[#allocation10 + $0xc] sm:$0xf]  ;;  %v3410_v40 = vld [vmem:[%s8566_s1 + $0x28] sm:$0x1]  ;;  %v3064_v31 = vld [vmem:[#allocation10 + $0x8] sm:$0xf] }
 0x16f   : > { %7470 = vmatpush3.msk.msra.mxu0 %vm507_vm4, %v8650_v60  ;;  %7471 = vmatprep.mubr.msk.f32.mxu0 %vm8208_vm0, %v8207_v0  ;;  %v1913_v60 = vsel %vm498_vm2, %v1912_v30, %v1911_v54  ;;  %v2451_v51 = vsel %vm501_vm3, %v2450_v36, %v2449_v41  ;;  %v2708_v52 = vsel %vm495_vm1, %v2707_v39, %v2611_v42  ;;  %v2898_v30 = vrot.slane %v2889_v43, 7  ;;  %v2530_v54 = vpop.permute.xlu1 %2529  ;;  %v3687_v41 = vld [vmem:[%s8566_s1 + $0x28] sm:$0x1]  ;;  %v3151_v43 = vld [vmem:[#allocation10 + $0xc] sm:$0xf] }
 0x170   : > { %7474 = vmatprep.subr.mxu1 %v8207_v0  ;;  %7476 = vmatprep.mubr.msk.f32.mxu1 %vm8208_vm0, %v8207_v0  ;;  %v1915_v13 = vsel %vm501_vm3, %v1914_v2, %v1913_v60  ;;  %v3148_v2 = vld [vmem:[%s8566_s1 + $0x17] sm:$0x1]  ;;  %v3506_v36 = vrot.slane %v3410_v40, 6  ;;  %v4484_v40 = vld [vmem:[%s8566_s1 + $0x2a] sm:$0x1] }
 0x171   : > { %7475 = vmatpush3.msk.msra.mxu1 %vm507_vm4, %v1654_v53  ;;  %7479 = vmatprep.subr.mxu0 %v8207_v0  ;;  %v2888_v53 = vld [vmem:[%s8566_s1 + $0x6] sm:$0x1] }
 0x172   : > { %7472 = vmatmul.mubr.msk.f32.vlgmr.msra.gmra.mrb[12].mxu0 %vm503_vm5, %v1557_v58  ;;  %7477 = vmatmul.mubr.msk.f32.vlgmr.msra.gmra.mrb[12].mxu1 %vm503_vm5, %v1644_v59  ;;  %v2528_v58 = vld [vmem:[#allocation10 + $0x14] sm:$0xf]  ;;  %v2710_v59 = vsel %vm498_vm2, %v2709_v48, %v2708_v52  ;;  %v3697_v52 = vrot.slane %v3687_v41, 6  ;;  %v4742_v41 = vld [vmem:[%s8566_s1 + $0x1b] sm:$0x1] }
 0x173   : > { %7480 = vmatpush3.msk.msra.mxu0 %vm507_vm4, %v1733_v1  ;;  %7481 = vmatprep.mubr.msk.f32.mxu0 %vm8208_vm0, %v8207_v0  ;;  %v2899_v1 = vsel %vm495_vm1, %v2898_v30, %v2888_v53  ;;  %v3066_v23 = vpop.permute.xlu1 %3065  ;;  %v3325_v30 = vld [vmem:[#allocation10 + $0x14] sm:$0xf]  ;;  %v3412_v53 = vld [vmem:[#allocation10 + $0x18] sm:$0xf] }
 0x174   : > { %7484 = vmatprep.subr.mxu1 %v8207_v0  ;;  %7486 = vmatprep.mubr.msk.f32.mxu1 %vm8208_vm0, %v8207_v0 }
 0x175   : > { %7485 = vmatpush3.msk.msra.mxu1 %vm507_vm4, %v8663_v7  ;;  %7489 = vmatprep.subr.mxu0 %v8207_v0  ;;  %v1992_v7 = vld [vmem:[#allocation10 + $0x20] sm:$0xf] }
 0x176   : > { %7482 = vmatmul.mubr.msk.f32.vlgmr.msra.gmra.mrb[14].mxu0 %vm503_vm5, %v1731_v8  ;;  %7487 = vmatmul.mubr.msk.f32.vlgmr.msra.gmra.mrb[14].mxu1 %vm503_vm5, %v1818_v10  ;;  %v2901_v8 = vsel %vm498_vm2, %v2900_v63, %v2899_v1  ;;  %v2791_v10 = vpop.permute.xlu0 %2790  ;;  %v3499_v1 = vld [vmem:[#allocation10 + $0x1c] sm:$0xf] }
 0x177   : > { %7490 = vmatpush3.msk.msra.mxu0 %vm507_vm4, %v1915_v13  ;;  %7491 = vmatprep.mubr.msk.f32.mxu0 %vm8208_vm0, %v8207_v0  ;;  %v3243_v13 = vrot.slane %v3148_v2, 7  ;;  %v3944_v2 = vld [vmem:[%s8566_s1 + $0x9] sm:$0x1] }
 0x178   : > { %7494 = vmatprep.subr.mxu1 %v8207_v0  ;;  %7496 = vmatprep.mubr.msk.f32.mxu1 %vm8208_vm0, %v8207_v0 }
 0x179   : > { %7495 = vmatpush3.msk.msra.mxu1 %vm507_vm4, %v1994_v16  ;;  %7499 = vmatprep.subr.mxu0 %v8207_v0  ;;  %v2893_v16 = vld [vmem:[#allocation10 + $0x4] sm:$0xf] }
 0x17a   : > { %7492 = vmatmul.mubr.msk.f32.vlgmr.msra.gmra.mrb[16].mxu0 %vm503_vm5, %v1905_v22  ;;  %7497 = vmatmul.mubr.msk.f32.vlgmr.msra.gmra.mrb[16].mxu1 %vm503_vm5, %v1992_v7  ;;  %v3409_v22 = vld [vmem:[%s8566_s1 + $0x18] sm:$0x1] }
 0x17b   : > { %7500 = vmatpush3.msk.msra.mxu0 %vm507_vm4, %v2106_v24  ;;  %7501 = vmatprep.mubr.msk.f32.mxu0 %vm8208_vm0, %v8207_v0  ;;  %v2892_v24 = vld [vmem:[#allocation10] sm:$0xf]  ;;  %v3504_v28 = vrot.slane %v3409_v22, 7  ;;  %v3861_v22 = vld [vmem:[#allocation10 + $0x8] sm:$0xf] }
 0x17c   : > { %7504 = vmatprep.subr.mxu1 %v8207_v0  ;;  %7506 = vmatprep.mubr.msk.f32.mxu1 %vm8208_vm0, %v8207_v0 }
 0x17d   : > { %7505 = vmatpush3.msk.msra.mxu1 %vm507_vm4, %v8672_v17  ;;  %7509 = vmatprep.subr.mxu0 %v8207_v0  ;;  %v2614_v17 = vld [vmem:[%s8566_s1 + $0x36] sm:$0x1] }
 0x17e   : > { %7502 = vmatmul.mubr.msk.f32.vlgmr.msra.gmra.mrb[18].mxu0 %vm503_vm5, %v2096_v33  ;;  %7507 = vmatmul.mubr.msk.f32.vlgmr.msra.gmra.mrb[18].mxu1 %vm503_vm5, %v2095_v34  ;;  %v2711_v57 = vrot.slane %v2614_v17, 5  ;;  %v3408_v34 = vld [vmem:[%s8566_s1 + $0x8] sm:$0x1]  ;;  %v3327_v17 = vpop.permute.xlu0 %3326 }
 0x17f   : > { %7510 = vmatpush3.msk.msra.mxu0 %vm507_vm4, %v2269_v35  ;;  %7511 = vmatprep.mubr.msk.f32.mxu0 %vm8208_vm0, %v8207_v0  ;;  %v3686_v35 = vld [vmem:[%s8566_s1 + $0x18] sm:$0x1]  ;;  %v3505_v39 = vsel %vm495_vm1, %v3504_v28, %v3408_v34  ;;  %v4035_v34 = vld [vmem:[#allocation10 + $0x10] sm:$0xf] }
 0x180   : > { %7514 = vmatprep.subr.mxu1 %v8207_v0  ;;  %7516 = vmatprep.mubr.msk.f32.mxu1 %vm8208_vm0, %v8207_v0  ;;  %v2712_v60 = vsel %vm501_vm3, %v2711_v57, %v2710_v59  ;;  %v3695_v42 = vrot.slane %v3686_v35, 7  ;;  %v3588_v59 = vpop.permute.xlu1 %3587 }
 0x181   : > { %7515 = vmatpush3.msk.msra.mxu1 %vm507_vm4, %v8685_v27  ;;  %7519 = vmatprep.subr.mxu0 %v8207_v0  ;;  %v2891_v27 = vld [vmem:[%s8566_s1 + $0x36] sm:$0x1] }
 0x182   : > { %7512 = vmatmul.mubr.msk.f32.vlgmr.msra.gmra.mrb[20].mxu0 %vm503_vm5, %v2267_v45  ;;  %7517 = vmatmul.mubr.msk.f32.vlgmr.msra.gmra.mrb[20].mxu1 %vm503_vm5, %v2354_v46  ;;  %v2902_v3 = vrot.slane %v2891_v27, 5  ;;  %v3238_v45 = vld [vmem:[#allocation10 + $0x10] sm:$0xf]  ;;  %v3685_v46 = vld [vmem:[%s8566_s1 + $0x8] sm:$0x1] }
 0x183   : > { %7520 = vmatpush3.msk.msra.mxu0 %vm507_vm4, %v2451_v51  ;;  %7521 = vmatprep.mubr.msk.f32.mxu0 %vm8208_vm0, %v8207_v0  ;;  %v3688_v51 = vld [vmem:[%s8566_s1 + $0x38] sm:$0x1]  ;;  %v3696_v50 = vsel %vm495_vm1, %v3695_v42, %v3685_v46  ;;  %v3946_v27 = vld [vmem:[%s8566_s1 + $0x29] sm:$0x1]  ;;  %v4296_v46 = vld [vmem:[#allocation10 + $0x1c] sm:$0xf] }
 0x184   : > { %7524 = vmatprep.subr.mxu1 %v8207_v0  ;;  %7526 = vmatprep.mubr.msk.f32.mxu1 %vm8208_vm0, %v8207_v0  ;;  %v2903_v15 = vsel %vm501_vm3, %v2902_v3, %v2901_v8  ;;  %v3699_v57 = vrot.slane %v3688_v51, 5  ;;  %v3947_v3 = vld [vmem:[%s8566_s1 + $0x39] sm:$0x1]  ;;  %v4837_v51 = vrot.slane %v4742_v41, 7  ;;  %v5284_v41 = vld [vmem:[#allocation10 + $0x4] sm:$0xf] }
 0x185   : > { %7525 = vmatpush3.msk.msra.mxu1 %vm507_vm4, %v2530_v54  ;;  %7529 = vmatprep.subr.mxu0 %v8207_v0  ;;  %v3945_v54 = vld [vmem:[%s8566_s1 + $0x19] sm:$0x1] }
 0x186   : > { %7522 = vmatmul.mubr.msk.f32.vlgmr.msra.gmra.mrb[22].mxu0 %vm503_vm5, %v2441_v55  ;;  %7527 = vmatmul.mubr.msk.f32.vlgmr.msra.gmra.mrb[22].mxu1 %vm503_vm5, %v2528_v58  ;;  %v3698_v58 = vsel %vm498_vm2, %v3697_v52, %v3696_v50  ;;  %v4040_v63 = vrot.slane %v3945_v54, 7  ;;  %v4383_v52 = vld [vmem:[#allocation10 + $0x20] sm:$0xf] }
 0x187   : > { %7530 = vmatpush3.msk.msra.mxu0 %vm507_vm4, %v8694_v38  ;;  %7531 = vmatprep.mubr.msk.f32.mxu0 %vm8208_vm0, %v8207_v0  ;;  %v3147_v38 = vld [vmem:[%s8566_s1 + $0x7] sm:$0x1] }
 0x188   : > { %7534 = vmatprep.subr.mxu1 %v8207_v0  ;;  %7536 = vmatprep.mubr.msk.f32.mxu1 %vm8208_vm0, %v8207_v0  ;;  %v3244_v7 = vsel %vm495_vm1, %v3243_v13, %v3147_v38  ;;  %v4041_v8 = vsel %vm495_vm1, %v4040_v63, %v3944_v2  ;;  %v3863_v13 = vpop.permute.xlu0 %3862  ;;  %v4044_v38 = vrot.slane %v3947_v3, 5  ;;  %v5004_v63 = vld [vmem:[%s8566_s1 + $0x2c] sm:$0x1]  ;;  %v5280_v3 = vld [vmem:[%s8566_s1 + $0x1c] sm:$0x1] }
 0x189   : > { %7535 = vmatpush3.msk.msra.mxu1 %vm507_vm4, %v2712_v60  ;;  %7539 = vmatprep.subr.mxu0 %v8207_v0  ;;  %v3246_v33 = vsel %vm498_vm2, %v3245_v21, %v3244_v7  ;;  %v3700_v60 = vsel %vm501_vm3, %v3699_v57, %v3698_v58  ;;  %v4483_v21 = vld [vmem:[%s8566_s1 + $0x1a] sm:$0x1]  ;;  %v3948_v7 = vld [vmem:[#allocation10 + $0xc] sm:$0xf] }
 0x18a   : > { %7532 = vmatmul.mubr.msk.f32.vlgmr.msra.gmra.mrb[24].mxu0 %vm503_vm5, %v2615_v4  ;;  %7537 = vmatmul.mubr.msk.f32.vlgmr.msra.gmra.mrb[24].mxu1 %vm503_vm5, %v2702_v6  ;;  %v3248_v37 = vsel %vm501_vm3, %v3247_v26, %v3246_v33  ;;  %v4042_v4 = vrot.slane %v3946_v27, 6  ;;  %v4206_v6 = vld [vmem:[%s8566_s1 + $0x1a] sm:$0x1]  ;;  %v4492_v28 = vrot.slane %v4483_v21, 7  ;;  %v4124_v33 = vpop.permute.xlu1 %4123 }
 0x18b   : > { %7540 = vmatpush3.msk.msra.mxu0 %vm507_vm4, %v2791_v10  ;;  %7541 = vmatprep.mubr.msk.f32.mxu0 %vm8208_vm0, %v8207_v0  ;;  %v3690_v10 = vld [vmem:[#allocation10 + $0x4] sm:$0xf] }
 0x18c   : > { %7544 = vmatprep.subr.mxu1 %v8207_v0  ;;  %7546 = vmatprep.mubr.msk.f32.mxu1 %vm8208_vm0, %v8207_v0 }
 0x18d   : > { %7545 = vmatpush3.msk.msra.mxu1 %vm507_vm4, %v2903_v15  ;;  %7549 = vmatprep.subr.mxu0 %v8207_v0  ;;  %v4301_v15 = vrot.slane %v4206_v6, 7 }
 0x18e   : > { %7542 = vmatmul.mubr.msk.f32.vlgmr.msra.gmra.mrb[26].mxu0 %vm503_vm5, %v2789_v14  ;;  %7547 = vmatmul.mubr.msk.f32.vlgmr.msra.gmra.mrb[26].mxu1 %vm503_vm5, %v2893_v16  ;;  %v4207_v14 = vld [vmem:[%s8566_s1 + $0x2a] sm:$0x1]  ;;  %v4043_v16 = vsel %vm498_vm2, %v4042_v4, %v4041_v8  ;;  %v4660_v58 = vpop.permute.xlu1 %4659  ;;  %v5100_v4 = vrot.slane %v5004_v63, 6  ;;  %v5716_v63 = vld [vmem:[#allocation10 + $0x14] sm:$0xf] }
 0x18f   : > { %7550 = vmatpush3.msk.msra.mxu0 %vm507_vm4, %v8707_v49  ;;  %7551 = vmatprep.mubr.msk.f32.mxu0 %vm8208_vm0, %v8207_v0  ;;  %v3411_v49 = vld [vmem:[%s8566_s1 + $0x38] sm:$0x1]  ;;  %v4302_v26 = vsel %vm495_vm1, %v4301_v15, %v4205_v19  ;;  %v5282_v19 = vld [vmem:[%s8566_s1 + $0x3c] sm:$0x1] }
 0x190   : > { %7554 = vmatprep.subr.mxu1 %v8207_v0  ;;  %7556 = vmatprep.mubr.msk.f32.mxu1 %vm8208_vm0, %v8207_v0  ;;  %v3508_v48 = vrot.slane %v3411_v49, 5  ;;  %v4122_v49 = vld [vmem:[#allocation10 + $0x14] sm:$0xf] }
 0x191   : > { %7555 = vmatpush3.msk.msra.mxu1 %vm507_vm4, %v3066_v23  ;;  %7559 = vmatprep.subr.mxu0 %v8207_v0  ;;  %v4303_v23 = vrot.slane %v4207_v14, 6  ;;  %v5279_v14 = vld [vmem:[%s8566_s1 + $0xc] sm:$0x1] }
 0x192   : > { %7552 = vmatmul.mubr.msk.f32.vlgmr.msra.gmra.mrb[28].mxu0 %vm503_vm5, %v2892_v24  ;;  %7557 = vmatmul.mubr.msk.f32.vlgmr.msra.gmra.mrb[28].mxu1 %vm503_vm5, %v3064_v31  ;;  %v4045_v24 = vsel %vm501_vm3, %v4044_v38, %v4043_v16  ;;  %v4482_v31 = vld [vmem:[%s8566_s1 + $0xa] sm:$0x1]  ;;  %v4832_v38 = vld [vmem:[#allocation10 + $0x10] sm:$0xf] }
 0x193   : > { %7560 = vmatpush3.msk.msra.mxu0 %vm507_vm4, %v8716_v61  ;;  %7561 = vmatprep.mubr.msk.f32.mxu0 %vm8208_vm0, %v8207_v0  ;;  %v3507_v61 = vsel %vm498_vm2, %v3506_v36, %v3505_v39  ;;  %v4304_v36 = vsel %vm498_vm2, %v4303_v23, %v4302_v26  ;;  %v4493_v39 = vsel %vm495_vm1, %v4492_v28, %v4482_v31  ;;  %v5539_v23 = vld [vmem:[%s8566_s1 + $0x1d] sm:$0x1]  ;;  %v5293_v26 = vrot.slane %v5282_v19, 5  ;;  %v5182_v28 = vpop.permute.xlu1 %5181  ;;  %v5540_v31 = vld [vmem:[%s8566_s1 + $0x2d] sm:$0x1] }
 0x194   : > { %7564 = vmatprep.subr.mxu1 %v8207_v0  ;;  %7566 = vmatprep.mubr.msk.f32.mxu1 %vm8208_vm0, %v8207_v0  ;;  %v3509_v55 = vsel %vm501_vm3, %v3508_v48, %v3507_v61  ;;  %v4385_v48 = vpop.permute.xlu0 %4384  ;;  %v4743_v61 = vld [vmem:[%s8566_s1 + $0x2b] sm:$0x1] }
 0x195   : > { %7565 = vmatpush3.msk.msra.mxu1 %vm507_vm4, %v3248_v37  ;;  %7569 = vmatprep.subr.mxu0 %v8207_v0  ;;  %v4494_v37 = vrot.slane %v4484_v40, 6  ;;  %v4839_v54 = vrot.slane %v4743_v61, 6  ;;  %v5799_v61 = vld [vmem:[%s8566_s1 + $0xe] sm:$0x1] }
 0x196   : > { %7562 = vmatmul.mubr.msk.f32.vlgmr.msra.gmra.mrb[30].mxu0 %vm503_vm5, %v3151_v43  ;;  %7567 = vmatmul.mubr.msk.f32.vlgmr.msra.gmra.mrb[30].mxu1 %vm503_vm5, %v3238_v45  ;;  %v4209_v45 = vld [vmem:[#allocation10 + $0x18] sm:$0xf] }
 0x197   : > { %7570 = vmatpush3.msk.msra.mxu0 %vm507_vm4, %v3327_v17  ;;  %7571 = vmatprep.mubr.msk.f32.mxu0 %vm8208_vm0, %v8207_v0  ;;  %v4495_v17 = vsel %vm498_vm2, %v4494_v37, %v4493_v39  ;;  %v5800_v37 = vld [vmem:[%s8566_s1 + $0x1e] sm:$0x1] }
 0x198   : > { %7574 = vmatprep.subr.mxu1 %v8207_v0  ;;  %7576 = vmatprep.mubr.msk.f32.mxu1 %vm8208_vm0, %v8207_v0  ;;  %v4921_v15 = vpop.permute.xlu0 %4920 }
 0x199   : > { %7575 = vmatpush3.msk.msra.mxu1 %vm507_vm4, %v8729_v9  ;;  %7579 = vmatprep.subr.mxu0 %v8207_v0  ;;  %v3586_v9 = vld [vmem:[#allocation10 + $0x20] sm:$0xf] }
 0x19a   : > { %7572 = vmatmul.mubr.msk.f32.vlgmr.msra.gmra.mrb[32].mxu0 %vm503_vm5, %v3325_v30  ;;  %7577 = vmatmul.mubr.msk.f32.vlgmr.msra.gmra.mrb[32].mxu1 %vm503_vm5, %v3412_v53  ;;  %v4487_v30 = vld [vmem:[#allocation10 + $0x4] sm:$0xf]  ;;  %v4744_v53 = vld [vmem:[%s8566_s1 + $0x3b] sm:$0x1] }
 0x19b   : > { %7580 = vmatpush3.msk.msra.mxu0 %vm507_vm4, %v3509_v55  ;;  %7581 = vmatprep.mubr.msk.f32.mxu0 %vm8208_vm0, %v8207_v0  ;;  %v5003_v55 = vld [vmem:[%s8566_s1 + $0x1c] sm:$0x1]  ;;  %v4841_v27 = vrot.slane %v4744_v53, 5 }
 0x19c   : > { %7584 = vmatprep.subr.mxu1 %v8207_v0  ;;  %7586 = vmatprep.mubr.msk.f32.mxu1 %vm8208_vm0, %v8207_v0 }
 0x19d   : > { %7585 = vmatpush3.msk.msra.mxu1 %vm507_vm4, %v3588_v59  ;;  %7589 = vmatprep.subr.mxu0 %v8207_v0  ;;  %v4486_v59 = vld [vmem:[#allocation10] sm:$0xf] }
 0x19e   : > { %7582 = vmatmul.mubr.msk.f32.vlgmr.msra.gmra.mrb[34].mxu0 %vm503_vm5, %v3499_v1  ;;  %7587 = vmatmul.mubr.msk.f32.vlgmr.msra.gmra.mrb[34].mxu1 %vm503_vm5, %v3586_v9  ;;  %v5098_v1 = vrot.slane %v5003_v55, 7  ;;  %v4658_v9 = vld [vmem:[#allocation10 + $0x8] sm:$0xf] }
 0x19f   : > { %7590 = vmatpush3.msk.msra.mxu0 %vm507_vm4, %v3700_v60  ;;  %7591 = vmatprep.mubr.msk.f32.mxu0 %vm8208_vm0, %v8207_v0  ;;  %v5002_v60 = vld [vmem:[%s8566_s1 + $0xc] sm:$0x1] }
 0x1a0   : > { %7594 = vmatprep.subr.mxu1 %v8207_v0  ;;  %7596 = vmatprep.mubr.msk.f32.mxu1 %vm8208_vm0, %v8207_v0  ;;  %v5099_v8 = vsel %vm495_vm1, %v5098_v1, %v5002_v60  ;;  %v6336_v60 = vld [vmem:[%s8566_s1 + $0x1f] sm:$0x1] }
 0x1a1   : > { %7595 = vmatpush3.msk.msra.mxu1 %vm507_vm4, %v8738_v20  ;;  %7599 = vmatprep.subr.mxu0 %v8207_v0  ;;  %v4208_v20 = vld [vmem:[%s8566_s1 + $0x3a] sm:$0x1] }
 0x1a2   : > { %7592 = vmatmul.mubr.msk.f32.vlgmr.msra.gmra.mrb[36].mxu0 %vm503_vm5, %v3690_v10  ;;  %7597 = vmatmul.mubr.msk.f32.vlgmr.msra.gmra.mrb[36].mxu1 %vm503_vm5, %v3689_v11  ;;  %v4305_v35 = vrot.slane %v4208_v20, 5  ;;  %v5281_v10 = vld [vmem:[%s8566_s1 + $0x2c] sm:$0x1]  ;;  %v5289_v11 = vrot.slane %v5280_v3, 7  ;;  %v5006_v20 = vld [vmem:[#allocation10 + $0x18] sm:$0xf] }
 0x1a3   : > { %7600 = vmatpush3.msk.msra.mxu0 %vm507_vm4, %v3863_v13  ;;  %7601 = vmatprep.mubr.msk.f32.mxu0 %vm8208_vm0, %v8207_v0  ;;  %v4745_v13 = vld [vmem:[#allocation10 + $0xc] sm:$0xf]  ;;  %v5291_v21 = vrot.slane %v5281_v10, 6 }
 0x1a4   : > { %7604 = vmatprep.subr.mxu1 %v8207_v0  ;;  %7606 = vmatprep.mubr.msk.f32.mxu1 %vm8208_vm0, %v8207_v0  ;;  %v4306_v42 = vsel %vm501_vm3, %v4305_v35, %v4304_v36  ;;  %v5538_v35 = vld [vmem:[%s8566_s1 + $0xd] sm:$0x1]  ;;  %v5541_v36 = vld [vmem:[%s8566_s1 + $0x3d] sm:$0x1] }
 0x1a5   : > { %7605 = vmatpush3.msk.msra.mxu1 %vm507_vm4, %v8751_v32  ;;  %7609 = vmatprep.subr.mxu0 %v8207_v0  ;;  %v4485_v32 = vld [vmem:[%s8566_s1 + $0x3a] sm:$0x1] }
 0x1a6   : > { %7602 = vmatmul.mubr.msk.f32.vlgmr.msra.gmra.mrb[38].mxu0 %vm503_vm5, %v3861_v22  ;;  %7607 = vmatmul.mubr.msk.f32.vlgmr.msra.gmra.mrb[38].mxu1 %vm503_vm5, %v3948_v7  ;;  %v4496_v43 = vrot.slane %v4485_v32, 5  ;;  %v5290_v22 = vsel %vm495_vm1, %v5289_v11, %v5279_v14  ;;  %v4919_v7 = vld [vmem:[#allocation10 + $0x14] sm:$0xf]  ;;  %v5636_v32 = vrot.slane %v5540_v31, 6  ;;  %v6337_v11 = vld [vmem:[%s8566_s1 + $0x2f] sm:$0x1] }
 0x1a7   : > { %7610 = vmatpush3.msk.msra.mxu0 %vm507_vm4, %v4045_v24  ;;  %7611 = vmatprep.mubr.msk.f32.mxu0 %vm8208_vm0, %v8207_v0  ;;  %v5292_v40 = vsel %vm498_vm2, %v5291_v21, %v5290_v22  ;;  %v6593_v31 = vld [vmem:[%s417_s8] sm:$0xf]  ;;  %s6850_s8 = scalar_lea.sflag [#allocation4], %s8555_s16 }
 0x1a8   : > { %7614 = vmatprep.subr.mxu1 %v8207_v0  ;;  %7616 = vmatprep.mubr.msk.f32.mxu1 %vm8208_vm0, %v8207_v0  ;;  %v4497_v50 = vsel %vm501_vm3, %v4496_v43, %v4495_v17  ;;  %v5457_v43 = vpop.permute.xlu0 %5456  ;;  %v5895_v17 = vrot.slane %v5800_v37, 7 }
 0x1a9   : > { %7615 = vmatpush3.msk.msra.mxu1 %vm507_vm4, %v4124_v33  ;;  %7619 = vmatprep.subr.mxu0 %v8207_v0  ;;  %v5634_v33 = vrot.slane %v5539_v23, 7 }
 0x1aa   : > { %7612 = vmatmul.mubr.msk.f32.vlgmr.msra.gmra.mrb[40].mxu0 %vm503_vm5, %v4035_v34  ;;  %7617 = vmatmul.mubr.msk.f32.vlgmr.msra.gmra.mrb[40].mxu1 %vm503_vm5, %v4122_v49  ;;  %v5093_v34 = vld [vmem:[#allocation10 + $0x1c] sm:$0xf]  ;;  %v5294_v49 = vsel %vm501_vm3, %v5293_v26, %v5292_v40  ;;  %v5896_v53 = vsel %vm495_vm1, %v5895_v17, %v5799_v61  ;;  %v6426_v26 = vld [vmem:[#allocation10 + $0x10] sm:$0xf] }
 0x1ab   : > { %7620 = vmatpush3.msk.msra.mxu0 %vm507_vm4, %v8760_v44  ;;  %7621 = vmatprep.mubr.msk.f32.mxu0 %vm8208_vm0, %v8207_v0  ;;  %v4741_v44 = vld [vmem:[%s8566_s1 + $0xb] sm:$0x1]  ;;  %v5635_v39 = vsel %vm495_vm1, %v5634_v33, %v5538_v35  ;;  %v7888_v33 = vld [vmem:[%s408_s17] sm:$0xf]  ;;  %v6672_v35 = vld [vmem:[#allocation10 + $0x1c] sm:$0xf] }
 0x1ac   : > { %7624 = vmatprep.subr.mxu1 %v8207_v0  ;;  %7626 = vmatprep.mubr.msk.f32.mxu1 %vm8208_vm0, %v8207_v0  ;;  %v4838_v57 = vsel %vm495_vm1, %v4837_v51, %v4741_v44  ;;  %v6077_v51 = vld [vmem:[%s8566_s1 + $0x1e] sm:$0x1]  ;;  %v5455_v44 = vld [vmem:[#allocation10 + $0x8] sm:$0xf]  ;;  %v5979_v10 = vpop.permute.xlu0 %5978  ;;  %s9590_s17 = sld [smem:[#allocation32_spill]] }
 0x1ad   : > { %7625 = vmatpush3.msk.msra.mxu1 %vm507_vm4, %v4306_v42  ;;  %7629 = vmatprep.subr.mxu0 %v8207_v0  ;;  %v4840_v2 = vsel %vm498_vm2, %v4839_v54, %v4838_v57  ;;  %v5283_v42 = vld [vmem:[#allocation10] sm:$0xf]  ;;  %v6078_v54 = vld [vmem:[%s8566_s1 + $0x2e] sm:$0x1]  ;;  %v6086_v55 = vrot.slane %v6077_v51, 7 }
 0x1ae   : > { %7622 = vmatmul.mubr.msk.f32.vlgmr.msra.gmra.mrb[42].mxu0 %vm503_vm5, %v4209_v45  ;;  %7627 = vmatmul.mubr.msk.f32.vlgmr.msra.gmra.mrb[42].mxu1 %vm503_vm5, %v4296_v46  ;;  %v4842_v6 = vsel %vm501_vm3, %v4841_v27, %v4840_v2  ;;  %v5638_v45 = vrot.slane %v5541_v36, 5  ;;  %v5801_v46 = vld [vmem:[%s8566_s1 + $0x2e] sm:$0x1] }
 0x1af   : > { %7630 = vmatpush3.msk.msra.mxu0 %vm507_vm4, %v4385_v48  ;;  %7631 = vmatprep.mubr.msk.f32.mxu0 %vm8208_vm0, %v8207_v0  ;;  %v5637_v48 = vsel %vm498_vm2, %v5636_v32, %v5635_v39  ;;  %v6076_v57 = vld [vmem:[%s8566_s1 + $0xe] sm:$0x1] }
 0x1b0   : > { %7634 = vmatprep.subr.mxu1 %v8207_v0  ;;  %7636 = vmatprep.mubr.msk.f32.mxu1 %vm8208_vm0, %v8207_v0  ;;  %v6087_v2 = vsel %vm495_vm1, %v6086_v55, %v6076_v57  ;;  %v6515_v40 = vpop.permute.xlu0 %6514 }
 0x1b1   : > { %7635 = vmatpush3.msk.msra.mxu1 %vm507_vm4, %v4497_v50  ;;  %7639 = vmatprep.subr.mxu0 %v8207_v0  ;;  %v5897_v50 = vrot.slane %v5801_v46, 6 }
 0x1b2   : > { %7632 = vmatmul.mubr.msk.f32.vlgmr.msra.gmra.mrb[44].mxu0 %vm503_vm5, %v4383_v52  ;;  %7637 = vmatmul.mubr.msk.f32.vlgmr.msra.gmra.mrb[44].mxu1 %vm503_vm5, %v4487_v30  ;;  %v5542_v52 = vld [vmem:[#allocation10 + $0xc] sm:$0xf]  ;;  %v5639_v30 = vsel %vm501_vm3, %v5638_v45, %v5637_v48  ;;  %s9443_s4 = scalar_lea.hbm %s9590_s17, %s7259_s15 }
 0x1b3   : > { %7640 = vmatpush3.msk.msra.mxu0 %vm507_vm4, %v8773_v56  ;;  %7641 = vmatprep.mubr.msk.f32.mxu0 %vm8208_vm0, %v8207_v0  ;;  %v5005_v56 = vld [vmem:[%s8566_s1 + $0x3c] sm:$0x1]  ;;  %v5898_v1 = vsel %vm498_vm2, %v5897_v50, %v5896_v53 }
 0x1b4   : > { %7644 = vmatprep.subr.mxu1 %v8207_v0  ;;  %7646 = vmatprep.mubr.msk.f32.mxu1 %vm8208_vm0, %v8207_v0  ;;  %v5102_v16 = vrot.slane %v5005_v56, 5  ;;  %v9389_v57 = vpop.permute.xlu0 %1275 }
 0x1b5   : > { %7645 = vmatpush3.msk.msra.mxu1 %vm507_vm4, %v4660_v58  ;;  %7649 = vmatprep.subr.mxu0 %v8207_v0  ;;  %v5718_v58 = vpop.permute.xlu1 %5717 }
 0x1b6   : > { %7642 = vmatmul.mubr.msk.f32.vlgmr.msra.gmra.mrb[46].mxu0 %vm503_vm5, %v4486_v59  ;;  %7647 = vmatmul.mubr.msk.f32.vlgmr.msra.gmra.mrb[46].mxu1 %vm503_vm5, %v4658_v9  ;;  %v5629_v59 = vld [vmem:[#allocation10 + $0x10] sm:$0xf]  ;;  %v6088_v9 = vrot.slane %v6078_v54, 6 }
 0x1b7   : > { %7650 = vmatpush3.msk.msra.mxu0 %vm507_vm4, %v8782_v5  ;;  %7651 = vmatprep.mubr.msk.f32.mxu0 %vm8208_vm0, %v8207_v0  ;;  %v5101_v5 = vsel %vm498_vm2, %v5100_v4, %v5099_v8  ;;  %v5803_v4 = vld [vmem:[#allocation10 + $0x18] sm:$0xf] }
 0x1b8   : > { %7654 = vmatprep.subr.mxu1 %v8207_v0  ;;  %7656 = vmatprep.mubr.msk.f32.mxu1 %vm8208_vm0, %v8207_v0  ;;  %v5103_v24 = vsel %vm501_vm3, %v5102_v16, %v5101_v5  ;;  %v6089_v8 = vsel %vm498_vm2, %v6088_v9, %v6087_v2  ;;  %v6338_v16 = vld [vmem:[%s8566_s1 + $0x3f] sm:$0x1]  ;;  %v6433_v5 = vrot.slane %v6337_v11, 6 }
 0x1b9   : > { %7655 = vmatpush3.msk.msra.mxu1 %vm507_vm4, %v4842_v6  ;;  %7659 = vmatprep.subr.mxu0 %v8207_v0  ;;  %v5890_v6 = vld [vmem:[#allocation10 + $0x1c] sm:$0xf]  ;;  %v6254_v21 = vpop.permute.xlu1 %6253  ;;  %v6435_v22 = vrot.slane %v6338_v16, 5 }
 0x1ba   : > { %7652 = vmatmul.mubr.msk.f32.vlgmr.msra.gmra.mrb[48].mxu0 %vm503_vm5, %v4745_v13  ;;  %7657 = vmatmul.mubr.msk.f32.vlgmr.msra.gmra.mrb[48].mxu1 %vm503_vm5, %v4832_v38  ;;  %v6431_v13 = vrot.slane %v6336_v60, 7  ;;  %v5977_v38 = vld [vmem:[#allocation10 + $0x20] sm:$0xf] }
 0x1bb   : > { %7660 = vmatpush3.msk.msra.mxu0 %vm507_vm4, %v4921_v15  ;;  %7661 = vmatprep.mubr.msk.f32.mxu0 %vm8208_vm0, %v8207_v0  ;;  %v6081_v15 = vld [vmem:[#allocation10 + $0x4] sm:$0xf] }
 0x1bc   : > { %7664 = vmatprep.subr.mxu1 %v8207_v0  ;;  %7666 = vmatprep.mubr.msk.f32.mxu1 %vm8208_vm0, %v8207_v0 }
 0x1bd   : > { %7665 = vmatpush3.msk.msra.mxu1 %vm507_vm4, %v8795_v18  ;;  %7669 = vmatprep.subr.mxu0 %v8207_v0  ;;  %v5180_v18 = vld [vmem:[#allocation10 + $0x20] sm:$0xf] }
 0x1be   : > { %7662 = vmatmul.mubr.msk.f32.vlgmr.msra.gmra.mrb[50].mxu0 %vm503_vm5, %v4919_v7  ;;  %7667 = vmatmul.mubr.msk.f32.vlgmr.msra.gmra.mrb[50].mxu1 %vm503_vm5, %v5006_v20  ;;  %v6080_v7 = vld [vmem:[#allocation10] sm:$0xf]  ;;  %v6252_v20 = vld [vmem:[#allocation10 + $0x8] sm:$0xf] }
 0x1bf   : > { %7670 = vmatpush3.msk.msra.mxu0 %vm507_vm4, %v5103_v24  ;;  %7671 = vmatprep.mubr.msk.f32.mxu0 %vm8208_vm0, %v8207_v0  ;;  %v6339_v24 = vld [vmem:[#allocation10 + $0xc] sm:$0xf] }
 0x1c0   : > { %7674 = vmatprep.subr.mxu1 %v8207_v0  ;;  %7676 = vmatprep.mubr.msk.f32.mxu1 %vm8208_vm0, %v8207_v0 }
 0x1c1   : > { %7675 = vmatpush3.msk.msra.mxu1 %vm507_vm4, %v5182_v28  ;;  %7679 = vmatprep.subr.mxu0 %v8207_v0  ;;  %v6594_v28 = vld [vmem:[#allocation10 + $0x18] sm:$0xf] }
 0x1c2   : > { %7672 = vmatmul.mubr.msk.f32.vlgmr.msra.gmra.mrb[52].mxu0 %vm503_vm5, %v5093_v34  ;;  %7677 = vmatmul.mubr.msk.f32.vlgmr.msra.gmra.mrb[52].mxu1 %vm503_vm5, %v5180_v18  ;;  %v6752_v34 = vpop.permute.xlu1 %6751 }
 0x1c3   : > { %7680 = vmatpush3.msk.msra.mxu0 %vm507_vm4, %v5294_v49  ;;  %7681 = vmatprep.mubr.msk.f32.mxu0 %vm8208_vm0, %v8207_v0  ;;  %v6750_v49 = vld [vmem:[#allocation10 + $0x20] sm:$0xf] }
 0x1c4   : > { %7684 = vmatprep.subr.mxu1 %v8207_v0  ;;  %7686 = vmatprep.mubr.msk.f32.mxu1 %vm8208_vm0, %v8207_v0 }
 0x1c5   : > { %7685 = vmatpush3.msk.msra.mxu1 %vm507_vm4, %v8803_v29  ;;  %7689 = vmatprep.subr.mxu0 %v8207_v0  ;;  %v5802_v29 = vld [vmem:[%s8566_s1 + $0x3e] sm:$0x1] }
 0x1c6   : > { %7682 = vmatmul.mubr.msk.f32.vlgmr.msra.gmra.mrb[54].mxu0 %vm503_vm5, %v5284_v41  ;;  %7687 = vmatmul.mubr.msk.f32.vlgmr.msra.gmra.mrb[54].mxu1 %vm503_vm5, %v5283_v42  ;;  %v5899_v27 = vrot.slane %v5802_v29, 5 }
 0x1c7   : > { %7690 = vmatpush3.msk.msra.mxu0 %vm507_vm4, %v5457_v43  ;;  %7691 = vmatprep.mubr.msk.f32.mxu0 %vm8208_vm0, %v8207_v0 }
 0x1c8   : > { %7694 = vmatprep.subr.mxu1 %v8207_v0  ;;  %7696 = vmatprep.mubr.msk.f32.mxu1 %vm8208_vm0, %v8207_v0  ;;  %v5900_v3 = vsel %vm501_vm3, %v5899_v27, %v5898_v1 }
 0x1c9   : > { %7695 = vmatpush3.msk.msra.mxu1 %vm507_vm4, %v8822_v47  ;;  %7699 = vmatprep.subr.mxu0 %v8207_v0  ;;  %v6079_v47 = vld [vmem:[%s8566_s1 + $0x3e] sm:$0x1] }
 0x1ca   : > { %7692 = vmatmul.mubr.msk.f32.vlgmr.msra.gmra.mrb[56].mxu0 %vm503_vm5, %v5455_v44  ;;  %7697 = vmatmul.mubr.msk.f32.vlgmr.msra.gmra.mrb[56].mxu1 %vm503_vm5, %v5542_v52  ;;  %v6090_v56 = vrot.slane %v6079_v47, 5 }
 0x1cb   : > { %7700 = vmatpush3.msk.msra.mxu0 %vm507_vm4, %v5639_v30  ;;  %7701 = vmatprep.mubr.msk.f32.mxu0 %vm8208_vm0, %v8207_v0 }
 0x1cc   : > { %7704 = vmatprep.subr.mxu1 %v8207_v0  ;;  %7706 = vmatprep.mubr.msk.f32.mxu1 %vm8208_vm0, %v8207_v0  ;;  %v6091_v14 = vsel %vm501_vm3, %v6090_v56, %v6089_v8 }
 0x1cd   : > { %7705 = vmatpush3.msk.msra.mxu1 %vm507_vm4, %v5718_v58  ;;  %7709 = vmatprep.subr.mxu0 %v8207_v0 }
 0x1ce   : > { %7702 = vmatmul.mubr.msk.f32.vlgmr.msra.gmra.mrb[58].mxu0 %vm503_vm5, %v5629_v59  ;;  %7707 = vmatmul.mubr.msk.f32.vlgmr.msra.gmra.mrb[58].mxu1 %vm503_vm5, %v5716_v63 }
 0x1cf   : > { %7710 = vmatpush3.msk.msra.mxu0 %vm507_vm4, %v8842_v62  ;;  %7711 = vmatprep.mubr.msk.f32.mxu0 %vm8208_vm0, %v8207_v0  ;;  %v6335_v62 = vld [vmem:[%s8566_s1 + $0xf] sm:$0x1]  ;;  %s9434_s1 = scalar_lea.hbm %s9588_s24, %s7259_s15 }
 0x1d0   : > { %7714 = vmatprep.subr.mxu1 %v8207_v0  ;;  %7716 = vmatprep.mubr.msk.f32.mxu1 %vm8208_vm0, %v8207_v0  ;;  %v6432_v19 = vsel %vm495_vm1, %v6431_v13, %v6335_v62 }
 0x1d1   : > { %7715 = vmatpush3.msk.msra.mxu1 %vm507_vm4, %v5900_v3  ;;  %7719 = vmatprep.subr.mxu0 %v8207_v0  ;;  %v6434_v23 = vsel %vm498_vm2, %v6433_v5, %v6432_v19 }
 0x1d2   : > { %7712 = vmatmul.mubr.msk.f32.vlgmr.msra.gmra.mrb[60].mxu0 %vm503_vm5, %v5803_v4  ;;  %7717 = vmatmul.mubr.msk.f32.vlgmr.msra.gmra.mrb[60].mxu1 %vm503_vm5, %v5890_v6 }
 0x1d3   : > { %7720 = vmatpush3.msk.msra.mxu0 %vm507_vm4, %v5979_v10  ;;  %7721 = vmatprep.mubr.msk.f32.mxu0 %vm8208_vm0, %v8207_v0 }
 0x1d4   : > { %7724 = vmatprep.subr.mxu1 %v8207_v0  ;;  %7726 = vmatprep.mubr.msk.f32.mxu1 %vm8208_vm0, %v8207_v0 }
 0x1d5   : > { %7725 = vmatpush3.msk.msra.mxu1 %vm507_vm4, %v6091_v14  ;;  %7729 = vmatprep.subr.mxu0 %v8207_v0 }
 0x1d6   : > { %7722 = vmatmul.mubr.msk.f32.vlgmr.msra.gmra.mrb[62].mxu0 %vm503_vm5, %v5977_v38  ;;  %7727 = vmatmul.mubr.msk.f32.vlgmr.msra.gmra.mrb[62].mxu1 %vm503_vm5, %v6081_v15 }
 0x1d7   : > { %7730 = vmatpush3.msk.msra.mxu0 %vm507_vm4, %v8853_v12  ;;  %7731 = vmatprep.mubr.msk.f32.mxu0 %vm8208_vm0, %v8207_v0  ;;  %v6436_v12 = vsel %vm501_vm3, %v6435_v22, %v6434_v23 }
 0x1d8   : > { %7734 = vmatprep.subr.mxu1 %v8207_v0  ;;  %7736 = vmatprep.mubr.msk.f32.mxu1 %vm8208_vm0, %v8207_v0 }
 0x1d9   : > { %7735 = vmatpush3.msk.msra.mxu1 %vm507_vm4, %v6254_v21  ;;  %7739 = vmatprep.subr.mxu0 %v8207_v0 }
 0x1da   : > { %7732 = vmatmul.mubr.msk.f32.vlgmr.msra.gmra.mrb[64].mxu0 %vm503_vm5, %v6080_v7  ;;  %7737 = vmatmul.mubr.msk.f32.vlgmr.msra.gmra.mrb[64].mxu1 %vm503_vm5, %v6252_v20 }
 0x1db   : > { %7740 = vmatpush3.msk.msra.mxu0 %vm507_vm4, %v8864_v25  ;;  %7741 = vmatprep.mubr.msk.f32.mxu0 %vm8208_vm0, %v8207_v0  ;;  %v6513_v25 = vld [vmem:[#allocation10 + $0x14] sm:$0xf] }
 0x1dc   : > { %7744 = vmatprep.subr.mxu1 %v8207_v0  ;;  %7746 = vmatprep.mubr.msk.f32.mxu1 %vm8208_vm0, %v8207_v0 }
 0x1dd   : > { %7745 = vmatpush3.msk.msra.mxu1 %vm507_vm4, %v6436_v12  ;;  %7749 = vmatprep.subr.mxu0 %v8207_v0 }
 0x1de   : > { %7742 = vmatmul.mubr.msk.f32.vlgmr.msra.gmra.mrb[66].mxu0 %vm503_vm5, %v6339_v24  ;;  %7747 = vmatmul.mubr.msk.f32.vlgmr.msra.gmra.mrb[66].mxu1 %vm503_vm5, %v6426_v26 }
 0x1df   : > { %7750 = vmatpush3.msk.msra.mxu0 %vm507_vm4, %v6515_v40  ;;  %7751 = vmatprep.mubr.msk.f32.mxu0 %vm8208_vm0, %v8207_v0 }
 0x1e0   : > { %7754 = vmatprep.subr.mxu1 %v8207_v0  ;;  %7756 = vmatprep.mubr.msk.f32.mxu1 %vm8208_vm0, %v8207_v0 }
 0x1e1   : > { %7755 = vmatpush3.msk.msra.mxu1 %vm507_vm4, %v7888_v33  ;;  %7759 = vmatprep.subr.mxu0 %v8207_v0 }
 0x1e2   : > { %7752 = vmatmul.mubr.msk.f32.vlgmr.msra.gmra.mrb[68].mxu0 %vm503_vm5, %v6513_v25  ;;  %7757 = vmatmul.mubr.msk.f32.vlgmr.msra.gmra.mrb[68].mxu1 %vm503_vm5, %v6594_v28  ;;  %v661_v18 = vpop.f32.mrb[0].mxu1 }
 0x1e3   : > { %7760 = vmatpush3.msk.msra.mxu0 %vm507_vm4, %v6593_v31  ;;  %7761 = vmatprep.mubr.msk.f32.mxu0 %vm8208_vm0, %v8207_v0  ;;  %v7418_v36 = vpop.f32.mrb[1].mxu1 }
 0x1e4   : > { %7764 = vmatprep.subr.mxu1 %v8207_v0  ;;  %7766 = vmatprep.mubr.msk.f32.mxu1 %vm8208_vm0, %v8207_v0  ;;  %v576_v32 = vpop.f32.mrb[0].mxu0 }
 0x1e5   : > { %7765 = vmatpush3.msk.msra.mxu1 %vm507_vm4, %v6752_v34  ;;  %v662_v37 = vadd.f32 %v661_v18, %v576_v32  ;;  %v7413_v39 = vpop.f32.mrb[1].mxu0 }
 0x1e6   : > { %7762 = vmatmul.mubr.msk.f32.vlgmr.msra.gmra.mrb[70].mxu0 %vm503_vm5, %v6672_v35  ;;  %7767 = vmatmul.mubr.msk.f32.vlgmr.msra.gmra.mrb[70].mxu1 %vm503_vm5, %v6750_v49 }
 0x1e7   : > { %v836_v41 = vpop.f32.mrb[2].mxu1 }
 0x1e8   : > { %v7428_v42 = vpop.f32.mrb[3].mxu1 }
 0x231   : > { %v740_v43 = vpop.f32.mrb[2].mxu0 }
 0x232   : > { %v744_v45 = vadd.f32 %v740_v43, %v662_v37  ;;  %v7423_v46 = vpop.f32.mrb[3].mxu0 }
 0x234   : > { %v840_v17 = vadd.f32 %v836_v41, %v744_v45 }
 0x235   : > { %v924_v48 = vpop.f32.mrb[4].mxu0  ;;  %v1004_v61 = vpop.f32.mrb[4].mxu1 }
 0x236   : > { %v928_v51 = vadd.f32 %v924_v48, %v840_v17  ;;  %v7433_v44 = vpop.f32.mrb[5].mxu0  ;;  %v7438_v0 = vpop.f32.mrb[5].mxu1 }
 0x238   : > { %v1008_v52 = vadd.f32 %v1004_v61, %v928_v51 }
 0x239   : > { %v1100_v29 = vpop.f32.mrb[6].mxu0  ;;  %v1188_v50 = vpop.f32.mrb[6].mxu1 }
 0x23a   : > { %v1104_v30 = vadd.f32 %v1100_v29, %v1008_v52  ;;  %v7443_v53 = vpop.f32.mrb[7].mxu0  ;;  %v7448_v54 = vpop.f32.mrb[7].mxu1 }
 0x23c   : > { %v1192_v55 = vadd.f32 %v1188_v50, %v1104_v30 }
 0x23d   : > { %v1268_v58 = vpop.f32.mrb[8].mxu0  ;;  %v1381_v59 = vpop.f32.mrb[8].mxu1 }
 0x23e   : > { %v1272_v27 = vadd.f32 %v1268_v58, %v1192_v55  ;;  %v7453_v63 = vpop.f32.mrb[9].mxu0  ;;  %v7458_v1 = vpop.f32.mrb[9].mxu1 }
 0x240   : > { %v1278_v47 = vadd.f32 %v9389_v57, %v1272_v27 }
 0x241   : > { %v1466_v9 = vpop.f32.mrb[10].mxu0  ;;  %v1544_v2 = vpop.f32.mrb[10].mxu1 }
 0x242   : > { %v1467_v60 = vadd.f32 %v1466_v9, %v1381_v59  ;;  %v1281_v3 = vsel %vm1279_vm6, %v1278_v47, 0.0  ;;  %v7463_v56 = vpop.f32.mrb[11].mxu0  ;;  %v7468_v4 = vpop.f32.mrb[11].mxu1  ;;  %v1285_v6 = vmul.f32 %v1278_v47, %v1278_v47  ;;  %1280 = vst.msk [vmem:[%s9394_s11] sm:$0xf] %vm1279_vm6, %v1278_v47 }
 0x243   : > { %1282 = vadd.xlane.f32.xlu1 %v1281_v3 }
 0x244   : > { %v1548_v8 = vadd.f32 %v1544_v2, %v1467_v60  ;;  %v1286_v10 = vsel %vm1279_vm6, %v1285_v6, 0.0 }
 0x245   : > { %v1639_v11 = vpop.f32.mrb[12].mxu0  ;;  %1287 = vadd.xlane.f32.xlu0 %v1286_v10  ;;  %v1726_v13 = vpop.f32.mrb[12].mxu1 }
 0x246   : > { %v1643_v62 = vadd.f32 %v1639_v11, %v1548_v8  ;;  %v7473_v38 = vpop.f32.mrb[13].mxu0  ;;  %v7478_v14 = vpop.f32.mrb[13].mxu1 }
 0x248   : > { %v1730_v15 = vadd.f32 %v1726_v13, %v1643_v62 }
 0x249   : > { %v1805_v16 = vpop.f32.mrb[14].mxu0  ;;  %v1900_v5 = vpop.f32.mrb[14].mxu1 }
 0x24a   : > { %v1809_v19 = vadd.f32 %v1805_v16, %v1730_v15  ;;  %v7483_v21 = vpop.f32.mrb[15].mxu0  ;;  %v7488_v22 = vpop.f32.mrb[15].mxu1 }
 0x24c   : > { %v1904_v7 = vadd.f32 %v1900_v5, %v1809_v19 }
 0x24d   : > { %v1987_v20 = vpop.f32.mrb[16].mxu0  ;;  %v2066_v23 = vpop.f32.mrb[16].mxu1 }
 0x24e   : > { %v1991_v12 = vadd.f32 %v1987_v20, %v1904_v7  ;;  %v7493_v24 = vpop.f32.mrb[17].mxu0  ;;  %v7498_v26 = vpop.f32.mrb[17].mxu1 }
 0x250   : > { %v2070_v40 = vadd.f32 %v2066_v23, %v1991_v12 }
 0x251   : > { %v2178_v25 = vpop.f32.mrb[18].mxu0  ;;  %v2263_v28 = vpop.f32.mrb[18].mxu1 }
 0x252   : > { %v2071_v31 = vadd.f32 %v2070_v40, %v9389_v57  ;;  %v2264_v33 = vadd.f32 %v2263_v28, %v2178_v25  ;;  %v7503_v34 = vpop.f32.mrb[19].mxu0  ;;  %v7508_v18 = vpop.f32.mrb[19].mxu1 }
 0x254   : > { %2073 = vrot.lane.b32.xlu1 %v2071_v31, %s8211_s22  ;;  %v2078_v35 = vsel %vm1279_vm6, %v2071_v31, 0.0  ;;  %v2082_v49 = vmul.f32 %v2071_v31, %v2071_v31  ;;  %s8218_s22 = smov [#allocation13]  }
 0x255   : > { %v2341_v36 = vpop.f32.mrb[20].mxu0  ;;  %2079 = vadd.xlane.f32.xlu0 %v2078_v35  ;;  %v2436_v32 = vpop.f32.mrb[20].mxu1 }
 0x256   : > { %v2345_v37 = vadd.f32 %v2341_v36, %v2264_v33  ;;  %v7513_v39 = vpop.f32.mrb[21].mxu0  ;;  %v7518_v41 = vpop.f32.mrb[21].mxu1  ;;  %v2083_v43 = vsel %vm1279_vm6, %v2082_v49, 0.0 }
 0x258   : > { %v2440_v42 = vadd.f32 %v2436_v32, %v2345_v37 }
 0x259   : > { %v2523_v45 = vpop.f32.mrb[22].mxu0  ;;  %2084 = vadd.xlane.f32.xlu0 %v2083_v43  ;;  %v2602_v46 = vpop.f32.mrb[22].mxu1 }
 0x25a   : > { %v2527_v17 = vadd.f32 %v2523_v45, %v2440_v42  ;;  %v7523_v48 = vpop.f32.mrb[23].mxu0  ;;  %v7528_v61 = vpop.f32.mrb[23].mxu1 }
 0x25c   : > { %v2606_v51 = vadd.f32 %v2602_v46, %v2527_v17 }
 0x25d   : > { %v2697_v44 = vpop.f32.mrb[24].mxu0  ;;  %v2784_v0 = vpop.f32.mrb[24].mxu1 }
 0x25e   : > { %v2701_v52 = vadd.f32 %v2697_v44, %v2606_v51  ;;  %v7533_v29 = vpop.f32.mrb[25].mxu0  ;;  %v7538_v50 = vpop.f32.mrb[25].mxu1 }
 0x260   : > { %v2788_v30 = vadd.f32 %v2784_v0, %v2701_v52 }
 0x261   : > { %v2863_v53 = vpop.f32.mrb[26].mxu0  ;;  %v2975_v54 = vpop.f32.mrb[26].mxu1 }
 0x262   : > { %v2867_v55 = vadd.f32 %v2863_v53, %v2788_v30  ;;  %v7543_v58 = vpop.f32.mrb[27].mxu0  ;;  %v7548_v59 = vpop.f32.mrb[27].mxu1 }
 0x264   : > { %v2868_v10 = vadd.f32 %v2867_v55, %v9389_v57 }
 0x265   : > { %v3060_v27 = vpop.f32.mrb[28].mxu0  ;;  %v3138_v63 = vpop.f32.mrb[28].mxu1 }
 0x266   : > { %v3061_v1 = vadd.f32 %v3060_v27, %v2975_v54  ;;  %v7553_v47 = vpop.f32.mrb[29].mxu0  ;;  %v7558_v9 = vpop.f32.mrb[29].mxu1  ;;  %v2875_v40 = vsel %vm1279_vm6, %v2868_v10, 0.0  ;;  %v2879_v30 = vmul.f32 %v2868_v10, %v2868_v10 }
 0x268   : > { %v3142_v2 = vadd.f32 %v3138_v63, %v3061_v1  ;;  %v2880_v63 = vsel %vm1279_vm6, %v2879_v30, 0.0 }
 0x269   : > { %v3233_v60 = vpop.f32.mrb[30].mxu0  ;;  %v3320_v3 = vpop.f32.mrb[30].mxu1 }
 0x26a   : > { %v3237_v56 = vadd.f32 %v3233_v60, %v3142_v2  ;;  %v7563_v4 = vpop.f32.mrb[31].mxu0  ;;  %v7568_v6 = vpop.f32.mrb[31].mxu1 }
 0x26c   : > { %v3324_v8 = vadd.f32 %v3320_v3, %v3237_v56 }
 0x26d   : > { %v3399_v11 = vpop.f32.mrb[32].mxu0  ;;  %v3494_v13 = vpop.f32.mrb[32].mxu1 }
 0x26e   : > { %v3403_v62 = vadd.f32 %v3399_v11, %v3324_v8  ;;  %v7573_v38 = vpop.f32.mrb[33].mxu0  ;;  %v7578_v14 = vpop.f32.mrb[33].mxu1 }
 0x26f   : > { %2870 = vrot.lane.b32.xlu0 %v2868_v10, %s8212_s7  ;;  %s8069_s7 = sshll.u32 %s8218_s22, 4  ;;  %s8070_s7 = int_to_ptr.vmem [resolvable:$false] %s8069_s7 }
 0x270   : > { %v3498_v15 = vadd.f32 %v3494_v13, %v3403_v62  ;;  %p8072_p10 = scmp.lt.s32.totalorder %s9436_s13, %s8070_s7 }
 0x271   : > { %v3581_v16 = vpop.f32.mrb[34].mxu0  ;;  %v3660_v5 = vpop.f32.mrb[34].mxu1 }
 0x272   : > { %v3585_v19 = vadd.f32 %v3581_v16, %v3498_v15  ;;  %v7583_v21 = vpop.f32.mrb[35].mxu0  ;;  %v7588_v22 = vpop.f32.mrb[35].mxu1 }
 0x274   : > { %v3664_v7 = vadd.f32 %v3660_v5, %v3585_v19 }
 0x275   : > { %v3772_v20 = vpop.f32.mrb[36].mxu0  ;;  %v3857_v23 = vpop.f32.mrb[36].mxu1 }
 0x276   : > { %v3858_v12 = vadd.f32 %v3857_v23, %v3772_v20  ;;  %v7593_v24 = vpop.f32.mrb[37].mxu0  ;;  %v7598_v26 = vpop.f32.mrb[37].mxu1  ;;  %v3665_v52 = vadd.f32 %v3664_v7, %v9389_v57 }
 0x278   : > { %2876 = vadd.xlane.f32.xlu1 %v2875_v40  ;;  %v3672_v56 = vsel %vm1279_vm6, %v3665_v52, 0.0  ;;  %v3676_v6 = vmul.f32 %v3665_v52, %v3665_v52 }
 0x279   : > { %v3935_v25 = vpop.f32.mrb[38].mxu0  ;;  %v4030_v28 = vpop.f32.mrb[38].mxu1 }
 0x27a   : > { %v3939_v31 = vadd.f32 %v3935_v25, %v3858_v12  ;;  %v7603_v33 = vpop.f32.mrb[39].mxu0  ;;  %v7608_v34 = vpop.f32.mrb[39].mxu1  ;;  %v3677_v38 = vsel %vm1279_vm6, %v3676_v6, 0.0 }
 0x27c   : > { %v4034_v18 = vadd.f32 %v4030_v28, %v3939_v31 }
 0x27d   : > { %v4117_v35 = vpop.f32.mrb[40].mxu0  ;;  %v4196_v49 = vpop.f32.mrb[40].mxu1 }
 0x27e   : > { %v4121_v36 = vadd.f32 %v4117_v35, %v4034_v18  ;;  %v7613_v32 = vpop.f32.mrb[41].mxu0  ;;  %v7618_v37 = vpop.f32.mrb[41].mxu1 }
 0x280   : > { %v4200_v39 = vadd.f32 %v4196_v49, %v4121_v36 }
 0x281   : > { %v4291_v41 = vpop.f32.mrb[42].mxu0  ;;  %v4378_v42 = vpop.f32.mrb[42].mxu1 }
 0x282   : > { %v4295_v43 = vadd.f32 %v4291_v41, %v4200_v39  ;;  %v7623_v45 = vpop.f32.mrb[43].mxu0  ;;  %v7628_v46 = vpop.f32.mrb[43].mxu1 }
 0x284   : > { %v4382_v17 = vadd.f32 %v4378_v42, %v4295_v43 }
 0x285   : > { %v4457_v48 = vpop.f32.mrb[44].mxu0  ;;  %v4569_v61 = vpop.f32.mrb[44].mxu1 }
 0x286   : > { %v4461_v51 = vadd.f32 %v4457_v48, %v4382_v17  ;;  %v7633_v44 = vpop.f32.mrb[45].mxu0  ;;  %v7638_v0 = vpop.f32.mrb[45].mxu1 }
 0x288   : > { %v4462_v58 = vadd.f32 %v4461_v51, %v9389_v57 }
 0x289   : > { %v4654_v29 = vpop.f32.mrb[46].mxu0  ;;  %3667 = vrot.lane.b32.xlu1 %v3665_v52, %s8213_s20  ;;  %v4732_v50 = vpop.f32.mrb[46].mxu1  ;;  %s8071_s20 = scalar_lea.vmem %s8070_s7, 128 }
 0x28a   : > { %v4655_v53 = vadd.f32 %v4654_v29, %v4569_v61  ;;  %v7643_v54 = vpop.f32.mrb[47].mxu0  ;;  %v7648_v55 = vpop.f32.mrb[47].mxu1  ;;  %v4469_v21 = vsel %vm1279_vm6, %v4462_v58, 0.0  ;;  %v4473_v44 = vmul.f32 %v4462_v58, %v4462_v58  ;;  %p8073_p3 = scmp.lt.s32.totalorder %s8071_s20, %s8065_s30 }
 0x28c   : > { %v4736_v59 = vadd.f32 %v4732_v50, %v4655_v53  ;;  %v4474_v54 = vsel %vm1279_vm6, %v4473_v44, 0.0  ;;  %p8074_p1 = por %p8073_p3, %p8072_p10 }
 0x28d   : > { %v4827_v27 = vpop.f32.mrb[48].mxu0  ;;  %4464 = vrot.lane.b32.xlu1 %v4462_v58, %s8214_s18  ;;  %v4914_v1 = vpop.f32.mrb[48].mxu1 }
 0x28e   : > { %v4831_v47 = vadd.f32 %v4827_v27, %v4736_v59  ;;  %2881 = vadd.xlane.f32.xlu0 %v2880_v63  ;;  %v7653_v9 = vpop.f32.mrb[49].mxu0  ;;  %v7658_v2 = vpop.f32.mrb[49].mxu1  ;;  %p8075_p4 = pnand %p8074_p1, %p8068_p5 }
 0x290   : > { %v4918_v60 = vadd.f32 %v4914_v1, %v4831_v47 }
 0x291   : > { %v4993_v3 = vpop.f32.mrb[50].mxu0  ;;  %v5088_v4 = vpop.f32.mrb[50].mxu1 }
 0x292   : > { %v4997_v8 = vadd.f32 %v4993_v3, %v4918_v60  ;;  %3673 = vadd.xlane.f32.xlu0 %v3672_v56  ;;  %v7663_v10 = vpop.f32.mrb[51].mxu0  ;;  %v7668_v11 = vpop.f32.mrb[51].mxu1 }
 0x294   : > { %v5092_v13 = vadd.f32 %v5088_v4, %v4997_v8 }
 0x295   : > { %v5175_v62 = vpop.f32.mrb[52].mxu0  ;;  %v5254_v14 = vpop.f32.mrb[52].mxu1 }
 0x296   : > { %v5179_v15 = vadd.f32 %v5175_v62, %v5092_v13  ;;  %3678 = vadd.xlane.f32.xlu0 %v3677_v38  ;;  %v7673_v16 = vpop.f32.mrb[53].mxu0  ;;  %v7678_v5 = vpop.f32.mrb[53].mxu1 }
 0x298   : > { %v5258_v19 = vadd.f32 %v5254_v14, %v5179_v15 }
 0x299   : > { %v5366_v22 = vpop.f32.mrb[54].mxu0  ;;  %v5451_v7 = vpop.f32.mrb[54].mxu1 }
 0x29a   : > { %4470 = vadd.xlane.f32.xlu0 %v4469_v21  ;;  %v5452_v20 = vadd.f32 %v5451_v7, %v5366_v22  ;;  %v7683_v23 = vpop.f32.mrb[55].mxu0  ;;  %v7688_v12 = vpop.f32.mrb[55].mxu1  ;;  %v5259_v51 = vadd.f32 %v5258_v19, %v9389_v57 }
 0x29c   : > { %v5270_v55 = vmul.f32 %v5259_v51, %v5259_v51 }
 0x29d   : > { %v5529_v24 = vpop.f32.mrb[56].mxu0  ;;  %v5624_v26 = vpop.f32.mrb[56].mxu1 }
 0x29e   : > { %v5533_v40 = vadd.f32 %v5529_v24, %v5452_v20  ;;  %v7693_v25 = vpop.f32.mrb[57].mxu0  ;;  %v7698_v28 = vpop.f32.mrb[57].mxu1  ;;  %v5271_v2 = vsel %vm1279_vm6, %v5270_v55, 0.0  ;;  %v5266_v20 = vsel %vm1279_vm6, %v5259_v51, 0.0 }
 0x2a0   : > { %v5628_v31 = vadd.f32 %v5624_v26, %v5533_v40 }
 0x2a1   : > { %v5711_v33 = vpop.f32.mrb[58].mxu0  ;;  %v5790_v34 = vpop.f32.mrb[58].mxu1 }
 0x2a2   : > { %v5715_v18 = vadd.f32 %v5711_v33, %v5628_v31  ;;  %v7703_v35 = vpop.f32.mrb[59].mxu0  ;;  %v7708_v49 = vpop.f32.mrb[59].mxu1 }
 0x2a4   : > { %v5794_v36 = vadd.f32 %v5790_v34, %v5715_v18 }
 0x2a5   : > { %v5885_v32 = vpop.f32.mrb[60].mxu0  ;;  %v5972_v37 = vpop.f32.mrb[60].mxu1 }
 0x2a6   : > { %v5889_v39 = vadd.f32 %v5885_v32, %v5794_v36  ;;  %v7713_v41 = vpop.f32.mrb[61].mxu0  ;;  %v7718_v42 = vpop.f32.mrb[61].mxu1 }
 0x2a8   : > { %v5976_v43 = vadd.f32 %v5972_v37, %v5889_v39 }
 0x2a9   : > { %v6051_v45 = vpop.f32.mrb[62].mxu0  ;;  %v6163_v46 = vpop.f32.mrb[62].mxu1 }
 0x2aa   : > { %v6055_v17 = vadd.f32 %v6051_v45, %v5976_v43  ;;  %v7723_v48 = vpop.f32.mrb[63].mxu0  ;;  %v7728_v61 = vpop.f32.mrb[63].mxu1 }
 0x2ac   : > { %v6056_v9 = vadd.f32 %v6055_v17, %v9389_v57 }
 0x2ad   : > { %v6248_v0 = vpop.f32.mrb[64].mxu0  ;;  %v6326_v52 = vpop.f32.mrb[64].mxu1 }
 0x2ae   : > { %v6249_v29 = vadd.f32 %v6248_v0, %v6163_v46  ;;  %v7733_v50 = vpop.f32.mrb[65].mxu0  ;;  %v7738_v30 = vpop.f32.mrb[65].mxu1  ;;  %v6063_v10 = vsel %vm1279_vm6, %v6056_v9, 0.0  ;;  %v6067_v11 = vmul.f32 %v6056_v9, %v6056_v9 }
 0x2b0   : > { %v6330_v53 = vadd.f32 %v6326_v52, %v6249_v29  ;;  %5261 = vrot.lane.b32.xlu0 %v5259_v51, %s8215_s21  ;;  %v6068_v5 = vsel %vm1279_vm6, %v6067_v11, 0.0 }
 0x2b1   : > { %v6421_v59 = vpop.f32.mrb[66].mxu0  ;;  %4475 = vadd.xlane.f32.xlu1 %v4474_v54  ;;  %v6508_v27 = vpop.f32.mrb[66].mxu1 }
 0x2b2   : > { %v6425_v63 = vadd.f32 %v6421_v59, %v6330_v53  ;;  %v7743_v1 = vpop.f32.mrb[67].mxu0  ;;  %v7748_v47 = vpop.f32.mrb[67].mxu1 }
 0x2b4   : > { %v6512_v58 = vadd.f32 %v6508_v27, %v6425_v63 }
 0x2b5   : > { %v6587_v60 = vpop.f32.mrb[68].mxu0  ;;  %5272 = vadd.xlane.f32.xlu1 %v5271_v2  ;;  %v6667_v3 = vpop.f32.mrb[68].mxu1 }
 0x2b6   : > { %v6591_v56 = vadd.f32 %v6587_v60, %v6512_v58  ;;  %v7753_v4 = vpop.f32.mrb[69].mxu0  ;;  %v7758_v6 = vpop.f32.mrb[69].mxu1 }
 0x2b8   : > { %v6671_v8 = vadd.f32 %v6667_v3, %v6591_v56 }
 0x2b9   : > { %v6745_v13 = vpop.f32.mrb[70].mxu0  ;;  %6064 = vadd.xlane.f32.xlu1 %v6063_v10  ;;  %v6824_v62 = vpop.f32.mrb[70].mxu1 }
 0x2ba   : > { %v6749_v38 = vadd.f32 %v6745_v13, %v6671_v8  ;;  %v7763_v14 = vpop.f32.mrb[71].mxu0  ;;  %v7768_v15 = vpop.f32.mrb[71].mxu1 }
 0x2bc   : > { %v6828_v16 = vadd.f32 %v6824_v62, %v6749_v38 }
 0x2bd   : > { %6069 = vadd.xlane.f32.xlu1 %v6068_v5 }
 0x2be   : > { %v6829_v19 = vadd.f32 %v6828_v16, %v9389_v57 }
 0x2c0   : > { %v6836_v21 = vsel %vm1279_vm6, %v6829_v19, 0.0  ;;  %v6840_v22 = vmul.f32 %v6829_v19, %v6829_v19 }
 0x2c1   : > { %6837 = vadd.xlane.f32.xlu1 %v6836_v21 }
 0x2c2   : > { %v6841_v7 = vsel %vm1279_vm6, %v6840_v22, 0.0 }
 0x2c5   : > { %6842 = vadd.xlane.f32.xlu1 %v6841_v7 }
 0x2cf   : > { %5267 = vadd.xlane.f32.xlu0 %v5266_v20 }
 0x2d0   : > { %v1283_v23 = vpop.xlane.xlu1 %1282 }
 0x2d2   : > { %v1288_v24 = vpop.xlane.xlu0 %1287 }
 0x2d4   : > { %v2074_v12 = vpop.permute.xlu1 %2073 }
 0x2d5   : > { %2077 = vst.msk [vmem:[%s9394_s11] sm:$0xf] %vm2076_vm7, %v2074_v12 }
 0x2d6   : > { %6831 = vrot.lane.b32.xlu1 %v6829_v19, %s8216_s19 }
 0x2e2   : > { %v2080_v57 = vpop.xlane.xlu0 %2079 }
 0x2e3   : > { %v2081_v26 = vadd.f32 %v2080_v57, %v1283_v23 }
 0x2e5   : > { %6058 = vrot.lane.b32.xlu0 %v6056_v9, %s8217_s9 }
 0x2e6   : > { %v2085_v40 = vpop.xlane.xlu0 %2084 }
 0x2e7   : > { %v2086_v25 = vadd.f32 %v2085_v40, %v1288_v24 }
 0x2ea   : > { %v2871_v28 = vpop.permute.xlu0 %2870 }
 0x2eb   : > { %2874 = vst.msk [vmem:[%s9394_s11] sm:$0xf] %vm2873_vm8, %v2871_v28 }
 0x305   : > { %v2877_v31 = vpop.xlane.xlu1 %2876 }
 0x306   : > { %v2878_v33 = vadd.f32 %v2877_v31, %v2081_v26 }
 0x309   : > { %v3668_v34 = vpop.permute.xlu1 %3667 }
 0x30a   : > { %3671 = vst.msk [vmem:[%s9394_s11] sm:$0xf] %vm3670_vm9, %v3668_v34 }
 0x30d   : > { %v4465_v18 = vpop.permute.xlu1 %4464 }
 0x30e   : > { %4468 = vst.msk [vmem:[%s9394_s11] sm:$0xf] %vm4467_vm10, %v4465_v18 }
 0x31b   : > { %v2882_v35 = vpop.xlane.xlu0 %2881 }
 0x31c   : > { %v2883_v46 = vadd.f32 %v2882_v35, %v2086_v25 }
 0x31f   : > { %v3674_v49 = vpop.xlane.xlu0 %3673 }
 0x320   : > { %v3675_v17 = vadd.f32 %v3674_v49, %v2878_v33 }
 0x323   : > { %v3679_v36 = vpop.xlane.xlu0 %3678 }
 0x324   : > { %v3680_v48 = vadd.f32 %v3679_v36, %v2883_v46 }
 0x327   : > { %v4471_v32 = vpop.xlane.xlu0 %4470 }
 0x328   : > { %v4472_v61 = vadd.f32 %v4471_v32, %v3675_v17 }
 0x32b   : > { %v5262_v37 = vpop.permute.xlu0 %5261 }
 0x32c   : > { %5265 = vst.msk [vmem:[%s9394_s11] sm:$0xf] %vm5264_vm11, %v5262_v37 }
 0x33e   : > { %v4476_v39 = vpop.xlane.xlu1 %4475 }
 0x33f   : > { %v4477_v44 = vadd.f32 %v4476_v39, %v3680_v48 }
 0x342   : > { %v5273_v41 = vpop.xlane.xlu1 %5272 }
 0x343   : > { %v5274_v29 = vadd.f32 %v5273_v41, %v4477_v44 }
 0x346   : > { %v6065_v42 = vpop.xlane.xlu1 %6064 }
 0x34a   : > { %v6070_v43 = vpop.xlane.xlu1 %6069 }
 0x34b   : > { %v6071_v30 = vadd.f32 %v6070_v43, %v5274_v29 }
 0x34e   : > { %v6838_v45 = vpop.xlane.xlu1 %6837 }
 0x352   : > { %v6843_v51 = vpop.xlane.xlu1 %6842 }
 0x353   : > { %v6844_v59 = vadd.f32 %v6843_v51, %v6071_v30 }
 0x356   : > { %v6832_v54 = vpop.permute.xlu1 %6831 }
 0x35c   : > { %v5268_v0 = vpop.xlane.xlu0 %5267 }
 0x35d   : > { %v5269_v52 = vadd.f32 %v5268_v0, %v4472_v61 }
 0x35f   : > { %v6066_v50 = vadd.f32 %v6065_v42, %v5269_v52 }
 0x360   : > { %v6059_v53 = vpop.permute.xlu0 %6058 }
 0x361   : > { %v6839_v55 = vadd.f32 %v6838_v45, %v6066_v50  ;;  %6062 = vst.msk [vmem:[%s9394_s11] sm:$0xf] %vm6061_vm12, %v6059_v53 }
 0x362   : > { %6835 = vst.msk [vmem:[%s9394_s11] sm:$0xf] %vm6834_vm13, %v6832_v54 }
 0x363   : > { %8078 = shalt.err (!%p8075_p4)
}
 0x364   : > { %s8079_s11 = scalar_lea.hbm %s9434_s1, 64  ;;  %s8083_s19 = scalar_lea.hbm %s9589_s14, 128 }
 0x365   : > { %p8080_p12 = scmp.ne.s32.totalorder %s9434_s1, %s8079_s11  ;;  %p8084_p0 = scmp.lt.u32.totalorder %s9434_s1, %s9589_s14 }
 0x366   : > { %p8085_p7 = scmp.lt.u32.totalorder %s8083_s19, %s8079_s11  ;;  %p8087_p13 = scmp.lt.u32.totalorder %s8079_s11, %s9434_s1 }
 0x367   : > { %p8081_p9 = pnand %p8080_p12, %p9591_p6 }
 0x368   : > { %p8086_p2 = por %p8085_p7, %p8084_p0 }
 0x369   : > { %p8082_p8 = pneg %p8081_p9 }
 0x36a   : > { %p8088_p11 = por %p8087_p13, %p8086_p2 }
 0x36c   : > { %p8089_p5 = pnand %p8088_p11, %p8082_p8 }
 0x36e   : > { %8092 = shalt.err (!%p8089_p5)
}
 0x36f   : > { %7785 = dma.vmem_to_hbm [thread:$0]  (%p9591_p6), %s9436_s13, 64, %s9434_s1, %s6850_s8   ;;  %6846 = vst.msk [vmem:[%s9428_s23] sm:$0xf] %vm6845_vm14, %v6839_v55 }
 0x370   : > { %6848 = vst.msk [vmem:[%s9428_s23] sm:$0xf] %vm6847_vm15, %v6844_v59  ;;  %s6855_s5 = scalar_lea.sflag [#allocation15], %s8555_s16  ;;  %s8093_s6 = scalar_lea.vmem %s9445_s0, 64 }
 0x371   : > { %p8094_p10 = scmp.ne.s32.totalorder %s9445_s0, %s8093_s6  ;;  %s8219_s24 = smov [#allocation14]  }
 0x372   : > { %s8097_s27 = sshll.u32 %s8219_s24, 4  ;;  %s8098_s27 = int_to_ptr.vmem [resolvable:$false] %s8097_s27 }
 0x373   : > { %p8095_p3 = pnand %p8094_p10, %p9591_p6  ;;  %s8099_s10 = scalar_lea.vmem %s8098_s27, 128 }
 0x374   : > { %p8100_p4 = scmp.lt.s32.totalorder %s9445_s0, %s8098_s27  ;;  %p8101_p12 = scmp.lt.s32.totalorder %s8099_s10, %s8093_s6 }
 0x375   : > { %p8096_p1 = pneg %p8095_p3 }
 0x376   : > { %p8102_p9 = por %p8101_p12, %p8100_p4 }
 0x378   : > { %p8103_p8 = pnand %p8102_p9, %p8096_p1 }
 0x37a   : > { %8106 = shalt.err (!%p8103_p8)
}
 0x37b   : > { %s8107_s16 = scalar_lea.hbm %s9443_s4, 64  ;;  %s8111_s1 = scalar_lea.hbm %s9590_s17, 128 }
 0x37c   : > { %p8108_p0 = scmp.ne.s32.totalorder %s9443_s4, %s8107_s16  ;;  %p8112_p13 = scmp.lt.u32.totalorder %s9443_s4, %s9590_s17 }
 0x37d   : > { %p8113_p11 = scmp.lt.u32.totalorder %s8111_s1, %s8107_s16  ;;  %p8115_p10 = scmp.lt.u32.totalorder %s8107_s16, %s9443_s4 }
 0x37e   : > { %p8109_p7 = pnand %p8108_p0, %p9591_p6 }
 0x37f   : > { %p8114_p5 = por %p8113_p11, %p8112_p13 }
 0x380   : > { %p8110_p2 = pneg %p8109_p7 }
 0x381   : > { %p8116_p3 = por %p8115_p10, %p8114_p5 }
 0x383   : > { %p8117_p1 = pnand %p8116_p3, %p8110_p2 }
 0x385   : > { %8120 = shalt.err (!%p8117_p1)
}
 0x386   : > { %7786 = dma.vmem_to_hbm [thread:$0]  (%p9591_p6), %s9445_s0, 64, %s9443_s4, %s6855_s5  }
 0x387 PF: > { %s9592_s22 = sld [smem:[#allocation23_spill]]  ;;  %s9593_s7 = sld [smem:[#allocation24_spill]] }
 0x388   : > { %p9595_p12 = scmp.ge.s32.totalorder %s8195_s29, 2 }
 0x38d   : > { %s6895_s20 = sand.u32 1, %s9592_s22   ;;  %p9594_p4 = scmp.ne.s32.totalorder %s9593_s7, 0 }
 0x38e   : > { %s6896_s11 = scalar_lea.sflag [#allocation4], %s6895_s20 }
 0x38f   : > { %p7810_p9 = pnand %p9595_p12, %p9594_p4 }
 0x391   : > { %8166 = dma.done.wait (!%p7810_p9), %s6896_s11, 64  }
 0x392   : > { %8168 = vsyncadd (!%p7810_p9), %s6896_s11, 4294967232  ;;  %s6905_s18 = scalar_lea.sflag [#allocation15], %s6895_s20 }
 0x393   : > { %8170 = dma.done.wait (!%p7810_p9), %s6905_s18, 64  }
 0x394   : > { %8172 = vsyncadd (!%p7810_p9), %s6905_s18, 4294967232  ;;  %s34_s29 = sadd.s32 1, %s8195_s29   ;;  %s9596_s12 = sld [smem:[#allocation26_spill]] }
 0x395   : > { %p31_p8 = scmp.ge.s32.totalorder %s34_s29, 4   ;;  %s9597_s0 = sld [smem:[#allocation25_spill]] }
 0x396   : > { %s9598_s24 = smov %s8179_s25  ;;  %s9599_s25 = smov %s8183_s26 }
 0x397   : > { %s9601_s27 = smov %s8191_s28  ;;  %33 = sbr.rel (!%p31_p8) target bundleno = 20 (0x14), region = 159 }
 0x39a   : > { %s9600_s26 = smov %s9596_s12 }
 0x39b   : > { %s9602_s28 = smov %s9597_s0 }
 0x39e   :  { %6910 = vsyncpa [#allocation3], 1 }
 0x39f   :  { %6912 = vsyncpa [#allocation3 + $0x1], 1 }
 0x3a0   :  { %6913 = vsyncpa [#allocation6], 1 }
 0x3a1   :  { %6915 = vsyncpa [#allocation6 + $0x1], 1 }
 0x3a2   :  { %6916 = vsyncpa [#allocation9], 1 }
 0x3a3   :  { %6918 = vsyncpa [#allocation9 + $0x1], 1 }
 0x3a4   :  { %6919 = vsyncpa [#allocation12], 1 }
 0x3a5   :  { %6920 = vsyncpa [#allocation4], 1 }
 0x3a6   :  { %6922 = vsyncpa [#allocation4 + $0x1], 1 }
 0x3a7   :  { %6923 = vsyncpa [#allocation15], 1 }
 0x3a8   :  { %6925 = vsyncpa [#allocation15 + $0x1], 1 }

</bundles_post_ra>
